<compile_context>
chip_gen: v7x
topology: tpu7x:2x2x1
jax: 0.10.0
libtpu: 0.0.40
codegen_flags: <defaults>
</compile_context>

<pallas_src>
import math
import functools
import numpy as np
import jax
import jax.numpy as jnp
from jax.experimental import pallas as pl
from jax.experimental.pallas import tpu as pltpu

EPS = 1e-5


# ---------------------------------------------------------------------------
# Fused Pallas kernel (factory closes over static shapes / depth)
# ---------------------------------------------------------------------------
def make_xception_kernel(n, t0, c_in, f, k, depth, n_shortcuts):
    left = math.ceil(k / 2) - 1

    def bcast(m):
        # add a leading batch dim so every contraction is a batched matmul
        return jnp.broadcast_to(m[None], (n,) + m.shape)

    def sel_matmul(sel, x):
        # sel: (S, T) one-hot selection, x: (N, T, C)  ->  (N, S, C)
        return jnp.einsum('nst,ntc->nsc', bcast(sel), x,
                          preferred_element_type=jnp.float32)

    def one_hot(shape, cond_fn):
        rows = jax.lax.broadcasted_iota(jnp.int32, shape, 0)
        cols = jax.lax.broadcasted_iota(jnp.int32, shape, 1)
        return jnp.where(cond_fn(rows, cols), 1.0, 0.0)

    def pad_same(x, t):
        # zero "same" padding along time, done as a (T+K-1, T) injection matmul
        tp = t + k - 1
        pmat = one_hot((tp, t), lambda r, c: r == c + left)
        return sel_matmul(pmat, x)                      # (N, T+K-1, C)

    def conv_same(x, w_ref, t):
        # x: (N, T, Cin); w_ref: (K, Cin, F)  ->  (N, T, F)
        xp = pad_same(x, t)
        acc = jnp.zeros((n, t, f), jnp.float32)
        for kk in range(k):
            acc = acc + jnp.einsum('ntc,ncf->ntf',
                                   xp[:, kk:kk + t, :], bcast(w_ref[kk]),
                                   preferred_element_type=jnp.float32)
        return acc

    def batchnorm(y, gamma, beta, t):
        # training-mode BatchNorm1d over (N, T); gamma/beta: (1, F)
        denom = float(n * t)
        mean = jnp.sum(jnp.sum(y, axis=0, keepdims=True),
                       axis=1, keepdims=True) / denom
        var = jnp.sum(jnp.sum((y - mean) ** 2, axis=0, keepdims=True),
                      axis=1, keepdims=True) / denom
        yn = (y - mean) * jax.lax.rsqrt(var + EPS)
        return yn * gamma[None] + beta[None]

    def maxpool2(x, t):
        # MaxPool1d(kernel=2, stride=2) via even/odd one-hot selections
        th = t // 2
        ev = one_hot((th, t), lambda r, c: c == 2 * r)
        od = one_hot((th, t), lambda r, c: c == 2 * r + 1)
        return jnp.maximum(sel_matmul(ev, x), sel_matmul(od, x))

    def gap(x, t):
        # Pad_Pool(left=0, right=1, value=0) + AvgPool1d(kernel=2, stride=1)
        if t == 1:
            return 0.5 * x
        nxt = one_hot((t, t), lambda r, c: c == r + 1)
        return 0.5 * (x + sel_matmul(nxt, x))

    def kernel(*refs):
        x_ref = refs[0]
        w_refs = refs[1:1 + depth]
        idx = 1 + depth
        gam_ref, bet_ref = refs[idx], refs[idx + 1]
        idx += 2
        wsc_refs = refs[idx:idx + n_shortcuts]
        idx += n_shortcuts
        if n_shortcuts:
            bsc = refs[idx][...]                  # (n_shortcuts, F)
            idx += 1
        out_ref = refs[idx]

        gam = gam_ref[...]                        # (depth + n_shortcuts, F)
        bet = bet_ref[...]

        x = x_ref[...]                            # (N, T0, C_in)
        input_res = x
        t = t0
        sc = 0
        for d in range(depth):
            y = conv_same(x, w_refs[d], t)
            y = batchnorm(y, gam[d:d + 1, :], bet[d:d + 1, :], t)
            x = jnp.maximum(y, 0.0)
            if d % 3 == 2:
                r = conv_same(input_res, wsc_refs[sc], t)
                r = r + bsc[sc:sc + 1, :][None]
                gi = depth + sc
                r = batchnorm(r, gam[gi:gi + 1, :], bet[gi:gi + 1, :], t)
                x = jnp.maximum(x + r, 0.0)
                input_res = x
                sc += 1
            x = maxpool2(x, t)
            input_res = maxpool2(input_res, t)
            t //= 2
        out_ref[...] = gap(x, t)                  # single lane store at the end

    return kernel


# ---------------------------------------------------------------------------
# Wrapper: boundary transpose + weight prep + ONE pallas_call
# ---------------------------------------------------------------------------
def xception_forward(x_nchw, params, kernel_size, depth):
    # x[:, :, 0, :]  (N, C, T)  ->  channel-last (N, T, C)
    x = jnp.transpose(x_nchw[:, :, 0, :], (0, 2, 1)).astype(jnp.float32)
    n, t0, _ = x.shape
    f = params["blocks"][0]["pw"].shape[1]
    n_shortcuts = depth // 3
    assert t0 // (2 ** depth) >= 1, "timesamples too small for this depth"

    # fold depthwise + pointwise into a per-tap (Cin, F) weight (weight prep)
    w_list = [blk["dw"][:, :, None] * blk["pw"][None, :, :]
              for blk in params["blocks"]]
    gam = jnp.concatenate([blk["gamma"] for blk in params["blocks"]]
                          + [sc["gamma"] for sc in params["shortcuts"]], axis=0)
    bet = jnp.concatenate([blk["beta"] for blk in params["blocks"]]
                          + [sc["beta"] for sc in params["shortcuts"]], axis=0)

    args = [x] + w_list + [gam, bet]
    if n_shortcuts:
        args += [sc["w"] for sc in params["shortcuts"]]
        args += [jnp.concatenate([sc["b"] for sc in params["shortcuts"]], axis=0)]

    kernel = make_xception_kernel(n, t0, x.shape[2], f, kernel_size,
                                  depth, n_shortcuts)
    t_final = t0 // (2 ** depth)
    out = pl.pallas_call(
        kernel,
        out_shape=jax.ShapeDtypeStruct((n, t_final, f), jnp.float32),
        in_specs=[pl.BlockSpec(memory_space=pltpu.MemorySpace.VMEM)
                  for _ in args],
        out_specs=pl.BlockSpec(memory_space=pltpu.MemorySpace.VMEM),
    )(*args)
    return jnp.transpose(out, (0, 2, 1))          # back to PyTorch (N, F, T_out)


# ---------------------------------------------------------------------------
# Parameter init (PyTorch-default gamma=1, beta=0; generalizes to >1 shortcut)
# ---------------------------------------------------------------------------
def init_params(key, c_in, nb_filters, kernel_size, depth):
    n_shortcuts = depth // 3
    keys = jax.random.split(key, 2 * depth + 2 * max(n_shortcuts, 1))
    blocks = []
    cin = c_in
    for d in range(depth):
        dw = 0.3 * jax.random.normal(keys[2 * d], (kernel_size, cin), jnp.float32)
        pw = 0.3 * jax.random.normal(keys[2 * d + 1], (cin, nb_filters), jnp.float32)
        blocks.append(dict(dw=dw, pw=pw,
                           gamma=jnp.ones((1, nb_filters), jnp.float32),
                           beta=jnp.zeros((1, nb_filters), jnp.float32)))
        cin = nb_filters
    shortcuts = []
    for s in range(n_shortcuts):
        cin_s = c_in if s == 0 else nb_filters
        w = 0.3 * jax.random.normal(keys[2 * depth + 2 * s],
                                    (kernel_size, cin_s, nb_filters), jnp.float32)
        b = 0.1 * jax.random.normal(keys[2 * depth + 2 * s + 1],
                                    (1, nb_filters), jnp.float32)
        shortcuts.append(dict(w=w, b=b,
                              gamma=jnp.ones((1, nb_filters), jnp.float32),
                              beta=jnp.zeros((1, nb_filters), jnp.float32)))
    return {"blocks": blocks, "shortcuts": shortcuts}


# ---------------------------------------------------------------------------
# Pure-JAX reference (depthwise-then-pointwise, identical semantics)
# ---------------------------------------------------------------------------
def reference_forward(x_nchw, params, kernel_size, depth):
    x = jnp.transpose(x_nchw[:, :, 0, :], (0, 2, 1)).astype(jnp.float32)
    k = kernel_size
    left, right = math.ceil(k / 2) - 1, math.floor(k / 2)

    def pad_same(v):
        return jnp.pad(v, ((0, 0), (left, right), (0, 0)))

    def bn(y, gamma, beta):
        mean = jnp.mean(y, axis=(0, 1), keepdims=True)
        var = jnp.mean((y - mean) ** 2, axis=(0, 1), keepdims=True)
        return (y - mean) * jax.lax.rsqrt(var + EPS) * gamma[None] + beta[None]

    def block(v, blk):
        t = v.shape[1]
        vp = pad_same(v)
        acc = jnp.zeros(v.shape, jnp.float32)
        for kk in range(k):
            acc = acc + vp[:, kk:kk + t, :] * blk["dw"][kk][None, None, :]
        y = jnp.einsum('ntc,cf->ntf', acc, blk["pw"])
        return jax.nn.relu(bn(y, blk["gamma"], blk["beta"]))

    def shortcut(res_in, sc):
        t = res_in.shape[1]
        rp = pad_same(res_in)
        acc = jnp.zeros((res_in.shape[0], t, sc["w"].shape[2]), jnp.float32)
        for kk in range(k):
            acc = acc + jnp.einsum('ntc,cf->ntf', rp[:, kk:kk + t, :], sc["w"][kk])
        return bn(acc + sc["b"][None], sc["gamma"], sc["beta"])

    def mp(v):
        nn_, t, c = v.shape
        return jnp.max(v.reshape(nn_, t // 2, 2, c), axis=2)

    def gp(v):
        t = v.shape[1]
        vp = jnp.pad(v, ((0, 0), (0, 1), (0, 0)))
        return (vp[:, 0:t, :] + vp[:, 1:t + 1, :]) * 0.5

    input_res = x
    sc_cnt = 0
    for d in range(depth):
        x = block(x, params["blocks"][d])
        if d % 3 == 2:
            r = shortcut(input_res, params["shortcuts"][sc_cnt])
            sc_cnt += 1
            x = jax.nn.relu(x + r)
            input_res = x
        x = mp(x)
        input_res = mp(input_res)
    return jnp.transpose(gp(x), (0, 2, 1))


# ---------------------------------------------------------------------------
if __name__ == "__main__":
    # small instantiation: input_shape=(timesamples=16, nb_channels=4),
    # kernel_size=8, nb_filters=8, depth=4, use_residual=True
    N, C, H, T = 2, 4, 16, 16
    K, F, DEPTH = 8, 8, 4

    key = jax.random.PRNGKey(0)
    k_x, k_p = jax.random.split(key)
    x = jax.random.normal(k_x, (N, C, H, T), jnp.float32)
    params = init_params(k_p, C, F, K, DEPTH)

    fwd = jax.jit(functools.partial(xception_forward, kernel_size=K, depth=DEPTH))
    out = jax.block_until_ready(fwd(x, params))

    ref = reference_forward(x, params, K, DEPTH)
    assert out.shape == ref.shape, (out.shape, ref.shape)
    np.testing.assert_allclose(np.asarray(out), np.asarray(ref),
                               rtol=1e-3, atol=1e-3)
    print("KERNEL_OK")
</pallas_src>

<mosaic_0001>
module attributes {stable_mosaic.version = 11 : i64} {
  func.func @kernel(%arg0: memref<2x16x4xf32, #tpu.memory_space<vmem>>, %arg1: memref<8x4x8xf32, #tpu.memory_space<vmem>>, %arg2: memref<8x8x8xf32, #tpu.memory_space<vmem>>, %arg3: memref<8x8x8xf32, #tpu.memory_space<vmem>>, %arg4: memref<8x8x8xf32, #tpu.memory_space<vmem>>, %arg5: memref<5x8xf32, #tpu.memory_space<vmem>>, %arg6: memref<5x8xf32, #tpu.memory_space<vmem>>, %arg7: memref<8x4x8xf32, #tpu.memory_space<vmem>>, %arg8: memref<1x8xf32, #tpu.memory_space<vmem>>, %arg9: memref<2x1x8xf32, #tpu.memory_space<vmem>>) attributes {dimension_semantics = [], scalar_prefetch = 0 : i64, scratch_operands = 0 : i64, tpu.core_type = #tpu.core_type<tc>} {
    %c0 = arith.constant 0 : index
    %c0_0 = arith.constant 0 : index
    %0 = vector.load %arg8[%c0, %c0_0] : memref<1x8xf32, #tpu.memory_space<vmem>>, vector<1x8xf32>
    %c0_1 = arith.constant 0 : index
    %c0_2 = arith.constant 0 : index
    %1 = vector.load %arg5[%c0_1, %c0_2] : memref<5x8xf32, #tpu.memory_space<vmem>>, vector<5x8xf32>
    %c0_3 = arith.constant 0 : index
    %c0_4 = arith.constant 0 : index
    %2 = vector.load %arg6[%c0_3, %c0_4] : memref<5x8xf32, #tpu.memory_space<vmem>>, vector<5x8xf32>
    %c0_5 = arith.constant 0 : index
    %c0_6 = arith.constant 0 : index
    %c0_7 = arith.constant 0 : index
    %3 = vector.load %arg0[%c0_5, %c0_6, %c0_7] : memref<2x16x4xf32, #tpu.memory_space<vmem>>, vector<2x16x4xf32>
    %4 = tpu.iota {dimensions = array<i32: 0>} : vector<23x16xi32>
    %5 = tpu.iota {dimensions = array<i32: 1>} : vector<23x16xi32>
    %c3_i32 = arith.constant 3 : i32
    %6 = vector.broadcast %c3_i32 : i32 to vector<23x16xi32>
    %7 = arith.addi %5, %6 : vector<23x16xi32>
    %8 = arith.cmpi eq, %4, %7 : vector<23x16xi32>
    %cst = arith.constant 1.000000e+00 : f32
    %cst_8 = arith.constant 0.000000e+00 : f32
    %9 = vector.broadcast %cst : f32 to vector<23x16xf32>
    %10 = vector.broadcast %cst_8 : f32 to vector<23x16xf32>
    %11 = arith.select %8, %9, %10 : vector<23x16xi1>, vector<23x16xf32>
    %12 = vector.shape_cast %11 : vector<23x16xf32> to vector<1x23x16xf32>
    %13 = vector.shape_cast %12 : vector<1x23x16xf32> to vector<1x23x16xf32>
    %14 = vector.broadcast %13 : vector<1x23x16xf32> to vector<2x23x16xf32>
    "tpu.trace_start"() <{level = 10 : i32, message = "nst,ntc->nsc"}> : () -> ()
    %cst_9 = arith.constant dense<0.000000e+00> : vector<2x23x4xf32>
    %15 = tpu.matmul %14, %3, %cst_9 {dimension_numbers = #tpu.dot_dimension_numbers<[2], [1], [1], [2], [0, 0, 0, 1, 1, 2], [0], [0]>} : vector<2x23x16xf32>, vector<2x16x4xf32>, vector<2x23x4xf32> -> vector<2x23x4xf32>
    %cst_10 = arith.constant 0.000000e+00 : f32
    "tpu.trace_stop"() : () -> ()
    %16 = vector.broadcast %cst_10 : f32 to vector<2x16x8xf32>
    %17 = vector.extract_strided_slice %15 {offsets = [0, 0, 0], sizes = [2, 16, 4], strides = [1, 1, 1]} : vector<2x23x4xf32> to vector<2x16x4xf32>
    %c0_11 = arith.constant 0 : index
    %c0_12 = arith.constant 0 : index
    %c0_13 = arith.constant 0 : index
    %18 = vector.load %arg1[%c0_11, %c0_12, %c0_13] : memref<8x4x8xf32, #tpu.memory_space<vmem>>, vector<1x4x8xf32>
    %19 = vector.shape_cast %18 : vector<1x4x8xf32> to vector<4x8xf32>
    %20 = vector.shape_cast %19 : vector<4x8xf32> to vector<1x4x8xf32>
    %21 = vector.shape_cast %20 : vector<1x4x8xf32> to vector<1x4x8xf32>
    %22 = vector.broadcast %21 : vector<1x4x8xf32> to vector<2x4x8xf32>
    "tpu.trace_start"() <{level = 10 : i32, message = "ntc,ncf->ntf"}> : () -> ()
    %cst_14 = arith.constant dense<0.000000e+00> : vector<2x16x8xf32>
    %23 = tpu.matmul %17, %22, %cst_14 {dimension_numbers = #tpu.dot_dimension_numbers<[2], [1], [1], [2], [0, 0, 0, 1, 1, 2], [0], [0]>} : vector<2x16x4xf32>, vector<2x4x8xf32>, vector<2x16x8xf32> -> vector<2x16x8xf32>
    "tpu.trace_stop"() : () -> ()
    %24 = arith.addf %16, %23 : vector<2x16x8xf32>
    %25 = vector.extract_strided_slice %15 {offsets = [0, 1, 0], sizes = [2, 16, 4], strides = [1, 1, 1]} : vector<2x23x4xf32> to vector<2x16x4xf32>
    %c1 = arith.constant 1 : index
    %c0_15 = arith.constant 0 : index
    %c0_16 = arith.constant 0 : index
    %26 = vector.load %arg1[%c1, %c0_15, %c0_16] : memref<8x4x8xf32, #tpu.memory_space<vmem>>, vector<1x4x8xf32>
    %27 = vector.shape_cast %26 : vector<1x4x8xf32> to vector<4x8xf32>
    %28 = vector.shape_cast %27 : vector<4x8xf32> to vector<1x4x8xf32>
    %29 = vector.shape_cast %28 : vector<1x4x8xf32> to vector<1x4x8xf32>
    %30 = vector.broadcast %29 : vector<1x4x8xf32> to vector<2x4x8xf32>
    "tpu.trace_start"() <{level = 10 : i32, message = "ntc,ncf->ntf"}> : () -> ()
    %cst_17 = arith.constant dense<0.000000e+00> : vector<2x16x8xf32>
    %31 = tpu.matmul %25, %30, %cst_17 {dimension_numbers = #tpu.dot_dimension_numbers<[2], [1], [1], [2], [0, 0, 0, 1, 1, 2], [0], [0]>} : vector<2x16x4xf32>, vector<2x4x8xf32>, vector<2x16x8xf32> -> vector<2x16x8xf32>
    "tpu.trace_stop"() : () -> ()
    %32 = arith.addf %24, %31 : vector<2x16x8xf32>
    %33 = vector.extract_strided_slice %15 {offsets = [0, 2, 0], sizes = [2, 16, 4], strides = [1, 1, 1]} : vector<2x23x4xf32> to vector<2x16x4xf32>
    %c2 = arith.constant 2 : index
    %c0_18 = arith.constant 0 : index
    %c0_19 = arith.constant 0 : index
    %34 = vector.load %arg1[%c2, %c0_18, %c0_19] : memref<8x4x8xf32, #tpu.memory_space<vmem>>, vector<1x4x8xf32>
    %35 = vector.shape_cast %34 : vector<1x4x8xf32> to vector<4x8xf32>
    %36 = vector.shape_cast %35 : vector<4x8xf32> to vector<1x4x8xf32>
    %37 = vector.shape_cast %36 : vector<1x4x8xf32> to vector<1x4x8xf32>
    %38 = vector.broadcast %37 : vector<1x4x8xf32> to vector<2x4x8xf32>
    "tpu.trace_start"() <{level = 10 : i32, message = "ntc,ncf->ntf"}> : () -> ()
    %cst_20 = arith.constant dense<0.000000e+00> : vector<2x16x8xf32>
    %39 = tpu.matmul %33, %38, %cst_20 {dimension_numbers = #tpu.dot_dimension_numbers<[2], [1], [1], [2], [0, 0, 0, 1, 1, 2], [0], [0]>} : vector<2x16x4xf32>, vector<2x4x8xf32>, vector<2x16x8xf32> -> vector<2x16x8xf32>
    "tpu.trace_stop"() : () -> ()
    %40 = arith.addf %32, %39 : vector<2x16x8xf32>
    %41 = vector.extract_strided_slice %15 {offsets = [0, 3, 0], sizes = [2, 16, 4], strides = [1, 1, 1]} : vector<2x23x4xf32> to vector<2x16x4xf32>
    %c3 = arith.constant 3 : index
    %c0_21 = arith.constant 0 : index
    %c0_22 = arith.constant 0 : index
    %42 = vector.load %arg1[%c3, %c0_21, %c0_22] : memref<8x4x8xf32, #tpu.memory_space<vmem>>, vector<1x4x8xf32>
    %43 = vector.shape_cast %42 : vector<1x4x8xf32> to vector<4x8xf32>
    %44 = vector.shape_cast %43 : vector<4x8xf32> to vector<1x4x8xf32>
    %45 = vector.shape_cast %44 : vector<1x4x8xf32> to vector<1x4x8xf32>
    %46 = vector.broadcast %45 : vector<1x4x8xf32> to vector<2x4x8xf32>
    "tpu.trace_start"() <{level = 10 : i32, message = "ntc,ncf->ntf"}> : () -> ()
    %cst_23 = arith.constant dense<0.000000e+00> : vector<2x16x8xf32>
    %47 = tpu.matmul %41, %46, %cst_23 {dimension_numbers = #tpu.dot_dimension_numbers<[2], [1], [1], [2], [0, 0, 0, 1, 1, 2], [0], [0]>} : vector<2x16x4xf32>, vector<2x4x8xf32>, vector<2x16x8xf32> -> vector<2x16x8xf32>
    "tpu.trace_stop"() : () -> ()
    %48 = arith.addf %40, %47 : vector<2x16x8xf32>
    %49 = vector.extract_strided_slice %15 {offsets = [0, 4, 0], sizes = [2, 16, 4], strides = [1, 1, 1]} : vector<2x23x4xf32> to vector<2x16x4xf32>
    %c4 = arith.constant 4 : index
    %c0_24 = arith.constant 0 : index
    %c0_25 = arith.constant 0 : index
    %50 = vector.load %arg1[%c4, %c0_24, %c0_25] : memref<8x4x8xf32, #tpu.memory_space<vmem>>, vector<1x4x8xf32>
    %51 = vector.shape_cast %50 : vector<1x4x8xf32> to vector<4x8xf32>
    %52 = vector.shape_cast %51 : vector<4x8xf32> to vector<1x4x8xf32>
    %53 = vector.shape_cast %52 : vector<1x4x8xf32> to vector<1x4x8xf32>
    %54 = vector.broadcast %53 : vector<1x4x8xf32> to vector<2x4x8xf32>
    "tpu.trace_start"() <{level = 10 : i32, message = "ntc,ncf->ntf"}> : () -> ()
    %cst_26 = arith.constant dense<0.000000e+00> : vector<2x16x8xf32>
    %55 = tpu.matmul %49, %54, %cst_26 {dimension_numbers = #tpu.dot_dimension_numbers<[2], [1], [1], [2], [0, 0, 0, 1, 1, 2], [0], [0]>} : vector<2x16x4xf32>, vector<2x4x8xf32>, vector<2x16x8xf32> -> vector<2x16x8xf32>
    "tpu.trace_stop"() : () -> ()
    %56 = arith.addf %48, %55 : vector<2x16x8xf32>
    %57 = vector.extract_strided_slice %15 {offsets = [0, 5, 0], sizes = [2, 16, 4], strides = [1, 1, 1]} : vector<2x23x4xf32> to vector<2x16x4xf32>
    %c5 = arith.constant 5 : index
    %c0_27 = arith.constant 0 : index
    %c0_28 = arith.constant 0 : index
    %58 = vector.load %arg1[%c5, %c0_27, %c0_28] : memref<8x4x8xf32, #tpu.memory_space<vmem>>, vector<1x4x8xf32>
    %59 = vector.shape_cast %58 : vector<1x4x8xf32> to vector<4x8xf32>
    %60 = vector.shape_cast %59 : vector<4x8xf32> to vector<1x4x8xf32>
    %61 = vector.shape_cast %60 : vector<1x4x8xf32> to vector<1x4x8xf32>
    %62 = vector.broadcast %61 : vector<1x4x8xf32> to vector<2x4x8xf32>
    "tpu.trace_start"() <{level = 10 : i32, message = "ntc,ncf->ntf"}> : () -> ()
    %cst_29 = arith.constant dense<0.000000e+00> : vector<2x16x8xf32>
    %63 = tpu.matmul %57, %62, %cst_29 {dimension_numbers = #tpu.dot_dimension_numbers<[2], [1], [1], [2], [0, 0, 0, 1, 1, 2], [0], [0]>} : vector<2x16x4xf32>, vector<2x4x8xf32>, vector<2x16x8xf32> -> vector<2x16x8xf32>
    "tpu.trace_stop"() : () -> ()
    %64 = arith.addf %56, %63 : vector<2x16x8xf32>
    %65 = vector.extract_strided_slice %15 {offsets = [0, 6, 0], sizes = [2, 16, 4], strides = [1, 1, 1]} : vector<2x23x4xf32> to vector<2x16x4xf32>
    %c6 = arith.constant 6 : index
    %c0_30 = arith.constant 0 : index
    %c0_31 = arith.constant 0 : index
    %66 = vector.load %arg1[%c6, %c0_30, %c0_31] : memref<8x4x8xf32, #tpu.memory_space<vmem>>, vector<1x4x8xf32>
    %67 = vector.shape_cast %66 : vector<1x4x8xf32> to vector<4x8xf32>
    %68 = vector.shape_cast %67 : vector<4x8xf32> to vector<1x4x8xf32>
    %69 = vector.shape_cast %68 : vector<1x4x8xf32> to vector<1x4x8xf32>
    %70 = vector.broadcast %69 : vector<1x4x8xf32> to vector<2x4x8xf32>
    "tpu.trace_start"() <{level = 10 : i32, message = "ntc,ncf->ntf"}> : () -> ()
    %cst_32 = arith.constant dense<0.000000e+00> : vector<2x16x8xf32>
    %71 = tpu.matmul %65, %70, %cst_32 {dimension_numbers = #tpu.dot_dimension_numbers<[2], [1], [1], [2], [0, 0, 0, 1, 1, 2], [0], [0]>} : vector<2x16x4xf32>, vector<2x4x8xf32>, vector<2x16x8xf32> -> vector<2x16x8xf32>
    "tpu.trace_stop"() : () -> ()
    %72 = arith.addf %64, %71 : vector<2x16x8xf32>
    %73 = vector.extract_strided_slice %15 {offsets = [0, 7, 0], sizes = [2, 16, 4], strides = [1, 1, 1]} : vector<2x23x4xf32> to vector<2x16x4xf32>
    %c7 = arith.constant 7 : index
    %c0_33 = arith.constant 0 : index
    %c0_34 = arith.constant 0 : index
    %74 = vector.load %arg1[%c7, %c0_33, %c0_34] : memref<8x4x8xf32, #tpu.memory_space<vmem>>, vector<1x4x8xf32>
    %75 = vector.shape_cast %74 : vector<1x4x8xf32> to vector<4x8xf32>
    %76 = vector.shape_cast %75 : vector<4x8xf32> to vector<1x4x8xf32>
    %77 = vector.shape_cast %76 : vector<1x4x8xf32> to vector<1x4x8xf32>
    %78 = vector.broadcast %77 : vector<1x4x8xf32> to vector<2x4x8xf32>
    "tpu.trace_start"() <{level = 10 : i32, message = "ntc,ncf->ntf"}> : () -> ()
    %cst_35 = arith.constant dense<0.000000e+00> : vector<2x16x8xf32>
    %79 = tpu.matmul %73, %78, %cst_35 {dimension_numbers = #tpu.dot_dimension_numbers<[2], [1], [1], [2], [0, 0, 0, 1, 1, 2], [0], [0]>} : vector<2x16x4xf32>, vector<2x4x8xf32>, vector<2x16x8xf32> -> vector<2x16x8xf32>
    "tpu.trace_stop"() : () -> ()
    %80 = arith.addf %72, %79 : vector<2x16x8xf32>
    %81 = vector.extract_strided_slice %1 {offsets = [0, 0], sizes = [1, 8], strides = [1, 1]} : vector<5x8xf32> to vector<1x8xf32>
    %82 = vector.extract_strided_slice %2 {offsets = [0, 0], sizes = [1, 8], strides = [1, 1]} : vector<5x8xf32> to vector<1x8xf32>
    %cst_36 = arith.constant dense<0.000000e+00> : vector<16x8xf32>
    %83 = vector.multi_reduction <add>, %80, %cst_36 [0] : vector<2x16x8xf32> to vector<16x8xf32>
    %84 = vector.shape_cast %83 : vector<16x8xf32> to vector<1x16x8xf32>
    %cst_37 = arith.constant dense<0.000000e+00> : vector<1x8xf32>
    %85 = vector.multi_reduction <add>, %84, %cst_37 [1] : vector<1x16x8xf32> to vector<1x8xf32>
    %86 = vector.shape_cast %85 : vector<1x8xf32> to vector<1x1x8xf32>
    %cst_38 = arith.constant 3.200000e+01 : f32
    %87 = vector.broadcast %cst_38 : f32 to vector<1x1x8xf32>
    %88 = arith.divf %86, %87 : vector<1x1x8xf32>
    %89 = vector.broadcast %88 : vector<1x1x8xf32> to vector<2x16x8xf32>
    %90 = arith.subf %80, %89 : vector<2x16x8xf32>
    %91 = arith.mulf %90, %90 : vector<2x16x8xf32>
    %cst_39 = arith.constant dense<0.000000e+00> : vector<16x8xf32>
    %92 = vector.multi_reduction <add>, %91, %cst_39 [0] : vector<2x16x8xf32> to vector<16x8xf32>
    %93 = vector.shape_cast %92 : vector<16x8xf32> to vector<1x16x8xf32>
    %cst_40 = arith.constant dense<0.000000e+00> : vector<1x8xf32>
    %94 = vector.multi_reduction <add>, %93, %cst_40 [1] : vector<1x16x8xf32> to vector<1x8xf32>
    %95 = vector.shape_cast %94 : vector<1x8xf32> to vector<1x1x8xf32>
    %cst_41 = arith.constant 3.200000e+01 : f32
    %96 = vector.broadcast %cst_41 : f32 to vector<1x1x8xf32>
    %97 = arith.divf %95, %96 : vector<1x1x8xf32>
    %98 = vector.broadcast %88 : vector<1x1x8xf32> to vector<2x16x8xf32>
    %99 = arith.subf %80, %98 : vector<2x16x8xf32>
    %cst_42 = arith.constant 9.99999974E-6 : f32
    %100 = vector.broadcast %cst_42 : f32 to vector<1x1x8xf32>
    %101 = arith.addf %97, %100 : vector<1x1x8xf32>
    %102 = math.rsqrt %101 : vector<1x1x8xf32>
    %103 = vector.broadcast %102 : vector<1x1x8xf32> to vector<2x16x8xf32>
    %104 = arith.mulf %99, %103 : vector<2x16x8xf32>
    %105 = vector.shape_cast %81 : vector<1x8xf32> to vector<1x1x8xf32>
    %106 = vector.broadcast %105 : vector<1x1x8xf32> to vector<2x16x8xf32>
    %107 = arith.mulf %104, %106 : vector<2x16x8xf32>
    %108 = vector.shape_cast %82 : vector<1x8xf32> to vector<1x1x8xf32>
    %109 = vector.broadcast %108 : vector<1x1x8xf32> to vector<2x16x8xf32>
    %110 = arith.addf %107, %109 : vector<2x16x8xf32>
    %cst_43 = arith.constant 0.000000e+00 : f32
    %111 = vector.broadcast %cst_43 : f32 to vector<2x16x8xf32>
    %112 = arith.maximumf %110, %111 : vector<2x16x8xf32>
    %113 = tpu.iota {dimensions = array<i32: 0>} : vector<8x16xi32>
    %114 = tpu.iota {dimensions = array<i32: 1>} : vector<8x16xi32>
    %c2_i32 = arith.constant 2 : i32
    %115 = vector.broadcast %c2_i32 : i32 to vector<8x16xi32>
    %116 = arith.muli %115, %113 : vector<8x16xi32>
    %117 = arith.cmpi eq, %114, %116 : vector<8x16xi32>
    %cst_44 = arith.constant 1.000000e+00 : f32
    %cst_45 = arith.constant 0.000000e+00 : f32
    %118 = vector.broadcast %cst_44 : f32 to vector<8x16xf32>
    %119 = vector.broadcast %cst_45 : f32 to vector<8x16xf32>
    %120 = arith.select %117, %118, %119 : vector<8x16xi1>, vector<8x16xf32>
    %121 = tpu.iota {dimensions = array<i32: 0>} : vector<8x16xi32>
    %122 = tpu.iota {dimensions = array<i32: 1>} : vector<8x16xi32>
    %c2_i32_46 = arith.constant 2 : i32
    %123 = vector.broadcast %c2_i32_46 : i32 to vector<8x16xi32>
    %124 = arith.muli %123, %121 : vector<8x16xi32>
    %c1_i32 = arith.constant 1 : i32
    %125 = vector.broadcast %c1_i32 : i32 to vector<8x16xi32>
    %126 = arith.addi %124, %125 : vector<8x16xi32>
    %127 = arith.cmpi eq, %122, %126 : vector<8x16xi32>
    %cst_47 = arith.constant 1.000000e+00 : f32
    %cst_48 = arith.constant 0.000000e+00 : f32
    %128 = vector.broadcast %cst_47 : f32 to vector<8x16xf32>
    %129 = vector.broadcast %cst_48 : f32 to vector<8x16xf32>
    %130 = arith.select %127, %128, %129 : vector<8x16xi1>, vector<8x16xf32>
    %131 = vector.shape_cast %120 : vector<8x16xf32> to vector<1x8x16xf32>
    %132 = vector.shape_cast %131 : vector<1x8x16xf32> to vector<1x8x16xf32>
    %133 = vector.broadcast %132 : vector<1x8x16xf32> to vector<2x8x16xf32>
    "tpu.trace_start"() <{level = 10 : i32, message = "nst,ntc->nsc"}> : () -> ()
    %cst_49 = arith.constant dense<0.000000e+00> : vector<2x8x8xf32>
    %134 = tpu.matmul %133, %112, %cst_49 {dimension_numbers = #tpu.dot_dimension_numbers<[2], [1], [1], [2], [0, 0, 0, 1, 1, 2], [0], [0]>} : vector<2x8x16xf32>, vector<2x16x8xf32>, vector<2x8x8xf32> -> vector<2x8x8xf32>
    "tpu.trace_stop"() : () -> ()
    %135 = vector.shape_cast %130 : vector<8x16xf32> to vector<1x8x16xf32>
    %136 = vector.shape_cast %135 : vector<1x8x16xf32> to vector<1x8x16xf32>
    %137 = vector.broadcast %136 : vector<1x8x16xf32> to vector<2x8x16xf32>
    "tpu.trace_start"() <{level = 10 : i32, message = "nst,ntc->nsc"}> : () -> ()
    %cst_50 = arith.constant dense<0.000000e+00> : vector<2x8x8xf32>
    %138 = tpu.matmul %137, %112, %cst_50 {dimension_numbers = #tpu.dot_dimension_numbers<[2], [1], [1], [2], [0, 0, 0, 1, 1, 2], [0], [0]>} : vector<2x8x16xf32>, vector<2x16x8xf32>, vector<2x8x8xf32> -> vector<2x8x8xf32>
    "tpu.trace_stop"() : () -> ()
    %139 = arith.maximumf %134, %138 : vector<2x8x8xf32>
    %140 = tpu.iota {dimensions = array<i32: 0>} : vector<8x16xi32>
    %141 = tpu.iota {dimensions = array<i32: 1>} : vector<8x16xi32>
    %c2_i32_51 = arith.constant 2 : i32
    %142 = vector.broadcast %c2_i32_51 : i32 to vector<8x16xi32>
    %143 = arith.muli %142, %140 : vector<8x16xi32>
    %144 = arith.cmpi eq, %141, %143 : vector<8x16xi32>
    %cst_52 = arith.constant 1.000000e+00 : f32
    %cst_53 = arith.constant 0.000000e+00 : f32
    %145 = vector.broadcast %cst_52 : f32 to vector<8x16xf32>
    %146 = vector.broadcast %cst_53 : f32 to vector<8x16xf32>
    %147 = arith.select %144, %145, %146 : vector<8x16xi1>, vector<8x16xf32>
    %148 = tpu.iota {dimensions = array<i32: 0>} : vector<8x16xi32>
    %149 = tpu.iota {dimensions = array<i32: 1>} : vector<8x16xi32>
    %c2_i32_54 = arith.constant 2 : i32
    %150 = vector.broadcast %c2_i32_54 : i32 to vector<8x16xi32>
    %151 = arith.muli %150, %148 : vector<8x16xi32>
    %c1_i32_55 = arith.constant 1 : i32
    %152 = vector.broadcast %c1_i32_55 : i32 to vector<8x16xi32>
    %153 = arith.addi %151, %152 : vector<8x16xi32>
    %154 = arith.cmpi eq, %149, %153 : vector<8x16xi32>
    %cst_56 = arith.constant 1.000000e+00 : f32
    %cst_57 = arith.constant 0.000000e+00 : f32
    %155 = vector.broadcast %cst_56 : f32 to vector<8x16xf32>
    %156 = vector.broadcast %cst_57 : f32 to vector<8x16xf32>
    %157 = arith.select %154, %155, %156 : vector<8x16xi1>, vector<8x16xf32>
    %158 = vector.shape_cast %147 : vector<8x16xf32> to vector<1x8x16xf32>
    %159 = vector.shape_cast %158 : vector<1x8x16xf32> to vector<1x8x16xf32>
    %160 = vector.broadcast %159 : vector<1x8x16xf32> to vector<2x8x16xf32>
    "tpu.trace_start"() <{level = 10 : i32, message = "nst,ntc->nsc"}> : () -> ()
    %cst_58 = arith.constant dense<0.000000e+00> : vector<2x8x4xf32>
    %161 = tpu.matmul %160, %3, %cst_58 {dimension_numbers = #tpu.dot_dimension_numbers<[2], [1], [1], [2], [0, 0, 0, 1, 1, 2], [0], [0]>} : vector<2x8x16xf32>, vector<2x16x4xf32>, vector<2x8x4xf32> -> vector<2x8x4xf32>
    "tpu.trace_stop"() : () -> ()
    %162 = vector.shape_cast %157 : vector<8x16xf32> to vector<1x8x16xf32>
    %163 = vector.shape_cast %162 : vector<1x8x16xf32> to vector<1x8x16xf32>
    %164 = vector.broadcast %163 : vector<1x8x16xf32> to vector<2x8x16xf32>
    "tpu.trace_start"() <{level = 10 : i32, message = "nst,ntc->nsc"}> : () -> ()
    %cst_59 = arith.constant dense<0.000000e+00> : vector<2x8x4xf32>
    %165 = tpu.matmul %164, %3, %cst_59 {dimension_numbers = #tpu.dot_dimension_numbers<[2], [1], [1], [2], [0, 0, 0, 1, 1, 2], [0], [0]>} : vector<2x8x16xf32>, vector<2x16x4xf32>, vector<2x8x4xf32> -> vector<2x8x4xf32>
    "tpu.trace_stop"() : () -> ()
    %166 = arith.maximumf %161, %165 : vector<2x8x4xf32>
    %167 = tpu.iota {dimensions = array<i32: 0>} : vector<15x8xi32>
    %168 = tpu.iota {dimensions = array<i32: 1>} : vector<15x8xi32>
    %c3_i32_60 = arith.constant 3 : i32
    %169 = vector.broadcast %c3_i32_60 : i32 to vector<15x8xi32>
    %170 = arith.addi %168, %169 : vector<15x8xi32>
    %171 = arith.cmpi eq, %167, %170 : vector<15x8xi32>
    %cst_61 = arith.constant 1.000000e+00 : f32
    %cst_62 = arith.constant 0.000000e+00 : f32
    %172 = vector.broadcast %cst_61 : f32 to vector<15x8xf32>
    %173 = vector.broadcast %cst_62 : f32 to vector<15x8xf32>
    %174 = arith.select %171, %172, %173 : vector<15x8xi1>, vector<15x8xf32>
    %175 = vector.shape_cast %174 : vector<15x8xf32> to vector<1x15x8xf32>
    %176 = vector.shape_cast %175 : vector<1x15x8xf32> to vector<1x15x8xf32>
    %177 = vector.broadcast %176 : vector<1x15x8xf32> to vector<2x15x8xf32>
    "tpu.trace_start"() <{level = 10 : i32, message = "nst,ntc->nsc"}> : () -> ()
    %cst_63 = arith.constant dense<0.000000e+00> : vector<2x15x8xf32>
    %178 = tpu.matmul %177, %139, %cst_63 {dimension_numbers = #tpu.dot_dimension_numbers<[2], [1], [1], [2], [0, 0, 0, 1, 1, 2], [0], [0]>} : vector<2x15x8xf32>, vector<2x8x8xf32>, vector<2x15x8xf32> -> vector<2x15x8xf32>
    %cst_64 = arith.constant 0.000000e+00 : f32
    "tpu.trace_stop"() : () -> ()
    %179 = vector.broadcast %cst_64 : f32 to vector<2x8x8xf32>
    %180 = vector.extract_strided_slice %178 {offsets = [0, 0, 0], sizes = [2, 8, 8], strides = [1, 1, 1]} : vector<2x15x8xf32> to vector<2x8x8xf32>
    %c0_65 = arith.constant 0 : index
    %c0_66 = arith.constant 0 : index
    %c0_67 = arith.constant 0 : index
    %181 = vector.load %arg2[%c0_65, %c0_66, %c0_67] : memref<8x8x8xf32, #tpu.memory_space<vmem>>, vector<1x8x8xf32>
    %182 = vector.shape_cast %181 : vector<1x8x8xf32> to vector<8x8xf32>
    %183 = vector.shape_cast %182 : vector<8x8xf32> to vector<1x8x8xf32>
    %184 = vector.shape_cast %183 : vector<1x8x8xf32> to vector<1x8x8xf32>
    %185 = vector.broadcast %184 : vector<1x8x8xf32> to vector<2x8x8xf32>
    "tpu.trace_start"() <{level = 10 : i32, message = "ntc,ncf->ntf"}> : () -> ()
    %cst_68 = arith.constant dense<0.000000e+00> : vector<2x8x8xf32>
    %186 = tpu.matmul %180, %185, %cst_68 {dimension_numbers = #tpu.dot_dimension_numbers<[2], [1], [1], [2], [0, 0, 0, 1, 1, 2], [0], [0]>} : vector<2x8x8xf32>, vector<2x8x8xf32>, vector<2x8x8xf32> -> vector<2x8x8xf32>
    "tpu.trace_stop"() : () -> ()
    %187 = arith.addf %179, %186 : vector<2x8x8xf32>
    %188 = vector.extract_strided_slice %178 {offsets = [0, 1, 0], sizes = [2, 8, 8], strides = [1, 1, 1]} : vector<2x15x8xf32> to vector<2x8x8xf32>
    %c1_69 = arith.constant 1 : index
    %c0_70 = arith.constant 0 : index
    %c0_71 = arith.constant 0 : index
    %189 = vector.load %arg2[%c1_69, %c0_70, %c0_71] : memref<8x8x8xf32, #tpu.memory_space<vmem>>, vector<1x8x8xf32>
    %190 = vector.shape_cast %189 : vector<1x8x8xf32> to vector<8x8xf32>
    %191 = vector.shape_cast %190 : vector<8x8xf32> to vector<1x8x8xf32>
    %192 = vector.shape_cast %191 : vector<1x8x8xf32> to vector<1x8x8xf32>
    %193 = vector.broadcast %192 : vector<1x8x8xf32> to vector<2x8x8xf32>
    "tpu.trace_start"() <{level = 10 : i32, message = "ntc,ncf->ntf"}> : () -> ()
    %cst_72 = arith.constant dense<0.000000e+00> : vector<2x8x8xf32>
    %194 = tpu.matmul %188, %193, %cst_72 {dimension_numbers = #tpu.dot_dimension_numbers<[2], [1], [1], [2], [0, 0, 0, 1, 1, 2], [0], [0]>} : vector<2x8x8xf32>, vector<2x8x8xf32>, vector<2x8x8xf32> -> vector<2x8x8xf32>
    "tpu.trace_stop"() : () -> ()
    %195 = arith.addf %187, %194 : vector<2x8x8xf32>
    %196 = vector.extract_strided_slice %178 {offsets = [0, 2, 0], sizes = [2, 8, 8], strides = [1, 1, 1]} : vector<2x15x8xf32> to vector<2x8x8xf32>
    %c2_73 = arith.constant 2 : index
    %c0_74 = arith.constant 0 : index
    %c0_75 = arith.constant 0 : index
    %197 = vector.load %arg2[%c2_73, %c0_74, %c0_75] : memref<8x8x8xf32, #tpu.memory_space<vmem>>, vector<1x8x8xf32>
    %198 = vector.shape_cast %197 : vector<1x8x8xf32> to vector<8x8xf32>
    %199 = vector.shape_cast %198 : vector<8x8xf32> to vector<1x8x8xf32>
    %200 = vector.shape_cast %199 : vector<1x8x8xf32> to vector<1x8x8xf32>
    %201 = vector.broadcast %200 : vector<1x8x8xf32> to vector<2x8x8xf32>
    "tpu.trace_start"() <{level = 10 : i32, message = "ntc,ncf->ntf"}> : () -> ()
    %cst_76 = arith.constant dense<0.000000e+00> : vector<2x8x8xf32>
    %202 = tpu.matmul %196, %201, %cst_76 {dimension_numbers = #tpu.dot_dimension_numbers<[2], [1], [1], [2], [0, 0, 0, 1, 1, 2], [0], [0]>} : vector<2x8x8xf32>, vector<2x8x8xf32>, vector<2x8x8xf32> -> vector<2x8x8xf32>
    "tpu.trace_stop"() : () -> ()
    %203 = arith.addf %195, %202 : vector<2x8x8xf32>
    %204 = vector.extract_strided_slice %178 {offsets = [0, 3, 0], sizes = [2, 8, 8], strides = [1, 1, 1]} : vector<2x15x8xf32> to vector<2x8x8xf32>
    %c3_77 = arith.constant 3 : index
    %c0_78 = arith.constant 0 : index
    %c0_79 = arith.constant 0 : index
    %205 = vector.load %arg2[%c3_77, %c0_78, %c0_79] : memref<8x8x8xf32, #tpu.memory_space<vmem>>, vector<1x8x8xf32>
    %206 = vector.shape_cast %205 : vector<1x8x8xf32> to vector<8x8xf32>
    %207 = vector.shape_cast %206 : vector<8x8xf32> to vector<1x8x8xf32>
    %208 = vector.shape_cast %207 : vector<1x8x8xf32> to vector<1x8x8xf32>
    %209 = vector.broadcast %208 : vector<1x8x8xf32> to vector<2x8x8xf32>
    "tpu.trace_start"() <{level = 10 : i32, message = "ntc,ncf->ntf"}> : () -> ()
    %cst_80 = arith.constant dense<0.000000e+00> : vector<2x8x8xf32>
    %210 = tpu.matmul %204, %209, %cst_80 {dimension_numbers = #tpu.dot_dimension_numbers<[2], [1], [1], [2], [0, 0, 0, 1, 1, 2], [0], [0]>} : vector<2x8x8xf32>, vector<2x8x8xf32>, vector<2x8x8xf32> -> vector<2x8x8xf32>
    "tpu.trace_stop"() : () -> ()
    %211 = arith.addf %203, %210 : vector<2x8x8xf32>
    %212 = vector.extract_strided_slice %178 {offsets = [0, 4, 0], sizes = [2, 8, 8], strides = [1, 1, 1]} : vector<2x15x8xf32> to vector<2x8x8xf32>
    %c4_81 = arith.constant 4 : index
    %c0_82 = arith.constant 0 : index
    %c0_83 = arith.constant 0 : index
    %213 = vector.load %arg2[%c4_81, %c0_82, %c0_83] : memref<8x8x8xf32, #tpu.memory_space<vmem>>, vector<1x8x8xf32>
    %214 = vector.shape_cast %213 : vector<1x8x8xf32> to vector<8x8xf32>
    %215 = vector.shape_cast %214 : vector<8x8xf32> to vector<1x8x8xf32>
    %216 = vector.shape_cast %215 : vector<1x8x8xf32> to vector<1x8x8xf32>
    %217 = vector.broadcast %216 : vector<1x8x8xf32> to vector<2x8x8xf32>
    "tpu.trace_start"() <{level = 10 : i32, message = "ntc,ncf->ntf"}> : () -> ()
    %cst_84 = arith.constant dense<0.000000e+00> : vector<2x8x8xf32>
    %218 = tpu.matmul %212, %217, %cst_84 {dimension_numbers = #tpu.dot_dimension_numbers<[2], [1], [1], [2], [0, 0, 0, 1, 1, 2], [0], [0]>} : vector<2x8x8xf32>, vector<2x8x8xf32>, vector<2x8x8xf32> -> vector<2x8x8xf32>
    "tpu.trace_stop"() : () -> ()
    %219 = arith.addf %211, %218 : vector<2x8x8xf32>
    %220 = vector.extract_strided_slice %178 {offsets = [0, 5, 0], sizes = [2, 8, 8], strides = [1, 1, 1]} : vector<2x15x8xf32> to vector<2x8x8xf32>
    %c5_85 = arith.constant 5 : index
    %c0_86 = arith.constant 0 : index
    %c0_87 = arith.constant 0 : index
    %221 = vector.load %arg2[%c5_85, %c0_86, %c0_87] : memref<8x8x8xf32, #tpu.memory_space<vmem>>, vector<1x8x8xf32>
    %222 = vector.shape_cast %221 : vector<1x8x8xf32> to vector<8x8xf32>
    %223 = vector.shape_cast %222 : vector<8x8xf32> to vector<1x8x8xf32>
    %224 = vector.shape_cast %223 : vector<1x8x8xf32> to vector<1x8x8xf32>
    %225 = vector.broadcast %224 : vector<1x8x8xf32> to vector<2x8x8xf32>
    "tpu.trace_start"() <{level = 10 : i32, message = "ntc,ncf->ntf"}> : () -> ()
    %cst_88 = arith.constant dense<0.000000e+00> : vector<2x8x8xf32>
    %226 = tpu.matmul %220, %225, %cst_88 {dimension_numbers = #tpu.dot_dimension_numbers<[2], [1], [1], [2], [0, 0, 0, 1, 1, 2], [0], [0]>} : vector<2x8x8xf32>, vector<2x8x8xf32>, vector<2x8x8xf32> -> vector<2x8x8xf32>
    "tpu.trace_stop"() : () -> ()
    %227 = arith.addf %219, %226 : vector<2x8x8xf32>
    %228 = vector.extract_strided_slice %178 {offsets = [0, 6, 0], sizes = [2, 8, 8], strides = [1, 1, 1]} : vector<2x15x8xf32> to vector<2x8x8xf32>
    %c6_89 = arith.constant 6 : index
    %c0_90 = arith.constant 0 : index
    %c0_91 = arith.constant 0 : index
    %229 = vector.load %arg2[%c6_89, %c0_90, %c0_91] : memref<8x8x8xf32, #tpu.memory_space<vmem>>, vector<1x8x8xf32>
    %230 = vector.shape_cast %229 : vector<1x8x8xf32> to vector<8x8xf32>
    %231 = vector.shape_cast %230 : vector<8x8xf32> to vector<1x8x8xf32>
    %232 = vector.shape_cast %231 : vector<1x8x8xf32> to vector<1x8x8xf32>
    %233 = vector.broadcast %232 : vector<1x8x8xf32> to vector<2x8x8xf32>
    "tpu.trace_start"() <{level = 10 : i32, message = "ntc,ncf->ntf"}> : () -> ()
    %cst_92 = arith.constant dense<0.000000e+00> : vector<2x8x8xf32>
    %234 = tpu.matmul %228, %233, %cst_92 {dimension_numbers = #tpu.dot_dimension_numbers<[2], [1], [1], [2], [0, 0, 0, 1, 1, 2], [0], [0]>} : vector<2x8x8xf32>, vector<2x8x8xf32>, vector<2x8x8xf32> -> vector<2x8x8xf32>
    "tpu.trace_stop"() : () -> ()
    %235 = arith.addf %227, %234 : vector<2x8x8xf32>
    %236 = vector.extract_strided_slice %178 {offsets = [0, 7, 0], sizes = [2, 8, 8], strides = [1, 1, 1]} : vector<2x15x8xf32> to vector<2x8x8xf32>
    %c7_93 = arith.constant 7 : index
    %c0_94 = arith.constant 0 : index
    %c0_95 = arith.constant 0 : index
    %237 = vector.load %arg2[%c7_93, %c0_94, %c0_95] : memref<8x8x8xf32, #tpu.memory_space<vmem>>, vector<1x8x8xf32>
    %238 = vector.shape_cast %237 : vector<1x8x8xf32> to vector<8x8xf32>
    %239 = vector.shape_cast %238 : vector<8x8xf32> to vector<1x8x8xf32>
    %240 = vector.shape_cast %239 : vector<1x8x8xf32> to vector<1x8x8xf32>
    %241 = vector.broadcast %240 : vector<1x8x8xf32> to vector<2x8x8xf32>
    "tpu.trace_start"() <{level = 10 : i32, message = "ntc,ncf->ntf"}> : () -> ()
    %cst_96 = arith.constant dense<0.000000e+00> : vector<2x8x8xf32>
    %242 = tpu.matmul %236, %241, %cst_96 {dimension_numbers = #tpu.dot_dimension_numbers<[2], [1], [1], [2], [0, 0, 0, 1, 1, 2], [0], [0]>} : vector<2x8x8xf32>, vector<2x8x8xf32>, vector<2x8x8xf32> -> vector<2x8x8xf32>
    "tpu.trace_stop"() : () -> ()
    %243 = arith.addf %235, %242 : vector<2x8x8xf32>
    %244 = vector.extract_strided_slice %1 {offsets = [1, 0], sizes = [1, 8], strides = [1, 1]} : vector<5x8xf32> to vector<1x8xf32>
    %245 = vector.extract_strided_slice %2 {offsets = [1, 0], sizes = [1, 8], strides = [1, 1]} : vector<5x8xf32> to vector<1x8xf32>
    %cst_97 = arith.constant dense<0.000000e+00> : vector<8x8xf32>
    %246 = vector.multi_reduction <add>, %243, %cst_97 [0] : vector<2x8x8xf32> to vector<8x8xf32>
    %247 = vector.shape_cast %246 : vector<8x8xf32> to vector<1x8x8xf32>
    %cst_98 = arith.constant dense<0.000000e+00> : vector<1x8xf32>
    %248 = vector.multi_reduction <add>, %247, %cst_98 [1] : vector<1x8x8xf32> to vector<1x8xf32>
    %249 = vector.shape_cast %248 : vector<1x8xf32> to vector<1x1x8xf32>
    %cst_99 = arith.constant 1.600000e+01 : f32
    %250 = vector.broadcast %cst_99 : f32 to vector<1x1x8xf32>
    %251 = arith.divf %249, %250 : vector<1x1x8xf32>
    %252 = vector.broadcast %251 : vector<1x1x8xf32> to vector<2x8x8xf32>
    %253 = arith.subf %243, %252 : vector<2x8x8xf32>
    %254 = arith.mulf %253, %253 : vector<2x8x8xf32>
    %cst_100 = arith.constant dense<0.000000e+00> : vector<8x8xf32>
    %255 = vector.multi_reduction <add>, %254, %cst_100 [0] : vector<2x8x8xf32> to vector<8x8xf32>
    %256 = vector.shape_cast %255 : vector<8x8xf32> to vector<1x8x8xf32>
    %cst_101 = arith.constant dense<0.000000e+00> : vector<1x8xf32>
    %257 = vector.multi_reduction <add>, %256, %cst_101 [1] : vector<1x8x8xf32> to vector<1x8xf32>
    %258 = vector.shape_cast %257 : vector<1x8xf32> to vector<1x1x8xf32>
    %cst_102 = arith.constant 1.600000e+01 : f32
    %259 = vector.broadcast %cst_102 : f32 to vector<1x1x8xf32>
    %260 = arith.divf %258, %259 : vector<1x1x8xf32>
    %261 = vector.broadcast %251 : vector<1x1x8xf32> to vector<2x8x8xf32>
    %262 = arith.subf %243, %261 : vector<2x8x8xf32>
    %cst_103 = arith.constant 9.99999974E-6 : f32
    %263 = vector.broadcast %cst_103 : f32 to vector<1x1x8xf32>
    %264 = arith.addf %260, %263 : vector<1x1x8xf32>
    %265 = math.rsqrt %264 : vector<1x1x8xf32>
    %266 = vector.broadcast %265 : vector<1x1x8xf32> to vector<2x8x8xf32>
    %267 = arith.mulf %262, %266 : vector<2x8x8xf32>
    %268 = vector.shape_cast %244 : vector<1x8xf32> to vector<1x1x8xf32>
    %269 = vector.broadcast %268 : vector<1x1x8xf32> to vector<2x8x8xf32>
    %270 = arith.mulf %267, %269 : vector<2x8x8xf32>
    %271 = vector.shape_cast %245 : vector<1x8xf32> to vector<1x1x8xf32>
    %272 = vector.broadcast %271 : vector<1x1x8xf32> to vector<2x8x8xf32>
    %273 = arith.addf %270, %272 : vector<2x8x8xf32>
    %cst_104 = arith.constant 0.000000e+00 : f32
    %274 = vector.broadcast %cst_104 : f32 to vector<2x8x8xf32>
    %275 = arith.maximumf %273, %274 : vector<2x8x8xf32>
    %276 = tpu.iota {dimensions = array<i32: 0>} : vector<4x8xi32>
    %277 = tpu.iota {dimensions = array<i32: 1>} : vector<4x8xi32>
    %c2_i32_105 = arith.constant 2 : i32
    %278 = vector.broadcast %c2_i32_105 : i32 to vector<4x8xi32>
    %279 = arith.muli %278, %276 : vector<4x8xi32>
    %280 = arith.cmpi eq, %277, %279 : vector<4x8xi32>
    %cst_106 = arith.constant 1.000000e+00 : f32
    %cst_107 = arith.constant 0.000000e+00 : f32
    %281 = vector.broadcast %cst_106 : f32 to vector<4x8xf32>
    %282 = vector.broadcast %cst_107 : f32 to vector<4x8xf32>
    %283 = arith.select %280, %281, %282 : vector<4x8xi1>, vector<4x8xf32>
    %284 = tpu.iota {dimensions = array<i32: 0>} : vector<4x8xi32>
    %285 = tpu.iota {dimensions = array<i32: 1>} : vector<4x8xi32>
    %c2_i32_108 = arith.constant 2 : i32
    %286 = vector.broadcast %c2_i32_108 : i32 to vector<4x8xi32>
    %287 = arith.muli %286, %284 : vector<4x8xi32>
    %c1_i32_109 = arith.constant 1 : i32
    %288 = vector.broadcast %c1_i32_109 : i32 to vector<4x8xi32>
    %289 = arith.addi %287, %288 : vector<4x8xi32>
    %290 = arith.cmpi eq, %285, %289 : vector<4x8xi32>
    %cst_110 = arith.constant 1.000000e+00 : f32
    %cst_111 = arith.constant 0.000000e+00 : f32
    %291 = vector.broadcast %cst_110 : f32 to vector<4x8xf32>
    %292 = vector.broadcast %cst_111 : f32 to vector<4x8xf32>
    %293 = arith.select %290, %291, %292 : vector<4x8xi1>, vector<4x8xf32>
    %294 = vector.shape_cast %283 : vector<4x8xf32> to vector<1x4x8xf32>
    %295 = vector.shape_cast %294 : vector<1x4x8xf32> to vector<1x4x8xf32>
    %296 = vector.broadcast %295 : vector<1x4x8xf32> to vector<2x4x8xf32>
    "tpu.trace_start"() <{level = 10 : i32, message = "nst,ntc->nsc"}> : () -> ()
    %cst_112 = arith.constant dense<0.000000e+00> : vector<2x4x8xf32>
    %297 = tpu.matmul %296, %275, %cst_112 {dimension_numbers = #tpu.dot_dimension_numbers<[2], [1], [1], [2], [0, 0, 0, 1, 1, 2], [0], [0]>} : vector<2x4x8xf32>, vector<2x8x8xf32>, vector<2x4x8xf32> -> vector<2x4x8xf32>
    "tpu.trace_stop"() : () -> ()
    %298 = vector.shape_cast %293 : vector<4x8xf32> to vector<1x4x8xf32>
    %299 = vector.shape_cast %298 : vector<1x4x8xf32> to vector<1x4x8xf32>
    %300 = vector.broadcast %299 : vector<1x4x8xf32> to vector<2x4x8xf32>
    "tpu.trace_start"() <{level = 10 : i32, message = "nst,ntc->nsc"}> : () -> ()
    %cst_113 = arith.constant dense<0.000000e+00> : vector<2x4x8xf32>
    %301 = tpu.matmul %300, %275, %cst_113 {dimension_numbers = #tpu.dot_dimension_numbers<[2], [1], [1], [2], [0, 0, 0, 1, 1, 2], [0], [0]>} : vector<2x4x8xf32>, vector<2x8x8xf32>, vector<2x4x8xf32> -> vector<2x4x8xf32>
    "tpu.trace_stop"() : () -> ()
    %302 = arith.maximumf %297, %301 : vector<2x4x8xf32>
    %303 = tpu.iota {dimensions = array<i32: 0>} : vector<4x8xi32>
    %304 = tpu.iota {dimensions = array<i32: 1>} : vector<4x8xi32>
    %c2_i32_114 = arith.constant 2 : i32
    %305 = vector.broadcast %c2_i32_114 : i32 to vector<4x8xi32>
    %306 = arith.muli %305, %303 : vector<4x8xi32>
    %307 = arith.cmpi eq, %304, %306 : vector<4x8xi32>
    %cst_115 = arith.constant 1.000000e+00 : f32
    %cst_116 = arith.constant 0.000000e+00 : f32
    %308 = vector.broadcast %cst_115 : f32 to vector<4x8xf32>
    %309 = vector.broadcast %cst_116 : f32 to vector<4x8xf32>
    %310 = arith.select %307, %308, %309 : vector<4x8xi1>, vector<4x8xf32>
    %311 = tpu.iota {dimensions = array<i32: 0>} : vector<4x8xi32>
    %312 = tpu.iota {dimensions = array<i32: 1>} : vector<4x8xi32>
    %c2_i32_117 = arith.constant 2 : i32
    %313 = vector.broadcast %c2_i32_117 : i32 to vector<4x8xi32>
    %314 = arith.muli %313, %311 : vector<4x8xi32>
    %c1_i32_118 = arith.constant 1 : i32
    %315 = vector.broadcast %c1_i32_118 : i32 to vector<4x8xi32>
    %316 = arith.addi %314, %315 : vector<4x8xi32>
    %317 = arith.cmpi eq, %312, %316 : vector<4x8xi32>
    %cst_119 = arith.constant 1.000000e+00 : f32
    %cst_120 = arith.constant 0.000000e+00 : f32
    %318 = vector.broadcast %cst_119 : f32 to vector<4x8xf32>
    %319 = vector.broadcast %cst_120 : f32 to vector<4x8xf32>
    %320 = arith.select %317, %318, %319 : vector<4x8xi1>, vector<4x8xf32>
    %321 = vector.shape_cast %310 : vector<4x8xf32> to vector<1x4x8xf32>
    %322 = vector.shape_cast %321 : vector<1x4x8xf32> to vector<1x4x8xf32>
    %323 = vector.broadcast %322 : vector<1x4x8xf32> to vector<2x4x8xf32>
    "tpu.trace_start"() <{level = 10 : i32, message = "nst,ntc->nsc"}> : () -> ()
    %cst_121 = arith.constant dense<0.000000e+00> : vector<2x4x4xf32>
    %324 = tpu.matmul %323, %166, %cst_121 {dimension_numbers = #tpu.dot_dimension_numbers<[2], [1], [1], [2], [0, 0, 0, 1, 1, 2], [0], [0]>} : vector<2x4x8xf32>, vector<2x8x4xf32>, vector<2x4x4xf32> -> vector<2x4x4xf32>
    "tpu.trace_stop"() : () -> ()
    %325 = vector.shape_cast %320 : vector<4x8xf32> to vector<1x4x8xf32>
    %326 = vector.shape_cast %325 : vector<1x4x8xf32> to vector<1x4x8xf32>
    %327 = vector.broadcast %326 : vector<1x4x8xf32> to vector<2x4x8xf32>
    "tpu.trace_start"() <{level = 10 : i32, message = "nst,ntc->nsc"}> : () -> ()
    %cst_122 = arith.constant dense<0.000000e+00> : vector<2x4x4xf32>
    %328 = tpu.matmul %327, %166, %cst_122 {dimension_numbers = #tpu.dot_dimension_numbers<[2], [1], [1], [2], [0, 0, 0, 1, 1, 2], [0], [0]>} : vector<2x4x8xf32>, vector<2x8x4xf32>, vector<2x4x4xf32> -> vector<2x4x4xf32>
    "tpu.trace_stop"() : () -> ()
    %329 = arith.maximumf %324, %328 : vector<2x4x4xf32>
    %330 = tpu.iota {dimensions = array<i32: 0>} : vector<11x4xi32>
    %331 = tpu.iota {dimensions = array<i32: 1>} : vector<11x4xi32>
    %c3_i32_123 = arith.constant 3 : i32
    %332 = vector.broadcast %c3_i32_123 : i32 to vector<11x4xi32>
    %333 = arith.addi %331, %332 : vector<11x4xi32>
    %334 = arith.cmpi eq, %330, %333 : vector<11x4xi32>
    %cst_124 = arith.constant 1.000000e+00 : f32
    %cst_125 = arith.constant 0.000000e+00 : f32
    %335 = vector.broadcast %cst_124 : f32 to vector<11x4xf32>
    %336 = vector.broadcast %cst_125 : f32 to vector<11x4xf32>
    %337 = arith.select %334, %335, %336 : vector<11x4xi1>, vector<11x4xf32>
    %338 = vector.shape_cast %337 : vector<11x4xf32> to vector<1x11x4xf32>
    %339 = vector.shape_cast %338 : vector<1x11x4xf32> to vector<1x11x4xf32>
    %340 = vector.broadcast %339 : vector<1x11x4xf32> to vector<2x11x4xf32>
    "tpu.trace_start"() <{level = 10 : i32, message = "nst,ntc->nsc"}> : () -> ()
    %cst_126 = arith.constant dense<0.000000e+00> : vector<2x11x8xf32>
    %341 = tpu.matmul %340, %302, %cst_126 {dimension_numbers = #tpu.dot_dimension_numbers<[2], [1], [1], [2], [0, 0, 0, 1, 1, 2], [0], [0]>} : vector<2x11x4xf32>, vector<2x4x8xf32>, vector<2x11x8xf32> -> vector<2x11x8xf32>
    %cst_127 = arith.constant 0.000000e+00 : f32
    "tpu.trace_stop"() : () -> ()
    %342 = vector.broadcast %cst_127 : f32 to vector<2x4x8xf32>
    %343 = vector.extract_strided_slice %341 {offsets = [0, 0, 0], sizes = [2, 4, 8], strides = [1, 1, 1]} : vector<2x11x8xf32> to vector<2x4x8xf32>
    %c0_128 = arith.constant 0 : index
    %c0_129 = arith.constant 0 : index
    %c0_130 = arith.constant 0 : index
    %344 = vector.load %arg3[%c0_128, %c0_129, %c0_130] : memref<8x8x8xf32, #tpu.memory_space<vmem>>, vector<1x8x8xf32>
    %345 = vector.shape_cast %344 : vector<1x8x8xf32> to vector<8x8xf32>
    %346 = vector.shape_cast %345 : vector<8x8xf32> to vector<1x8x8xf32>
    %347 = vector.shape_cast %346 : vector<1x8x8xf32> to vector<1x8x8xf32>
    %348 = vector.broadcast %347 : vector<1x8x8xf32> to vector<2x8x8xf32>
    "tpu.trace_start"() <{level = 10 : i32, message = "ntc,ncf->ntf"}> : () -> ()
    %cst_131 = arith.constant dense<0.000000e+00> : vector<2x4x8xf32>
    %349 = tpu.matmul %343, %348, %cst_131 {dimension_numbers = #tpu.dot_dimension_numbers<[2], [1], [1], [2], [0, 0, 0, 1, 1, 2], [0], [0]>} : vector<2x4x8xf32>, vector<2x8x8xf32>, vector<2x4x8xf32> -> vector<2x4x8xf32>
    "tpu.trace_stop"() : () -> ()
    %350 = arith.addf %342, %349 : vector<2x4x8xf32>
    %351 = vector.extract_strided_slice %341 {offsets = [0, 1, 0], sizes = [2, 4, 8], strides = [1, 1, 1]} : vector<2x11x8xf32> to vector<2x4x8xf32>
    %c1_132 = arith.constant 1 : index
    %c0_133 = arith.constant 0 : index
    %c0_134 = arith.constant 0 : index
    %352 = vector.load %arg3[%c1_132, %c0_133, %c0_134] : memref<8x8x8xf32, #tpu.memory_space<vmem>>, vector<1x8x8xf32>
    %353 = vector.shape_cast %352 : vector<1x8x8xf32> to vector<8x8xf32>
    %354 = vector.shape_cast %353 : vector<8x8xf32> to vector<1x8x8xf32>
    %355 = vector.shape_cast %354 : vector<1x8x8xf32> to vector<1x8x8xf32>
    %356 = vector.broadcast %355 : vector<1x8x8xf32> to vector<2x8x8xf32>
    "tpu.trace_start"() <{level = 10 : i32, message = "ntc,ncf->ntf"}> : () -> ()
    %cst_135 = arith.constant dense<0.000000e+00> : vector<2x4x8xf32>
    %357 = tpu.matmul %351, %356, %cst_135 {dimension_numbers = #tpu.dot_dimension_numbers<[2], [1], [1], [2], [0, 0, 0, 1, 1, 2], [0], [0]>} : vector<2x4x8xf32>, vector<2x8x8xf32>, vector<2x4x8xf32> -> vector<2x4x8xf32>
    "tpu.trace_stop"() : () -> ()
    %358 = arith.addf %350, %357 : vector<2x4x8xf32>
    %359 = vector.extract_strided_slice %341 {offsets = [0, 2, 0], sizes = [2, 4, 8], strides = [1, 1, 1]} : vector<2x11x8xf32> to vector<2x4x8xf32>
    %c2_136 = arith.constant 2 : index
    %c0_137 = arith.constant 0 : index
    %c0_138 = arith.constant 0 : index
    %360 = vector.load %arg3[%c2_136, %c0_137, %c0_138] : memref<8x8x8xf32, #tpu.memory_space<vmem>>, vector<1x8x8xf32>
    %361 = vector.shape_cast %360 : vector<1x8x8xf32> to vector<8x8xf32>
    %362 = vector.shape_cast %361 : vector<8x8xf32> to vector<1x8x8xf32>
    %363 = vector.shape_cast %362 : vector<1x8x8xf32> to vector<1x8x8xf32>
    %364 = vector.broadcast %363 : vector<1x8x8xf32> to vector<2x8x8xf32>
    "tpu.trace_start"() <{level = 10 : i32, message = "ntc,ncf->ntf"}> : () -> ()
    %cst_139 = arith.constant dense<0.000000e+00> : vector<2x4x8xf32>
    %365 = tpu.matmul %359, %364, %cst_139 {dimension_numbers = #tpu.dot_dimension_numbers<[2], [1], [1], [2], [0, 0, 0, 1, 1, 2], [0], [0]>} : vector<2x4x8xf32>, vector<2x8x8xf32>, vector<2x4x8xf32> -> vector<2x4x8xf32>
    "tpu.trace_stop"() : () -> ()
    %366 = arith.addf %358, %365 : vector<2x4x8xf32>
    %367 = vector.extract_strided_slice %341 {offsets = [0, 3, 0], sizes = [2, 4, 8], strides = [1, 1, 1]} : vector<2x11x8xf32> to vector<2x4x8xf32>
    %c3_140 = arith.constant 3 : index
    %c0_141 = arith.constant 0 : index
    %c0_142 = arith.constant 0 : index
    %368 = vector.load %arg3[%c3_140, %c0_141, %c0_142] : memref<8x8x8xf32, #tpu.memory_space<vmem>>, vector<1x8x8xf32>
    %369 = vector.shape_cast %368 : vector<1x8x8xf32> to vector<8x8xf32>
    %370 = vector.shape_cast %369 : vector<8x8xf32> to vector<1x8x8xf32>
    %371 = vector.shape_cast %370 : vector<1x8x8xf32> to vector<1x8x8xf32>
    %372 = vector.broadcast %371 : vector<1x8x8xf32> to vector<2x8x8xf32>
    "tpu.trace_start"() <{level = 10 : i32, message = "ntc,ncf->ntf"}> : () -> ()
    %cst_143 = arith.constant dense<0.000000e+00> : vector<2x4x8xf32>
    %373 = tpu.matmul %367, %372, %cst_143 {dimension_numbers = #tpu.dot_dimension_numbers<[2], [1], [1], [2], [0, 0, 0, 1, 1, 2], [0], [0]>} : vector<2x4x8xf32>, vector<2x8x8xf32>, vector<2x4x8xf32> -> vector<2x4x8xf32>
    "tpu.trace_stop"() : () -> ()
    %374 = arith.addf %366, %373 : vector<2x4x8xf32>
    %375 = vector.extract_strided_slice %341 {offsets = [0, 4, 0], sizes = [2, 4, 8], strides = [1, 1, 1]} : vector<2x11x8xf32> to vector<2x4x8xf32>
    %c4_144 = arith.constant 4 : index
    %c0_145 = arith.constant 0 : index
    %c0_146 = arith.constant 0 : index
    %376 = vector.load %arg3[%c4_144, %c0_145, %c0_146] : memref<8x8x8xf32, #tpu.memory_space<vmem>>, vector<1x8x8xf32>
    %377 = vector.shape_cast %376 : vector<1x8x8xf32> to vector<8x8xf32>
    %378 = vector.shape_cast %377 : vector<8x8xf32> to vector<1x8x8xf32>
    %379 = vector.shape_cast %378 : vector<1x8x8xf32> to vector<1x8x8xf32>
    %380 = vector.broadcast %379 : vector<1x8x8xf32> to vector<2x8x8xf32>
    "tpu.trace_start"() <{level = 10 : i32, message = "ntc,ncf->ntf"}> : () -> ()
    %cst_147 = arith.constant dense<0.000000e+00> : vector<2x4x8xf32>
    %381 = tpu.matmul %375, %380, %cst_147 {dimension_numbers = #tpu.dot_dimension_numbers<[2], [1], [1], [2], [0, 0, 0, 1, 1, 2], [0], [0]>} : vector<2x4x8xf32>, vector<2x8x8xf32>, vector<2x4x8xf32> -> vector<2x4x8xf32>
    "tpu.trace_stop"() : () -> ()
    %382 = arith.addf %374, %381 : vector<2x4x8xf32>
    %383 = vector.extract_strided_slice %341 {offsets = [0, 5, 0], sizes = [2, 4, 8], strides = [1, 1, 1]} : vector<2x11x8xf32> to vector<2x4x8xf32>
    %c5_148 = arith.constant 5 : index
    %c0_149 = arith.constant 0 : index
    %c0_150 = arith.constant 0 : index
    %384 = vector.load %arg3[%c5_148, %c0_149, %c0_150] : memref<8x8x8xf32, #tpu.memory_space<vmem>>, vector<1x8x8xf32>
    %385 = vector.shape_cast %384 : vector<1x8x8xf32> to vector<8x8xf32>
    %386 = vector.shape_cast %385 : vector<8x8xf32> to vector<1x8x8xf32>
    %387 = vector.shape_cast %386 : vector<1x8x8xf32> to vector<1x8x8xf32>
    %388 = vector.broadcast %387 : vector<1x8x8xf32> to vector<2x8x8xf32>
    "tpu.trace_start"() <{level = 10 : i32, message = "ntc,ncf->ntf"}> : () -> ()
    %cst_151 = arith.constant dense<0.000000e+00> : vector<2x4x8xf32>
    %389 = tpu.matmul %383, %388, %cst_151 {dimension_numbers = #tpu.dot_dimension_numbers<[2], [1], [1], [2], [0, 0, 0, 1, 1, 2], [0], [0]>} : vector<2x4x8xf32>, vector<2x8x8xf32>, vector<2x4x8xf32> -> vector<2x4x8xf32>
    "tpu.trace_stop"() : () -> ()
    %390 = arith.addf %382, %389 : vector<2x4x8xf32>
    %391 = vector.extract_strided_slice %341 {offsets = [0, 6, 0], sizes = [2, 4, 8], strides = [1, 1, 1]} : vector<2x11x8xf32> to vector<2x4x8xf32>
    %c6_152 = arith.constant 6 : index
    %c0_153 = arith.constant 0 : index
    %c0_154 = arith.constant 0 : index
    %392 = vector.load %arg3[%c6_152, %c0_153, %c0_154] : memref<8x8x8xf32, #tpu.memory_space<vmem>>, vector<1x8x8xf32>
    %393 = vector.shape_cast %392 : vector<1x8x8xf32> to vector<8x8xf32>
    %394 = vector.shape_cast %393 : vector<8x8xf32> to vector<1x8x8xf32>
    %395 = vector.shape_cast %394 : vector<1x8x8xf32> to vector<1x8x8xf32>
    %396 = vector.broadcast %395 : vector<1x8x8xf32> to vector<2x8x8xf32>
    "tpu.trace_start"() <{level = 10 : i32, message = "ntc,ncf->ntf"}> : () -> ()
    %cst_155 = arith.constant dense<0.000000e+00> : vector<2x4x8xf32>
    %397 = tpu.matmul %391, %396, %cst_155 {dimension_numbers = #tpu.dot_dimension_numbers<[2], [1], [1], [2], [0, 0, 0, 1, 1, 2], [0], [0]>} : vector<2x4x8xf32>, vector<2x8x8xf32>, vector<2x4x8xf32> -> vector<2x4x8xf32>
    "tpu.trace_stop"() : () -> ()
    %398 = arith.addf %390, %397 : vector<2x4x8xf32>
    %399 = vector.extract_strided_slice %341 {offsets = [0, 7, 0], sizes = [2, 4, 8], strides = [1, 1, 1]} : vector<2x11x8xf32> to vector<2x4x8xf32>
    %c7_156 = arith.constant 7 : index
    %c0_157 = arith.constant 0 : index
    %c0_158 = arith.constant 0 : index
    %400 = vector.load %arg3[%c7_156, %c0_157, %c0_158] : memref<8x8x8xf32, #tpu.memory_space<vmem>>, vector<1x8x8xf32>
    %401 = vector.shape_cast %400 : vector<1x8x8xf32> to vector<8x8xf32>
    %402 = vector.shape_cast %401 : vector<8x8xf32> to vector<1x8x8xf32>
    %403 = vector.shape_cast %402 : vector<1x8x8xf32> to vector<1x8x8xf32>
    %404 = vector.broadcast %403 : vector<1x8x8xf32> to vector<2x8x8xf32>
    "tpu.trace_start"() <{level = 10 : i32, message = "ntc,ncf->ntf"}> : () -> ()
    %cst_159 = arith.constant dense<0.000000e+00> : vector<2x4x8xf32>
    %405 = tpu.matmul %399, %404, %cst_159 {dimension_numbers = #tpu.dot_dimension_numbers<[2], [1], [1], [2], [0, 0, 0, 1, 1, 2], [0], [0]>} : vector<2x4x8xf32>, vector<2x8x8xf32>, vector<2x4x8xf32> -> vector<2x4x8xf32>
    "tpu.trace_stop"() : () -> ()
    %406 = arith.addf %398, %405 : vector<2x4x8xf32>
    %407 = vector.extract_strided_slice %1 {offsets = [2, 0], sizes = [1, 8], strides = [1, 1]} : vector<5x8xf32> to vector<1x8xf32>
    %408 = vector.extract_strided_slice %2 {offsets = [2, 0], sizes = [1, 8], strides = [1, 1]} : vector<5x8xf32> to vector<1x8xf32>
    %cst_160 = arith.constant dense<0.000000e+00> : vector<4x8xf32>
    %409 = vector.multi_reduction <add>, %406, %cst_160 [0] : vector<2x4x8xf32> to vector<4x8xf32>
    %410 = vector.shape_cast %409 : vector<4x8xf32> to vector<1x4x8xf32>
    %cst_161 = arith.constant dense<0.000000e+00> : vector<1x8xf32>
    %411 = vector.multi_reduction <add>, %410, %cst_161 [1] : vector<1x4x8xf32> to vector<1x8xf32>
    %412 = vector.shape_cast %411 : vector<1x8xf32> to vector<1x1x8xf32>
    %cst_162 = arith.constant 8.000000e+00 : f32
    %413 = vector.broadcast %cst_162 : f32 to vector<1x1x8xf32>
    %414 = arith.divf %412, %413 : vector<1x1x8xf32>
    %415 = vector.broadcast %414 : vector<1x1x8xf32> to vector<2x4x8xf32>
    %416 = arith.subf %406, %415 : vector<2x4x8xf32>
    %417 = arith.mulf %416, %416 : vector<2x4x8xf32>
    %cst_163 = arith.constant dense<0.000000e+00> : vector<4x8xf32>
    %418 = vector.multi_reduction <add>, %417, %cst_163 [0] : vector<2x4x8xf32> to vector<4x8xf32>
    %419 = vector.shape_cast %418 : vector<4x8xf32> to vector<1x4x8xf32>
    %cst_164 = arith.constant dense<0.000000e+00> : vector<1x8xf32>
    %420 = vector.multi_reduction <add>, %419, %cst_164 [1] : vector<1x4x8xf32> to vector<1x8xf32>
    %421 = vector.shape_cast %420 : vector<1x8xf32> to vector<1x1x8xf32>
    %cst_165 = arith.constant 8.000000e+00 : f32
    %422 = vector.broadcast %cst_165 : f32 to vector<1x1x8xf32>
    %423 = arith.divf %421, %422 : vector<1x1x8xf32>
    %424 = vector.broadcast %414 : vector<1x1x8xf32> to vector<2x4x8xf32>
    %425 = arith.subf %406, %424 : vector<2x4x8xf32>
    %cst_166 = arith.constant 9.99999974E-6 : f32
    %426 = vector.broadcast %cst_166 : f32 to vector<1x1x8xf32>
    %427 = arith.addf %423, %426 : vector<1x1x8xf32>
    %428 = math.rsqrt %427 : vector<1x1x8xf32>
    %429 = vector.broadcast %428 : vector<1x1x8xf32> to vector<2x4x8xf32>
    %430 = arith.mulf %425, %429 : vector<2x4x8xf32>
    %431 = vector.shape_cast %407 : vector<1x8xf32> to vector<1x1x8xf32>
    %432 = vector.broadcast %431 : vector<1x1x8xf32> to vector<2x4x8xf32>
    %433 = arith.mulf %430, %432 : vector<2x4x8xf32>
    %434 = vector.shape_cast %408 : vector<1x8xf32> to vector<1x1x8xf32>
    %435 = vector.broadcast %434 : vector<1x1x8xf32> to vector<2x4x8xf32>
    %436 = arith.addf %433, %435 : vector<2x4x8xf32>
    %cst_167 = arith.constant 0.000000e+00 : f32
    %437 = vector.broadcast %cst_167 : f32 to vector<2x4x8xf32>
    %438 = arith.maximumf %436, %437 : vector<2x4x8xf32>
    %439 = tpu.iota {dimensions = array<i32: 0>} : vector<11x4xi32>
    %440 = tpu.iota {dimensions = array<i32: 1>} : vector<11x4xi32>
    %c3_i32_168 = arith.constant 3 : i32
    %441 = vector.broadcast %c3_i32_168 : i32 to vector<11x4xi32>
    %442 = arith.addi %440, %441 : vector<11x4xi32>
    %443 = arith.cmpi eq, %439, %442 : vector<11x4xi32>
    %cst_169 = arith.constant 1.000000e+00 : f32
    %cst_170 = arith.constant 0.000000e+00 : f32
    %444 = vector.broadcast %cst_169 : f32 to vector<11x4xf32>
    %445 = vector.broadcast %cst_170 : f32 to vector<11x4xf32>
    %446 = arith.select %443, %444, %445 : vector<11x4xi1>, vector<11x4xf32>
    %447 = vector.shape_cast %446 : vector<11x4xf32> to vector<1x11x4xf32>
    %448 = vector.shape_cast %447 : vector<1x11x4xf32> to vector<1x11x4xf32>
    %449 = vector.broadcast %448 : vector<1x11x4xf32> to vector<2x11x4xf32>
    "tpu.trace_start"() <{level = 10 : i32, message = "nst,ntc->nsc"}> : () -> ()
    %cst_171 = arith.constant dense<0.000000e+00> : vector<2x11x4xf32>
    %450 = tpu.matmul %449, %329, %cst_171 {dimension_numbers = #tpu.dot_dimension_numbers<[2], [1], [1], [2], [0, 0, 0, 1, 1, 2], [0], [0]>} : vector<2x11x4xf32>, vector<2x4x4xf32>, vector<2x11x4xf32> -> vector<2x11x4xf32>
    %cst_172 = arith.constant 0.000000e+00 : f32
    "tpu.trace_stop"() : () -> ()
    %451 = vector.broadcast %cst_172 : f32 to vector<2x4x8xf32>
    %452 = vector.extract_strided_slice %450 {offsets = [0, 0, 0], sizes = [2, 4, 4], strides = [1, 1, 1]} : vector<2x11x4xf32> to vector<2x4x4xf32>
    %c0_173 = arith.constant 0 : index
    %c0_174 = arith.constant 0 : index
    %c0_175 = arith.constant 0 : index
    %453 = vector.load %arg7[%c0_173, %c0_174, %c0_175] : memref<8x4x8xf32, #tpu.memory_space<vmem>>, vector<1x4x8xf32>
    %454 = vector.shape_cast %453 : vector<1x4x8xf32> to vector<4x8xf32>
    %455 = vector.shape_cast %454 : vector<4x8xf32> to vector<1x4x8xf32>
    %456 = vector.shape_cast %455 : vector<1x4x8xf32> to vector<1x4x8xf32>
    %457 = vector.broadcast %456 : vector<1x4x8xf32> to vector<2x4x8xf32>
    "tpu.trace_start"() <{level = 10 : i32, message = "ntc,ncf->ntf"}> : () -> ()
    %cst_176 = arith.constant dense<0.000000e+00> : vector<2x4x8xf32>
    %458 = tpu.matmul %452, %457, %cst_176 {dimension_numbers = #tpu.dot_dimension_numbers<[2], [1], [1], [2], [0, 0, 0, 1, 1, 2], [0], [0]>} : vector<2x4x4xf32>, vector<2x4x8xf32>, vector<2x4x8xf32> -> vector<2x4x8xf32>
    "tpu.trace_stop"() : () -> ()
    %459 = arith.addf %451, %458 : vector<2x4x8xf32>
    %460 = vector.extract_strided_slice %450 {offsets = [0, 1, 0], sizes = [2, 4, 4], strides = [1, 1, 1]} : vector<2x11x4xf32> to vector<2x4x4xf32>
    %c1_177 = arith.constant 1 : index
    %c0_178 = arith.constant 0 : index
    %c0_179 = arith.constant 0 : index
    %461 = vector.load %arg7[%c1_177, %c0_178, %c0_179] : memref<8x4x8xf32, #tpu.memory_space<vmem>>, vector<1x4x8xf32>
    %462 = vector.shape_cast %461 : vector<1x4x8xf32> to vector<4x8xf32>
    %463 = vector.shape_cast %462 : vector<4x8xf32> to vector<1x4x8xf32>
    %464 = vector.shape_cast %463 : vector<1x4x8xf32> to vector<1x4x8xf32>
    %465 = vector.broadcast %464 : vector<1x4x8xf32> to vector<2x4x8xf32>
    "tpu.trace_start"() <{level = 10 : i32, message = "ntc,ncf->ntf"}> : () -> ()
    %cst_180 = arith.constant dense<0.000000e+00> : vector<2x4x8xf32>
    %466 = tpu.matmul %460, %465, %cst_180 {dimension_numbers = #tpu.dot_dimension_numbers<[2], [1], [1], [2], [0, 0, 0, 1, 1, 2], [0], [0]>} : vector<2x4x4xf32>, vector<2x4x8xf32>, vector<2x4x8xf32> -> vector<2x4x8xf32>
    "tpu.trace_stop"() : () -> ()
    %467 = arith.addf %459, %466 : vector<2x4x8xf32>
    %468 = vector.extract_strided_slice %450 {offsets = [0, 2, 0], sizes = [2, 4, 4], strides = [1, 1, 1]} : vector<2x11x4xf32> to vector<2x4x4xf32>
    %c2_181 = arith.constant 2 : index
    %c0_182 = arith.constant 0 : index
    %c0_183 = arith.constant 0 : index
    %469 = vector.load %arg7[%c2_181, %c0_182, %c0_183] : memref<8x4x8xf32, #tpu.memory_space<vmem>>, vector<1x4x8xf32>
    %470 = vector.shape_cast %469 : vector<1x4x8xf32> to vector<4x8xf32>
    %471 = vector.shape_cast %470 : vector<4x8xf32> to vector<1x4x8xf32>
    %472 = vector.shape_cast %471 : vector<1x4x8xf32> to vector<1x4x8xf32>
    %473 = vector.broadcast %472 : vector<1x4x8xf32> to vector<2x4x8xf32>
    "tpu.trace_start"() <{level = 10 : i32, message = "ntc,ncf->ntf"}> : () -> ()
    %cst_184 = arith.constant dense<0.000000e+00> : vector<2x4x8xf32>
    %474 = tpu.matmul %468, %473, %cst_184 {dimension_numbers = #tpu.dot_dimension_numbers<[2], [1], [1], [2], [0, 0, 0, 1, 1, 2], [0], [0]>} : vector<2x4x4xf32>, vector<2x4x8xf32>, vector<2x4x8xf32> -> vector<2x4x8xf32>
    "tpu.trace_stop"() : () -> ()
    %475 = arith.addf %467, %474 : vector<2x4x8xf32>
    %476 = vector.extract_strided_slice %450 {offsets = [0, 3, 0], sizes = [2, 4, 4], strides = [1, 1, 1]} : vector<2x11x4xf32> to vector<2x4x4xf32>
    %c3_185 = arith.constant 3 : index
    %c0_186 = arith.constant 0 : index
    %c0_187 = arith.constant 0 : index
    %477 = vector.load %arg7[%c3_185, %c0_186, %c0_187] : memref<8x4x8xf32, #tpu.memory_space<vmem>>, vector<1x4x8xf32>
    %478 = vector.shape_cast %477 : vector<1x4x8xf32> to vector<4x8xf32>
    %479 = vector.shape_cast %478 : vector<4x8xf32> to vector<1x4x8xf32>
    %480 = vector.shape_cast %479 : vector<1x4x8xf32> to vector<1x4x8xf32>
    %481 = vector.broadcast %480 : vector<1x4x8xf32> to vector<2x4x8xf32>
    "tpu.trace_start"() <{level = 10 : i32, message = "ntc,ncf->ntf"}> : () -> ()
    %cst_188 = arith.constant dense<0.000000e+00> : vector<2x4x8xf32>
    %482 = tpu.matmul %476, %481, %cst_188 {dimension_numbers = #tpu.dot_dimension_numbers<[2], [1], [1], [2], [0, 0, 0, 1, 1, 2], [0], [0]>} : vector<2x4x4xf32>, vector<2x4x8xf32>, vector<2x4x8xf32> -> vector<2x4x8xf32>
    "tpu.trace_stop"() : () -> ()
    %483 = arith.addf %475, %482 : vector<2x4x8xf32>
    %484 = vector.extract_strided_slice %450 {offsets = [0, 4, 0], sizes = [2, 4, 4], strides = [1, 1, 1]} : vector<2x11x4xf32> to vector<2x4x4xf32>
    %c4_189 = arith.constant 4 : index
    %c0_190 = arith.constant 0 : index
    %c0_191 = arith.constant 0 : index
    %485 = vector.load %arg7[%c4_189, %c0_190, %c0_191] : memref<8x4x8xf32, #tpu.memory_space<vmem>>, vector<1x4x8xf32>
    %486 = vector.shape_cast %485 : vector<1x4x8xf32> to vector<4x8xf32>
    %487 = vector.shape_cast %486 : vector<4x8xf32> to vector<1x4x8xf32>
    %488 = vector.shape_cast %487 : vector<1x4x8xf32> to vector<1x4x8xf32>
    %489 = vector.broadcast %488 : vector<1x4x8xf32> to vector<2x4x8xf32>
    "tpu.trace_start"() <{level = 10 : i32, message = "ntc,ncf->ntf"}> : () -> ()
    %cst_192 = arith.constant dense<0.000000e+00> : vector<2x4x8xf32>
    %490 = tpu.matmul %484, %489, %cst_192 {dimension_numbers = #tpu.dot_dimension_numbers<[2], [1], [1], [2], [0, 0, 0, 1, 1, 2], [0], [0]>} : vector<2x4x4xf32>, vector<2x4x8xf32>, vector<2x4x8xf32> -> vector<2x4x8xf32>
    "tpu.trace_stop"() : () -> ()
    %491 = arith.addf %483, %490 : vector<2x4x8xf32>
    %492 = vector.extract_strided_slice %450 {offsets = [0, 5, 0], sizes = [2, 4, 4], strides = [1, 1, 1]} : vector<2x11x4xf32> to vector<2x4x4xf32>
    %c5_193 = arith.constant 5 : index
    %c0_194 = arith.constant 0 : index
    %c0_195 = arith.constant 0 : index
    %493 = vector.load %arg7[%c5_193, %c0_194, %c0_195] : memref<8x4x8xf32, #tpu.memory_space<vmem>>, vector<1x4x8xf32>
    %494 = vector.shape_cast %493 : vector<1x4x8xf32> to vector<4x8xf32>
    %495 = vector.shape_cast %494 : vector<4x8xf32> to vector<1x4x8xf32>
    %496 = vector.shape_cast %495 : vector<1x4x8xf32> to vector<1x4x8xf32>
    %497 = vector.broadcast %496 : vector<1x4x8xf32> to vector<2x4x8xf32>
    "tpu.trace_start"() <{level = 10 : i32, message = "ntc,ncf->ntf"}> : () -> ()
    %cst_196 = arith.constant dense<0.000000e+00> : vector<2x4x8xf32>
    %498 = tpu.matmul %492, %497, %cst_196 {dimension_numbers = #tpu.dot_dimension_numbers<[2], [1], [1], [2], [0, 0, 0, 1, 1, 2], [0], [0]>} : vector<2x4x4xf32>, vector<2x4x8xf32>, vector<2x4x8xf32> -> vector<2x4x8xf32>
    "tpu.trace_stop"() : () -> ()
    %499 = arith.addf %491, %498 : vector<2x4x8xf32>
    %500 = vector.extract_strided_slice %450 {offsets = [0, 6, 0], sizes = [2, 4, 4], strides = [1, 1, 1]} : vector<2x11x4xf32> to vector<2x4x4xf32>
    %c6_197 = arith.constant 6 : index
    %c0_198 = arith.constant 0 : index
    %c0_199 = arith.constant 0 : index
    %501 = vector.load %arg7[%c6_197, %c0_198, %c0_199] : memref<8x4x8xf32, #tpu.memory_space<vmem>>, vector<1x4x8xf32>
    %502 = vector.shape_cast %501 : vector<1x4x8xf32> to vector<4x8xf32>
    %503 = vector.shape_cast %502 : vector<4x8xf32> to vector<1x4x8xf32>
    %504 = vector.shape_cast %503 : vector<1x4x8xf32> to vector<1x4x8xf32>
    %505 = vector.broadcast %504 : vector<1x4x8xf32> to vector<2x4x8xf32>
    "tpu.trace_start"() <{level = 10 : i32, message = "ntc,ncf->ntf"}> : () -> ()
    %cst_200 = arith.constant dense<0.000000e+00> : vector<2x4x8xf32>
    %506 = tpu.matmul %500, %505, %cst_200 {dimension_numbers = #tpu.dot_dimension_numbers<[2], [1], [1], [2], [0, 0, 0, 1, 1, 2], [0], [0]>} : vector<2x4x4xf32>, vector<2x4x8xf32>, vector<2x4x8xf32> -> vector<2x4x8xf32>
    "tpu.trace_stop"() : () -> ()
    %507 = arith.addf %499, %506 : vector<2x4x8xf32>
    %508 = vector.extract_strided_slice %450 {offsets = [0, 7, 0], sizes = [2, 4, 4], strides = [1, 1, 1]} : vector<2x11x4xf32> to vector<2x4x4xf32>
    %c7_201 = arith.constant 7 : index
    %c0_202 = arith.constant 0 : index
    %c0_203 = arith.constant 0 : index
    %509 = vector.load %arg7[%c7_201, %c0_202, %c0_203] : memref<8x4x8xf32, #tpu.memory_space<vmem>>, vector<1x4x8xf32>
    %510 = vector.shape_cast %509 : vector<1x4x8xf32> to vector<4x8xf32>
    %511 = vector.shape_cast %510 : vector<4x8xf32> to vector<1x4x8xf32>
    %512 = vector.shape_cast %511 : vector<1x4x8xf32> to vector<1x4x8xf32>
    %513 = vector.broadcast %512 : vector<1x4x8xf32> to vector<2x4x8xf32>
    "tpu.trace_start"() <{level = 10 : i32, message = "ntc,ncf->ntf"}> : () -> ()
    %cst_204 = arith.constant dense<0.000000e+00> : vector<2x4x8xf32>
    %514 = tpu.matmul %508, %513, %cst_204 {dimension_numbers = #tpu.dot_dimension_numbers<[2], [1], [1], [2], [0, 0, 0, 1, 1, 2], [0], [0]>} : vector<2x4x4xf32>, vector<2x4x8xf32>, vector<2x4x8xf32> -> vector<2x4x8xf32>
    "tpu.trace_stop"() : () -> ()
    %515 = arith.addf %507, %514 : vector<2x4x8xf32>
    %516 = vector.shape_cast %0 : vector<1x8xf32> to vector<1x1x8xf32>
    %517 = vector.broadcast %516 : vector<1x1x8xf32> to vector<2x4x8xf32>
    %518 = arith.addf %515, %517 : vector<2x4x8xf32>
    %519 = vector.extract_strided_slice %1 {offsets = [4, 0], sizes = [1, 8], strides = [1, 1]} : vector<5x8xf32> to vector<1x8xf32>
    %520 = vector.extract_strided_slice %2 {offsets = [4, 0], sizes = [1, 8], strides = [1, 1]} : vector<5x8xf32> to vector<1x8xf32>
    %cst_205 = arith.constant dense<0.000000e+00> : vector<4x8xf32>
    %521 = vector.multi_reduction <add>, %518, %cst_205 [0] : vector<2x4x8xf32> to vector<4x8xf32>
    %522 = vector.shape_cast %521 : vector<4x8xf32> to vector<1x4x8xf32>
    %cst_206 = arith.constant dense<0.000000e+00> : vector<1x8xf32>
    %523 = vector.multi_reduction <add>, %522, %cst_206 [1] : vector<1x4x8xf32> to vector<1x8xf32>
    %524 = vector.shape_cast %523 : vector<1x8xf32> to vector<1x1x8xf32>
    %cst_207 = arith.constant 8.000000e+00 : f32
    %525 = vector.broadcast %cst_207 : f32 to vector<1x1x8xf32>
    %526 = arith.divf %524, %525 : vector<1x1x8xf32>
    %527 = vector.broadcast %526 : vector<1x1x8xf32> to vector<2x4x8xf32>
    %528 = arith.subf %518, %527 : vector<2x4x8xf32>
    %529 = arith.mulf %528, %528 : vector<2x4x8xf32>
    %cst_208 = arith.constant dense<0.000000e+00> : vector<4x8xf32>
    %530 = vector.multi_reduction <add>, %529, %cst_208 [0] : vector<2x4x8xf32> to vector<4x8xf32>
    %531 = vector.shape_cast %530 : vector<4x8xf32> to vector<1x4x8xf32>
    %cst_209 = arith.constant dense<0.000000e+00> : vector<1x8xf32>
    %532 = vector.multi_reduction <add>, %531, %cst_209 [1] : vector<1x4x8xf32> to vector<1x8xf32>
    %533 = vector.shape_cast %532 : vector<1x8xf32> to vector<1x1x8xf32>
    %cst_210 = arith.constant 8.000000e+00 : f32
    %534 = vector.broadcast %cst_210 : f32 to vector<1x1x8xf32>
    %535 = arith.divf %533, %534 : vector<1x1x8xf32>
    %536 = vector.broadcast %526 : vector<1x1x8xf32> to vector<2x4x8xf32>
    %537 = arith.subf %518, %536 : vector<2x4x8xf32>
    %cst_211 = arith.constant 9.99999974E-6 : f32
    %538 = vector.broadcast %cst_211 : f32 to vector<1x1x8xf32>
    %539 = arith.addf %535, %538 : vector<1x1x8xf32>
    %540 = math.rsqrt %539 : vector<1x1x8xf32>
    %541 = vector.broadcast %540 : vector<1x1x8xf32> to vector<2x4x8xf32>
    %542 = arith.mulf %537, %541 : vector<2x4x8xf32>
    %543 = vector.shape_cast %519 : vector<1x8xf32> to vector<1x1x8xf32>
    %544 = vector.broadcast %543 : vector<1x1x8xf32> to vector<2x4x8xf32>
    %545 = arith.mulf %542, %544 : vector<2x4x8xf32>
    %546 = vector.shape_cast %520 : vector<1x8xf32> to vector<1x1x8xf32>
    %547 = vector.broadcast %546 : vector<1x1x8xf32> to vector<2x4x8xf32>
    %548 = arith.addf %545, %547 : vector<2x4x8xf32>
    %549 = arith.addf %438, %548 : vector<2x4x8xf32>
    %cst_212 = arith.constant 0.000000e+00 : f32
    %550 = vector.broadcast %cst_212 : f32 to vector<2x4x8xf32>
    %551 = arith.maximumf %549, %550 : vector<2x4x8xf32>
    %552 = tpu.iota {dimensions = array<i32: 0>} : vector<2x4xi32>
    %553 = tpu.iota {dimensions = array<i32: 1>} : vector<2x4xi32>
    %c2_i32_213 = arith.constant 2 : i32
    %554 = vector.broadcast %c2_i32_213 : i32 to vector<2x4xi32>
    %555 = arith.muli %554, %552 : vector<2x4xi32>
    %556 = arith.cmpi eq, %553, %555 : vector<2x4xi32>
    %cst_214 = arith.constant 1.000000e+00 : f32
    %cst_215 = arith.constant 0.000000e+00 : f32
    %557 = vector.broadcast %cst_214 : f32 to vector<2x4xf32>
    %558 = vector.broadcast %cst_215 : f32 to vector<2x4xf32>
    %559 = arith.select %556, %557, %558 : vector<2x4xi1>, vector<2x4xf32>
    %560 = tpu.iota {dimensions = array<i32: 0>} : vector<2x4xi32>
    %561 = tpu.iota {dimensions = array<i32: 1>} : vector<2x4xi32>
    %c2_i32_216 = arith.constant 2 : i32
    %562 = vector.broadcast %c2_i32_216 : i32 to vector<2x4xi32>
    %563 = arith.muli %562, %560 : vector<2x4xi32>
    %c1_i32_217 = arith.constant 1 : i32
    %564 = vector.broadcast %c1_i32_217 : i32 to vector<2x4xi32>
    %565 = arith.addi %563, %564 : vector<2x4xi32>
    %566 = arith.cmpi eq, %561, %565 : vector<2x4xi32>
    %cst_218 = arith.constant 1.000000e+00 : f32
    %cst_219 = arith.constant 0.000000e+00 : f32
    %567 = vector.broadcast %cst_218 : f32 to vector<2x4xf32>
    %568 = vector.broadcast %cst_219 : f32 to vector<2x4xf32>
    %569 = arith.select %566, %567, %568 : vector<2x4xi1>, vector<2x4xf32>
    %570 = vector.shape_cast %559 : vector<2x4xf32> to vector<1x2x4xf32>
    %571 = vector.shape_cast %570 : vector<1x2x4xf32> to vector<1x2x4xf32>
    %572 = vector.broadcast %571 : vector<1x2x4xf32> to vector<2x2x4xf32>
    "tpu.trace_start"() <{level = 10 : i32, message = "nst,ntc->nsc"}> : () -> ()
    %cst_220 = arith.constant dense<0.000000e+00> : vector<2x2x8xf32>
    %573 = tpu.matmul %572, %551, %cst_220 {dimension_numbers = #tpu.dot_dimension_numbers<[2], [1], [1], [2], [0, 0, 0, 1, 1, 2], [0], [0]>} : vector<2x2x4xf32>, vector<2x4x8xf32>, vector<2x2x8xf32> -> vector<2x2x8xf32>
    "tpu.trace_stop"() : () -> ()
    %574 = vector.shape_cast %569 : vector<2x4xf32> to vector<1x2x4xf32>
    %575 = vector.shape_cast %574 : vector<1x2x4xf32> to vector<1x2x4xf32>
    %576 = vector.broadcast %575 : vector<1x2x4xf32> to vector<2x2x4xf32>
    "tpu.trace_start"() <{level = 10 : i32, message = "nst,ntc->nsc"}> : () -> ()
    %cst_221 = arith.constant dense<0.000000e+00> : vector<2x2x8xf32>
    %577 = tpu.matmul %576, %551, %cst_221 {dimension_numbers = #tpu.dot_dimension_numbers<[2], [1], [1], [2], [0, 0, 0, 1, 1, 2], [0], [0]>} : vector<2x2x4xf32>, vector<2x4x8xf32>, vector<2x2x8xf32> -> vector<2x2x8xf32>
    "tpu.trace_stop"() : () -> ()
    %578 = arith.maximumf %573, %577 : vector<2x2x8xf32>
    %579 = tpu.iota {dimensions = array<i32: 0>} : vector<9x2xi32>
    %580 = tpu.iota {dimensions = array<i32: 1>} : vector<9x2xi32>
    %c3_i32_222 = arith.constant 3 : i32
    %581 = vector.broadcast %c3_i32_222 : i32 to vector<9x2xi32>
    %582 = arith.addi %580, %581 : vector<9x2xi32>
    %583 = arith.cmpi eq, %579, %582 : vector<9x2xi32>
    %cst_223 = arith.constant 1.000000e+00 : f32
    %cst_224 = arith.constant 0.000000e+00 : f32
    %584 = vector.broadcast %cst_223 : f32 to vector<9x2xf32>
    %585 = vector.broadcast %cst_224 : f32 to vector<9x2xf32>
    %586 = arith.select %583, %584, %585 : vector<9x2xi1>, vector<9x2xf32>
    %587 = vector.shape_cast %586 : vector<9x2xf32> to vector<1x9x2xf32>
    %588 = vector.shape_cast %587 : vector<1x9x2xf32> to vector<1x9x2xf32>
    %589 = vector.broadcast %588 : vector<1x9x2xf32> to vector<2x9x2xf32>
    "tpu.trace_start"() <{level = 10 : i32, message = "nst,ntc->nsc"}> : () -> ()
    %cst_225 = arith.constant dense<0.000000e+00> : vector<2x9x8xf32>
    %590 = tpu.matmul %589, %578, %cst_225 {dimension_numbers = #tpu.dot_dimension_numbers<[2], [1], [1], [2], [0, 0, 0, 1, 1, 2], [0], [0]>} : vector<2x9x2xf32>, vector<2x2x8xf32>, vector<2x9x8xf32> -> vector<2x9x8xf32>
    %cst_226 = arith.constant 0.000000e+00 : f32
    "tpu.trace_stop"() : () -> ()
    %591 = vector.broadcast %cst_226 : f32 to vector<2x2x8xf32>
    %592 = vector.extract_strided_slice %590 {offsets = [0, 0, 0], sizes = [2, 2, 8], strides = [1, 1, 1]} : vector<2x9x8xf32> to vector<2x2x8xf32>
    %c0_227 = arith.constant 0 : index
    %c0_228 = arith.constant 0 : index
    %c0_229 = arith.constant 0 : index
    %593 = vector.load %arg4[%c0_227, %c0_228, %c0_229] : memref<8x8x8xf32, #tpu.memory_space<vmem>>, vector<1x8x8xf32>
    %594 = vector.shape_cast %593 : vector<1x8x8xf32> to vector<8x8xf32>
    %595 = vector.shape_cast %594 : vector<8x8xf32> to vector<1x8x8xf32>
    %596 = vector.shape_cast %595 : vector<1x8x8xf32> to vector<1x8x8xf32>
    %597 = vector.broadcast %596 : vector<1x8x8xf32> to vector<2x8x8xf32>
    "tpu.trace_start"() <{level = 10 : i32, message = "ntc,ncf->ntf"}> : () -> ()
    %cst_230 = arith.constant dense<0.000000e+00> : vector<2x2x8xf32>
    %598 = tpu.matmul %592, %597, %cst_230 {dimension_numbers = #tpu.dot_dimension_numbers<[2], [1], [1], [2], [0, 0, 0, 1, 1, 2], [0], [0]>} : vector<2x2x8xf32>, vector<2x8x8xf32>, vector<2x2x8xf32> -> vector<2x2x8xf32>
    "tpu.trace_stop"() : () -> ()
    %599 = arith.addf %591, %598 : vector<2x2x8xf32>
    %600 = vector.extract_strided_slice %590 {offsets = [0, 1, 0], sizes = [2, 2, 8], strides = [1, 1, 1]} : vector<2x9x8xf32> to vector<2x2x8xf32>
    %c1_231 = arith.constant 1 : index
    %c0_232 = arith.constant 0 : index
    %c0_233 = arith.constant 0 : index
    %601 = vector.load %arg4[%c1_231, %c0_232, %c0_233] : memref<8x8x8xf32, #tpu.memory_space<vmem>>, vector<1x8x8xf32>
    %602 = vector.shape_cast %601 : vector<1x8x8xf32> to vector<8x8xf32>
    %603 = vector.shape_cast %602 : vector<8x8xf32> to vector<1x8x8xf32>
    %604 = vector.shape_cast %603 : vector<1x8x8xf32> to vector<1x8x8xf32>
    %605 = vector.broadcast %604 : vector<1x8x8xf32> to vector<2x8x8xf32>
    "tpu.trace_start"() <{level = 10 : i32, message = "ntc,ncf->ntf"}> : () -> ()
    %cst_234 = arith.constant dense<0.000000e+00> : vector<2x2x8xf32>
    %606 = tpu.matmul %600, %605, %cst_234 {dimension_numbers = #tpu.dot_dimension_numbers<[2], [1], [1], [2], [0, 0, 0, 1, 1, 2], [0], [0]>} : vector<2x2x8xf32>, vector<2x8x8xf32>, vector<2x2x8xf32> -> vector<2x2x8xf32>
    "tpu.trace_stop"() : () -> ()
    %607 = arith.addf %599, %606 : vector<2x2x8xf32>
    %608 = vector.extract_strided_slice %590 {offsets = [0, 2, 0], sizes = [2, 2, 8], strides = [1, 1, 1]} : vector<2x9x8xf32> to vector<2x2x8xf32>
    %c2_235 = arith.constant 2 : index
    %c0_236 = arith.constant 0 : index
    %c0_237 = arith.constant 0 : index
    %609 = vector.load %arg4[%c2_235, %c0_236, %c0_237] : memref<8x8x8xf32, #tpu.memory_space<vmem>>, vector<1x8x8xf32>
    %610 = vector.shape_cast %609 : vector<1x8x8xf32> to vector<8x8xf32>
    %611 = vector.shape_cast %610 : vector<8x8xf32> to vector<1x8x8xf32>
    %612 = vector.shape_cast %611 : vector<1x8x8xf32> to vector<1x8x8xf32>
    %613 = vector.broadcast %612 : vector<1x8x8xf32> to vector<2x8x8xf32>
    "tpu.trace_start"() <{level = 10 : i32, message = "ntc,ncf->ntf"}> : () -> ()
    %cst_238 = arith.constant dense<0.000000e+00> : vector<2x2x8xf32>
    %614 = tpu.matmul %608, %613, %cst_238 {dimension_numbers = #tpu.dot_dimension_numbers<[2], [1], [1], [2], [0, 0, 0, 1, 1, 2], [0], [0]>} : vector<2x2x8xf32>, vector<2x8x8xf32>, vector<2x2x8xf32> -> vector<2x2x8xf32>
    "tpu.trace_stop"() : () -> ()
    %615 = arith.addf %607, %614 : vector<2x2x8xf32>
    %616 = vector.extract_strided_slice %590 {offsets = [0, 3, 0], sizes = [2, 2, 8], strides = [1, 1, 1]} : vector<2x9x8xf32> to vector<2x2x8xf32>
    %c3_239 = arith.constant 3 : index
    %c0_240 = arith.constant 0 : index
    %c0_241 = arith.constant 0 : index
    %617 = vector.load %arg4[%c3_239, %c0_240, %c0_241] : memref<8x8x8xf32, #tpu.memory_space<vmem>>, vector<1x8x8xf32>
    %618 = vector.shape_cast %617 : vector<1x8x8xf32> to vector<8x8xf32>
    %619 = vector.shape_cast %618 : vector<8x8xf32> to vector<1x8x8xf32>
    %620 = vector.shape_cast %619 : vector<1x8x8xf32> to vector<1x8x8xf32>
    %621 = vector.broadcast %620 : vector<1x8x8xf32> to vector<2x8x8xf32>
    "tpu.trace_start"() <{level = 10 : i32, message = "ntc,ncf->ntf"}> : () -> ()
    %cst_242 = arith.constant dense<0.000000e+00> : vector<2x2x8xf32>
    %622 = tpu.matmul %616, %621, %cst_242 {dimension_numbers = #tpu.dot_dimension_numbers<[2], [1], [1], [2], [0, 0, 0, 1, 1, 2], [0], [0]>} : vector<2x2x8xf32>, vector<2x8x8xf32>, vector<2x2x8xf32> -> vector<2x2x8xf32>
    "tpu.trace_stop"() : () -> ()
    %623 = arith.addf %615, %622 : vector<2x2x8xf32>
    %624 = vector.extract_strided_slice %590 {offsets = [0, 4, 0], sizes = [2, 2, 8], strides = [1, 1, 1]} : vector<2x9x8xf32> to vector<2x2x8xf32>
    %c4_243 = arith.constant 4 : index
    %c0_244 = arith.constant 0 : index
    %c0_245 = arith.constant 0 : index
    %625 = vector.load %arg4[%c4_243, %c0_244, %c0_245] : memref<8x8x8xf32, #tpu.memory_space<vmem>>, vector<1x8x8xf32>
    %626 = vector.shape_cast %625 : vector<1x8x8xf32> to vector<8x8xf32>
    %627 = vector.shape_cast %626 : vector<8x8xf32> to vector<1x8x8xf32>
    %628 = vector.shape_cast %627 : vector<1x8x8xf32> to vector<1x8x8xf32>
    %629 = vector.broadcast %628 : vector<1x8x8xf32> to vector<2x8x8xf32>
    "tpu.trace_start"() <{level = 10 : i32, message = "ntc,ncf->ntf"}> : () -> ()
    %cst_246 = arith.constant dense<0.000000e+00> : vector<2x2x8xf32>
    %630 = tpu.matmul %624, %629, %cst_246 {dimension_numbers = #tpu.dot_dimension_numbers<[2], [1], [1], [2], [0, 0, 0, 1, 1, 2], [0], [0]>} : vector<2x2x8xf32>, vector<2x8x8xf32>, vector<2x2x8xf32> -> vector<2x2x8xf32>
    "tpu.trace_stop"() : () -> ()
    %631 = arith.addf %623, %630 : vector<2x2x8xf32>
    %632 = vector.extract_strided_slice %590 {offsets = [0, 5, 0], sizes = [2, 2, 8], strides = [1, 1, 1]} : vector<2x9x8xf32> to vector<2x2x8xf32>
    %c5_247 = arith.constant 5 : index
    %c0_248 = arith.constant 0 : index
    %c0_249 = arith.constant 0 : index
    %633 = vector.load %arg4[%c5_247, %c0_248, %c0_249] : memref<8x8x8xf32, #tpu.memory_space<vmem>>, vector<1x8x8xf32>
    %634 = vector.shape_cast %633 : vector<1x8x8xf32> to vector<8x8xf32>
    %635 = vector.shape_cast %634 : vector<8x8xf32> to vector<1x8x8xf32>
    %636 = vector.shape_cast %635 : vector<1x8x8xf32> to vector<1x8x8xf32>
    %637 = vector.broadcast %636 : vector<1x8x8xf32> to vector<2x8x8xf32>
    "tpu.trace_start"() <{level = 10 : i32, message = "ntc,ncf->ntf"}> : () -> ()
    %cst_250 = arith.constant dense<0.000000e+00> : vector<2x2x8xf32>
    %638 = tpu.matmul %632, %637, %cst_250 {dimension_numbers = #tpu.dot_dimension_numbers<[2], [1], [1], [2], [0, 0, 0, 1, 1, 2], [0], [0]>} : vector<2x2x8xf32>, vector<2x8x8xf32>, vector<2x2x8xf32> -> vector<2x2x8xf32>
    "tpu.trace_stop"() : () -> ()
    %639 = arith.addf %631, %638 : vector<2x2x8xf32>
    %640 = vector.extract_strided_slice %590 {offsets = [0, 6, 0], sizes = [2, 2, 8], strides = [1, 1, 1]} : vector<2x9x8xf32> to vector<2x2x8xf32>
    %c6_251 = arith.constant 6 : index
    %c0_252 = arith.constant 0 : index
    %c0_253 = arith.constant 0 : index
    %641 = vector.load %arg4[%c6_251, %c0_252, %c0_253] : memref<8x8x8xf32, #tpu.memory_space<vmem>>, vector<1x8x8xf32>
    %642 = vector.shape_cast %641 : vector<1x8x8xf32> to vector<8x8xf32>
    %643 = vector.shape_cast %642 : vector<8x8xf32> to vector<1x8x8xf32>
    %644 = vector.shape_cast %643 : vector<1x8x8xf32> to vector<1x8x8xf32>
    %645 = vector.broadcast %644 : vector<1x8x8xf32> to vector<2x8x8xf32>
    "tpu.trace_start"() <{level = 10 : i32, message = "ntc,ncf->ntf"}> : () -> ()
    %cst_254 = arith.constant dense<0.000000e+00> : vector<2x2x8xf32>
    %646 = tpu.matmul %640, %645, %cst_254 {dimension_numbers = #tpu.dot_dimension_numbers<[2], [1], [1], [2], [0, 0, 0, 1, 1, 2], [0], [0]>} : vector<2x2x8xf32>, vector<2x8x8xf32>, vector<2x2x8xf32> -> vector<2x2x8xf32>
    "tpu.trace_stop"() : () -> ()
    %647 = arith.addf %639, %646 : vector<2x2x8xf32>
    %648 = vector.extract_strided_slice %590 {offsets = [0, 7, 0], sizes = [2, 2, 8], strides = [1, 1, 1]} : vector<2x9x8xf32> to vector<2x2x8xf32>
    %c7_255 = arith.constant 7 : index
    %c0_256 = arith.constant 0 : index
    %c0_257 = arith.constant 0 : index
    %649 = vector.load %arg4[%c7_255, %c0_256, %c0_257] : memref<8x8x8xf32, #tpu.memory_space<vmem>>, vector<1x8x8xf32>
    %650 = vector.shape_cast %649 : vector<1x8x8xf32> to vector<8x8xf32>
    %651 = vector.shape_cast %650 : vector<8x8xf32> to vector<1x8x8xf32>
    %652 = vector.shape_cast %651 : vector<1x8x8xf32> to vector<1x8x8xf32>
    %653 = vector.broadcast %652 : vector<1x8x8xf32> to vector<2x8x8xf32>
    "tpu.trace_start"() <{level = 10 : i32, message = "ntc,ncf->ntf"}> : () -> ()
    %cst_258 = arith.constant dense<0.000000e+00> : vector<2x2x8xf32>
    %654 = tpu.matmul %648, %653, %cst_258 {dimension_numbers = #tpu.dot_dimension_numbers<[2], [1], [1], [2], [0, 0, 0, 1, 1, 2], [0], [0]>} : vector<2x2x8xf32>, vector<2x8x8xf32>, vector<2x2x8xf32> -> vector<2x2x8xf32>
    "tpu.trace_stop"() : () -> ()
    %655 = arith.addf %647, %654 : vector<2x2x8xf32>
    %656 = vector.extract_strided_slice %1 {offsets = [3, 0], sizes = [1, 8], strides = [1, 1]} : vector<5x8xf32> to vector<1x8xf32>
    %657 = vector.extract_strided_slice %2 {offsets = [3, 0], sizes = [1, 8], strides = [1, 1]} : vector<5x8xf32> to vector<1x8xf32>
    %cst_259 = arith.constant dense<0.000000e+00> : vector<2x8xf32>
    %658 = vector.multi_reduction <add>, %655, %cst_259 [0] : vector<2x2x8xf32> to vector<2x8xf32>
    %659 = vector.shape_cast %658 : vector<2x8xf32> to vector<1x2x8xf32>
    %cst_260 = arith.constant dense<0.000000e+00> : vector<1x8xf32>
    %660 = vector.multi_reduction <add>, %659, %cst_260 [1] : vector<1x2x8xf32> to vector<1x8xf32>
    %661 = vector.shape_cast %660 : vector<1x8xf32> to vector<1x1x8xf32>
    %cst_261 = arith.constant 4.000000e+00 : f32
    %662 = vector.broadcast %cst_261 : f32 to vector<1x1x8xf32>
    %663 = arith.divf %661, %662 : vector<1x1x8xf32>
    %664 = vector.broadcast %663 : vector<1x1x8xf32> to vector<2x2x8xf32>
    %665 = arith.subf %655, %664 : vector<2x2x8xf32>
    %666 = arith.mulf %665, %665 : vector<2x2x8xf32>
    %cst_262 = arith.constant dense<0.000000e+00> : vector<2x8xf32>
    %667 = vector.multi_reduction <add>, %666, %cst_262 [0] : vector<2x2x8xf32> to vector<2x8xf32>
    %668 = vector.shape_cast %667 : vector<2x8xf32> to vector<1x2x8xf32>
    %cst_263 = arith.constant dense<0.000000e+00> : vector<1x8xf32>
    %669 = vector.multi_reduction <add>, %668, %cst_263 [1] : vector<1x2x8xf32> to vector<1x8xf32>
    %670 = vector.shape_cast %669 : vector<1x8xf32> to vector<1x1x8xf32>
    %cst_264 = arith.constant 4.000000e+00 : f32
    %671 = vector.broadcast %cst_264 : f32 to vector<1x1x8xf32>
    %672 = arith.divf %670, %671 : vector<1x1x8xf32>
    %673 = vector.broadcast %663 : vector<1x1x8xf32> to vector<2x2x8xf32>
    %674 = arith.subf %655, %673 : vector<2x2x8xf32>
    %cst_265 = arith.constant 9.99999974E-6 : f32
    %675 = vector.broadcast %cst_265 : f32 to vector<1x1x8xf32>
    %676 = arith.addf %672, %675 : vector<1x1x8xf32>
    %677 = math.rsqrt %676 : vector<1x1x8xf32>
    %678 = vector.broadcast %677 : vector<1x1x8xf32> to vector<2x2x8xf32>
    %679 = arith.mulf %674, %678 : vector<2x2x8xf32>
    %680 = vector.shape_cast %656 : vector<1x8xf32> to vector<1x1x8xf32>
    %681 = vector.broadcast %680 : vector<1x1x8xf32> to vector<2x2x8xf32>
    %682 = arith.mulf %679, %681 : vector<2x2x8xf32>
    %683 = vector.shape_cast %657 : vector<1x8xf32> to vector<1x1x8xf32>
    %684 = vector.broadcast %683 : vector<1x1x8xf32> to vector<2x2x8xf32>
    %685 = arith.addf %682, %684 : vector<2x2x8xf32>
    %cst_266 = arith.constant 0.000000e+00 : f32
    %686 = vector.broadcast %cst_266 : f32 to vector<2x2x8xf32>
    %687 = arith.maximumf %685, %686 : vector<2x2x8xf32>
    %688 = tpu.iota {dimensions = array<i32: 0>} : vector<1x2xi32>
    %689 = tpu.iota {dimensions = array<i32: 1>} : vector<1x2xi32>
    %c2_i32_267 = arith.constant 2 : i32
    %690 = vector.broadcast %c2_i32_267 : i32 to vector<1x2xi32>
    %691 = arith.muli %690, %688 : vector<1x2xi32>
    %692 = arith.cmpi eq, %689, %691 : vector<1x2xi32>
    %cst_268 = arith.constant 1.000000e+00 : f32
    %cst_269 = arith.constant 0.000000e+00 : f32
    %693 = vector.broadcast %cst_268 : f32 to vector<1x2xf32>
    %694 = vector.broadcast %cst_269 : f32 to vector<1x2xf32>
    %695 = arith.select %692, %693, %694 : vector<1x2xi1>, vector<1x2xf32>
    %696 = tpu.iota {dimensions = array<i32: 0>} : vector<1x2xi32>
    %697 = tpu.iota {dimensions = array<i32: 1>} : vector<1x2xi32>
    %c2_i32_270 = arith.constant 2 : i32
    %698 = vector.broadcast %c2_i32_270 : i32 to vector<1x2xi32>
    %699 = arith.muli %698, %696 : vector<1x2xi32>
    %c1_i32_271 = arith.constant 1 : i32
    %700 = vector.broadcast %c1_i32_271 : i32 to vector<1x2xi32>
    %701 = arith.addi %699, %700 : vector<1x2xi32>
    %702 = arith.cmpi eq, %697, %701 : vector<1x2xi32>
    %cst_272 = arith.constant 1.000000e+00 : f32
    %cst_273 = arith.constant 0.000000e+00 : f32
    %703 = vector.broadcast %cst_272 : f32 to vector<1x2xf32>
    %704 = vector.broadcast %cst_273 : f32 to vector<1x2xf32>
    %705 = arith.select %702, %703, %704 : vector<1x2xi1>, vector<1x2xf32>
    %706 = vector.shape_cast %695 : vector<1x2xf32> to vector<1x1x2xf32>
    %707 = vector.shape_cast %706 : vector<1x1x2xf32> to vector<1x1x2xf32>
    %708 = vector.broadcast %707 : vector<1x1x2xf32> to vector<2x1x2xf32>
    "tpu.trace_start"() <{level = 10 : i32, message = "nst,ntc->nsc"}> : () -> ()
    %cst_274 = arith.constant dense<0.000000e+00> : vector<2x1x8xf32>
    %709 = tpu.matmul %708, %687, %cst_274 {dimension_numbers = #tpu.dot_dimension_numbers<[2], [1], [1], [2], [0, 0, 0, 1, 1, 2], [0], [0]>} : vector<2x1x2xf32>, vector<2x2x8xf32>, vector<2x1x8xf32> -> vector<2x1x8xf32>
    "tpu.trace_stop"() : () -> ()
    %710 = vector.shape_cast %705 : vector<1x2xf32> to vector<1x1x2xf32>
    %711 = vector.shape_cast %710 : vector<1x1x2xf32> to vector<1x1x2xf32>
    %712 = vector.broadcast %711 : vector<1x1x2xf32> to vector<2x1x2xf32>
    "tpu.trace_start"() <{level = 10 : i32, message = "nst,ntc->nsc"}> : () -> ()
    %cst_275 = arith.constant dense<0.000000e+00> : vector<2x1x8xf32>
    %713 = tpu.matmul %712, %687, %cst_275 {dimension_numbers = #tpu.dot_dimension_numbers<[2], [1], [1], [2], [0, 0, 0, 1, 1, 2], [0], [0]>} : vector<2x1x2xf32>, vector<2x2x8xf32>, vector<2x1x8xf32> -> vector<2x1x8xf32>
    "tpu.trace_stop"() : () -> ()
    %714 = arith.maximumf %709, %713 : vector<2x1x8xf32>
    %cst_276 = arith.constant 5.000000e-01 : f32
    %715 = vector.broadcast %cst_276 : f32 to vector<2x1x8xf32>
    %716 = arith.mulf %715, %714 : vector<2x1x8xf32>
    %c0_277 = arith.constant 0 : index
    %c0_278 = arith.constant 0 : index
    %c0_279 = arith.constant 0 : index
    %717 = vector.load %arg9[%c0_277, %c0_278, %c0_279] : memref<2x1x8xf32, #tpu.memory_space<vmem>>, vector<2x1x8xf32>
    tpu.vector_store %arg9[%c0_277, %c0_278, %c0_279], %716 {strides = array<i32>} : memref<2x1x8xf32, #tpu.memory_space<vmem>>, vector<2x1x8xf32>,
    return
  }
}

</mosaic_0001>

<bundles_post_ra>
// kernel: xception_forward.1
= control target key start
LH: loop header
LB: loop body
LE: loop exit
PB: predicated region body
PF: predicated region fallthrough
CT: control target
= control target key end

     0   :  { %v40_v3 = vlaneseq  ;;  %v10417_v4 = vmov 0.0|0.0   ;;  %s11505_s0 = inlined_call_operand.vmem [shape: f32[2,16,4], index: 0, kind: input, shape index: {}]   ;;  %s11506_s1 = inlined_call_operand.vmem [shape: f32[8,4,8], index: 1, kind: input, shape index: {}]   ;;  %s11507_s2 = inlined_call_operand.vmem [shape: f32[8,8,8], index: 2, kind: input, shape index: {}]   ;;  %s11508_s3 = inlined_call_operand.vmem [shape: f32[8,8,8], index: 3, kind: input, shape index: {}]   ;;  %s11509_s4 = inlined_call_operand.vmem [shape: f32[8,8,8], index: 4, kind: input, shape index: {}]   ;;  %s11510_s5 = inlined_call_operand.vmem [shape: f32[5,8], index: 5, kind: input, shape index: {}]   ;;  %s11511_s6 = inlined_call_operand.vmem [shape: f32[5,8], index: 6, kind: input, shape index: {}]   ;;  %s11512_s7 = inlined_call_operand.vmem [shape: f32[8,4,8], index: 7, kind: input, shape index: {}]   ;;  %s11513_s8 = inlined_call_operand.vmem [shape: f32[1,8], index: 8, kind: input, shape index: {}]   ;;  %s11514_s9 = inlined_call_operand.hbm [shape: f32[2,1,8], index: 9, kind: output, shape index: {}]  }
   0x1   :  { %v36_v0 = vld [vmem:[%s11505_s0] sm:$0xff]  ;;  %v37_v1 = vld [vmem:[%s11505_s0 + $0x8] sm:$0xff]  ;;  %v38_v2 = vld [vmem:[%s11505_s0 + $0x10] sm:$0xff]  ;;  %10233 = vmatprep.subr.bf16.mxu0 %v10417_v4  ;;  %10236 = vmatprep.subr.bf16.mxu1 %v10417_v4 }
   0x2   :  { %v10484_v5 = vpack.c.bf16 %v37_v1, %v36_v0  ;;  %v39_v6 = vld [vmem:[%s11505_s0 + $0x18] sm:$0xff] }
   0x3   :  { %14 = vsyncpa [#allocation3], 0  ;;  %v10489_v7 = vpack.c.bf16 %v39_v6, %v38_v2  ;;  %vm10418_vm0 = vmmov 0   ;;  %v10419_v8 = vmov 0.0   ;;  %v10495_v9 = vshrl.u32 %v40_v3, 7 }
   0x4   :  { %9635 = vmatprep.mubr.msk.f32.mxu0 %vm10418_vm0, %v10419_v8  ;;  %9648 = vmatprep.mubr.msk.f32.mxu1 %vm10418_vm0, %v10419_v8  ;;  %v10497_v10 = vand.u32 127, %v40_v3  ;;  %vm53_vm1 = vcmask 130048   ;;  %v9147_v17 = vld [vmem:[%s11506_s1 + $0x4] sm:$0xf]  ;;  %vm240_vm5 = vcmask 1043456   ;;  %vm229_vm6 = vcmask 1046528  }
   0x5   :  { %10235 = vmatpush3.bf16.msra.mxu0 %v10484_v5  ;;  %10238 = vmatpush3.bf16.msra.mxu1 %v10489_v7  ;;  %v42_v12 = vadd.s32 8, %v10495_v9  ;;  %v43_v13 = vadd.s32 16, %v10495_v9  ;;  %v10540_v18 = vld [vmem:[%s11506_s1] sm:$0xf]  ;;  %vm569_vm7 = vcmask 1045504   ;;  %vm235_vm8 = vcmask 31744  }
   0x6   :  { %v46_v11 = vadd.s32 3, %v10497_v10  ;;  %9657 = vmatprep.subr.msk.mxu0 %vm240_vm5, %v9147_v17  ;;  %9662 = vmatprep.subr.msk.mxu1 %vm240_vm5, %v9147_v17  ;;  %vm747_vm9 = vcmask 1044480   ;;  %vm1102_vm10 = vcmask 1042432   ;;  %vm1280_vm11 = vcmask 1041408  }
   0x7   :  { %vm1458_vm12 = vcmask 1040384   ;;  %vm1634_vm13 = vcmask 64512  }
   0x8   :  { %vm47_vm2 = vcmp.eq.s32.totalorder %v10495_v9, %v46_v11  ;;  %vm48_vm3 = vcmp.eq.s32.totalorder %v42_v12, %v46_v11  ;;  %vm49_vm4 = vcmp.eq.s32.totalorder %v43_v13, %v46_v11 }
   0x9   :  { %v10506_v14 = vsel %vm47_vm2, 1.0, %v10419_v8  ;;  %v10517_v15 = vsel %vm48_vm3, 1.0, %v10419_v8  ;;  %v52_v16 = vsel %vm49_vm4, 1.0, %v10419_v8  ;;  %vm7420_vm2 = vcmask 15360  }
   0xa   :  { %9636 = vmatmul.mubr.msk.f32.vlgmr.msra.gmra.mrb[0].mxu0 %vm53_vm1, %v10506_v14  ;;  %9649 = vmatmul.mubr.msk.f32.vlgmr.msra.gmra.mrb[0].mxu1 %vm53_vm1, %v10506_v14  ;;  %vm8782_vm3 = vcmask 58368   ;;  %vm9122_vm4 = vcmask 57344  }
   0xb   :  { %9638 = vmatprep.mubr.msk.f32.mxu0 %vm10418_vm0, %v10419_v8  ;;  %9651 = vmatprep.mubr.msk.f32.mxu1 %vm10418_vm0, %v10419_v8 }
   0xc   :  { %9658 = vmatpush3.msk.msra.mxu0 %vm240_vm5, %v9147_v17  ;;  %9663 = vmatpush3.msk.msra.mxu1 %vm240_vm5, %v9147_v17  ;;  %v9160_v17 = vld [vmem:[%s11506_s1 + $0x8] sm:$0xf] }
   0xd   :  { %9667 = vmatprep.subr.msk.mxu0 %vm240_vm5, %v10540_v18  ;;  %9672 = vmatprep.subr.msk.mxu1 %vm240_vm5, %v10540_v18 }
   0xe   :  { %9639 = vmatmul.mubr.msk.f32.gmra.mrb[2].mxu0 %vm53_vm1, %v10517_v15  ;;  %9652 = vmatmul.mubr.msk.f32.gmra.mrb[2].mxu1 %vm53_vm1, %v10517_v15 }
   0xf   :  { %9641 = vmatprep.mubr.msk.f32.mxu0 %vm10418_vm0, %v10419_v8  ;;  %9654 = vmatprep.mubr.msk.f32.mxu1 %vm10418_vm0, %v10419_v8 }
  0x12   :  { %9642 = vmatmul.mubr.msk.f32.gmra.mrb[4].mxu0 %vm53_vm1, %v52_v16  ;;  %9655 = vmatmul.mubr.msk.f32.gmra.mrb[4].mxu1 %vm53_vm1, %v52_v16 }
  0xdd   :  { %v10546_v19 = vpop.f32.mrb[0].mxu0  ;;  %v10548_v20 = vpop.f32.mrb[0].mxu1 }
  0xde   :  { %v9637_v21 = vpop.f32.mrb[1].mxu0  ;;  %v9650_v22 = vpop.f32.mrb[1].mxu1  ;;  %v230_v23 = vrot.slane %v10546_v19, 1  ;;  %v322_v24 = vrot.slane %v10548_v20, 1  ;;  %v570_v25 = vrot.slane %v10546_v19, 2  ;;  %v657_v26 = vrot.slane %v10548_v20, 2 }
  0xdf   :  { %v748_v27 = vrot.slane %v10546_v19, 3  ;;  %v835_v28 = vrot.slane %v10548_v20, 3  ;;  %v925_v29 = vrot.slane %v10546_v19, 4  ;;  %v1012_v30 = vrot.slane %v10548_v20, 4 }
  0xe0   :  { %v1103_v31 = vrot.slane %v10546_v19, 5  ;;  %v1190_v32 = vrot.slane %v10548_v20, 5  ;;  %v1281_v35 = vrot.slane %v10546_v19, 6  ;;  %v1368_v36 = vrot.slane %v10548_v20, 6 }
  0xe1   :  { %v10560_v33 = vpop.f32.mrb[2].mxu0  ;;  %v10562_v34 = vpop.f32.mrb[2].mxu1  ;;  %v1459_v37 = vrot.slane %v10546_v19, 7  ;;  %v1546_v38 = vrot.slane %v10548_v20, 7 }
  0xe2   :  { %v9640_v39 = vpop.f32.mrb[3].mxu0  ;;  %v9653_v40 = vpop.f32.mrb[3].mxu1  ;;  %v231_v41 = vrot.slane %v10560_v33, 1  ;;  %v323_v42 = vrot.slane %v10562_v34, 1  ;;  %v571_v43 = vrot.slane %v10560_v33, 2  ;;  %v658_v44 = vrot.slane %v10562_v34, 2 }
  0xe3   :  { %v749_v45 = vrot.slane %v10560_v33, 3  ;;  %v836_v46 = vrot.slane %v10562_v34, 3  ;;  %v926_v47 = vrot.slane %v10560_v33, 4  ;;  %v1013_v48 = vrot.slane %v10562_v34, 4 }
  0xe4   :  { %v232_v49 = vsel %vm229_vm6, %v230_v23, %v231_v41  ;;  %v324_v50 = vsel %vm229_vm6, %v322_v24, %v323_v42  ;;  %v10579_v51 = vsel %vm569_vm7, %v570_v25, %v571_v43  ;;  %v10582_v52 = vsel %vm569_vm7, %v657_v26, %v658_v44 }
  0xe5   :  { %v139_v53 = vpop.f32.mrb[4].mxu0  ;;  %v219_v54 = vpop.f32.mrb[4].mxu1  ;;  %9659 = vmatprep.mubr.msk.f32.mxu0 %vm235_vm8, %v232_v49  ;;  %9664 = vmatprep.mubr.msk.f32.mxu1 %vm235_vm8, %v324_v50  ;;  %v10587_v55 = vsel %vm747_vm9, %v748_v27, %v749_v45  ;;  %v10590_v56 = vsel %vm747_vm9, %v835_v28, %v836_v46  ;;  %v10593_v57 = vsel %vm240_vm5, %v925_v29, %v926_v47  ;;  %v1104_v58 = vrot.slane %v10560_v33, 5 }
  0xe6   :  { %v9643_v59 = vpop.f32.mrb[5].mxu0  ;;  %v9656_v60 = vpop.f32.mrb[5].mxu1  ;;  %v233_v61 = vrot.slane %v139_v53, 1  ;;  %v325_v62 = vrot.slane %v219_v54, 1  ;;  %v573_v63 = vrot.slane %v139_v53, 2  ;;  %v660_v0 = vrot.slane %v219_v54, 2 }
  0xe7   :  { %v751_v1 = vrot.slane %v139_v53, 3  ;;  %v838_v2 = vrot.slane %v219_v54, 3  ;;  %v10597_v3 = vsel %vm240_vm5, %v1012_v30, %v1013_v48  ;;  %v928_v6 = vrot.slane %v139_v53, 4 }
  0xe8   :  { %v234_v11 = vsel %vm229_vm6, %v231_v41, %v233_v61  ;;  %v326_v12 = vsel %vm229_vm6, %v323_v42, %v325_v62  ;;  %v574_v13 = vsel %vm569_vm7, %v571_v43, %v573_v63  ;;  %v661_v16 = vsel %vm569_vm7, %v658_v44, %v660_v0 }
  0xe9   :  { %9660 = vmatmul.mubr.msk.f32.vlgmr.msra.gmra.mrb[6].mxu0 %vm235_vm8, %v234_v11  ;;  %9665 = vmatmul.mubr.msk.f32.vlgmr.msra.gmra.mrb[6].mxu1 %vm235_vm8, %v326_v12  ;;  %v752_v21 = vsel %vm747_vm9, %v749_v45, %v751_v1  ;;  %v839_v22 = vsel %vm747_vm9, %v836_v46, %v838_v2  ;;  %v929_v23 = vsel %vm240_vm5, %v926_v47, %v928_v6  ;;  %v1015_v24 = vrot.slane %v219_v54, 4 }
  0xea   :  { %9669 = vmatprep.mubr.msk.f32.mxu0 %vm235_vm8, %v10546_v19  ;;  %9674 = vmatprep.mubr.msk.f32.mxu1 %vm235_vm8, %v10548_v20  ;;  %v1105_v25 = vsel %vm1102_vm10, %v1103_v31, %v1104_v58  ;;  %v1191_v26 = vrot.slane %v10562_v34, 5  ;;  %v1106_v27 = vrot.slane %v139_v53, 5  ;;  %v1193_v28 = vrot.slane %v219_v54, 5  ;;  %v9167_v19 = vld [vmem:[%s11506_s1 + $0xc] sm:$0xf] }
  0xeb   :  { %9668 = vmatpush3.msk.msra.mxu0 %vm240_vm5, %v10540_v18  ;;  %9673 = vmatpush3.msk.msra.mxu1 %vm240_vm5, %v10540_v18  ;;  %v1016_v29 = vsel %vm240_vm5, %v1013_v48, %v1015_v24  ;;  %v1282_v30 = vrot.slane %v10560_v33, 6  ;;  %v1369_v39 = vrot.slane %v10562_v34, 6  ;;  %v1284_v40 = vrot.slane %v139_v53, 6  ;;  %v9174_v20 = vld [vmem:[%s11506_s1 + $0x10] sm:$0xf] }
  0xec   :  { %9677 = vmatprep.subr.msk.mxu0 %vm240_vm5, %v9160_v17  ;;  %9682 = vmatprep.subr.msk.mxu1 %vm240_vm5, %v9160_v17  ;;  %v1192_v31 = vsel %vm1102_vm10, %v1190_v32, %v1191_v26  ;;  %v1107_v41 = vsel %vm1102_vm10, %v1104_v58, %v1106_v27  ;;  %v1194_v42 = vsel %vm1102_vm10, %v1191_v26, %v1193_v28  ;;  %v1371_v18 = vrot.slane %v219_v54, 6 }
  0xed   :  { %v1283_v43 = vsel %vm1280_vm11, %v1281_v35, %v1282_v30  ;;  %v1370_v44 = vsel %vm1280_vm11, %v1368_v36, %v1369_v39  ;;  %v1285_v45 = vsel %vm1280_vm11, %v1282_v30, %v1284_v40  ;;  %v1460_v46 = vrot.slane %v10560_v33, 7 }
  0xee   :  { %v1372_v47 = vsel %vm1280_vm11, %v1369_v39, %v1371_v18  ;;  %v1547_v32 = vrot.slane %v10562_v34, 7  ;;  %v1462_v48 = vrot.slane %v139_v53, 7  ;;  %v1549_v49 = vrot.slane %v219_v54, 7 }
  0xef   :  { %v1461_v50 = vsel %vm1458_vm12, %v1459_v37, %v1460_v46  ;;  %v9195_v37 = vld [vmem:[%s11506_s1 + $0x1c] sm:$0xf] }
  0xf0   :  { %v1548_v35 = vsel %vm1458_vm12, %v1546_v38, %v1547_v32  ;;  %v1463_v36 = vsel %vm1458_vm12, %v1460_v46, %v1462_v48  ;;  %v1550_v58 = vsel %vm1458_vm12, %v1547_v32, %v1549_v49  ;;  %v1684_v48 = vsub.s32 0, %v10495_v9  ;;  %v10742_v49 = vld [vmem:[%s11510_s5] sm:$0x1f] }
  0xf1   :  { %9670 = vmatmul.mubr.msk.f32.vlgmr.msra.gmra.mrb[6].mxu0 %vm235_vm8, %v10560_v33  ;;  %9675 = vmatmul.mubr.msk.f32.vlgmr.msra.gmra.mrb[6].mxu1 %vm235_vm8, %v10562_v34  ;;  %v9181_v33 = vld [vmem:[%s11506_s1 + $0x14] sm:$0xf]  ;;  %v9188_v34 = vld [vmem:[%s11506_s1 + $0x18] sm:$0xf] }
  0xf2   :  { %9679 = vmatprep.mubr.msk.f32.mxu0 %vm235_vm8, %v10579_v51  ;;  %9684 = vmatprep.mubr.msk.f32.mxu1 %vm235_vm8, %v10582_v52 }
  0xf3   :  { %9678 = vmatpush3.msk.msra.mxu0 %vm240_vm5, %v9160_v17  ;;  %9683 = vmatpush3.msk.msra.mxu1 %vm240_vm5, %v9160_v17 }
  0xf4   :  { %9687 = vmatprep.subr.msk.mxu0 %vm240_vm5, %v9167_v19  ;;  %9692 = vmatprep.subr.msk.mxu1 %vm240_vm5, %v9167_v19 }
  0xf9   :  { %9680 = vmatmul.mubr.msk.f32.vlgmr.msra.gmra.mrb[6].mxu0 %vm235_vm8, %v574_v13  ;;  %9685 = vmatmul.mubr.msk.f32.vlgmr.msra.gmra.mrb[6].mxu1 %vm235_vm8, %v661_v16 }
  0xfa   :  { %9689 = vmatprep.mubr.msk.f32.mxu0 %vm235_vm8, %v10587_v55  ;;  %9694 = vmatprep.mubr.msk.f32.mxu1 %vm235_vm8, %v10590_v56 }
  0xfb   :  { %9688 = vmatpush3.msk.msra.mxu0 %vm240_vm5, %v9167_v19  ;;  %9693 = vmatpush3.msk.msra.mxu1 %vm240_vm5, %v9167_v19 }
  0xfc   :  { %9697 = vmatprep.subr.msk.mxu0 %vm240_vm5, %v9174_v20  ;;  %9702 = vmatprep.subr.msk.mxu1 %vm240_vm5, %v9174_v20 }
 0x101   :  { %9690 = vmatmul.mubr.msk.f32.vlgmr.msra.gmra.mrb[6].mxu0 %vm235_vm8, %v752_v21  ;;  %9695 = vmatmul.mubr.msk.f32.vlgmr.msra.gmra.mrb[6].mxu1 %vm235_vm8, %v839_v22 }
 0x102   :  { %9699 = vmatprep.mubr.msk.f32.mxu0 %vm235_vm8, %v10593_v57  ;;  %9704 = vmatprep.mubr.msk.f32.mxu1 %vm235_vm8, %v10597_v3 }
 0x103   :  { %9698 = vmatpush3.msk.msra.mxu0 %vm240_vm5, %v9174_v20  ;;  %9703 = vmatpush3.msk.msra.mxu1 %vm240_vm5, %v9174_v20 }
 0x104   :  { %9707 = vmatprep.subr.msk.mxu0 %vm240_vm5, %v9181_v33  ;;  %9712 = vmatprep.subr.msk.mxu1 %vm240_vm5, %v9181_v33 }
 0x109   :  { %9700 = vmatmul.mubr.msk.f32.vlgmr.msra.gmra.mrb[6].mxu0 %vm235_vm8, %v929_v23  ;;  %9705 = vmatmul.mubr.msk.f32.vlgmr.msra.gmra.mrb[6].mxu1 %vm235_vm8, %v1016_v29 }
 0x10a   :  { %9709 = vmatprep.mubr.msk.f32.mxu0 %vm235_vm8, %v1105_v25  ;;  %9714 = vmatprep.mubr.msk.f32.mxu1 %vm235_vm8, %v1192_v31 }
 0x10b   :  { %9708 = vmatpush3.msk.msra.mxu0 %vm240_vm5, %v9181_v33  ;;  %9713 = vmatpush3.msk.msra.mxu1 %vm240_vm5, %v9181_v33 }
 0x10c   :  { %9717 = vmatprep.subr.msk.mxu0 %vm240_vm5, %v9188_v34  ;;  %9722 = vmatprep.subr.msk.mxu1 %vm240_vm5, %v9188_v34 }
 0x111   :  { %9710 = vmatmul.mubr.msk.f32.vlgmr.msra.gmra.mrb[6].mxu0 %vm235_vm8, %v1107_v41  ;;  %9715 = vmatmul.mubr.msk.f32.vlgmr.msra.gmra.mrb[6].mxu1 %vm235_vm8, %v1194_v42 }
 0x112   :  { %9719 = vmatprep.mubr.msk.f32.mxu0 %vm235_vm8, %v1283_v43  ;;  %9724 = vmatprep.mubr.msk.f32.mxu1 %vm235_vm8, %v1370_v44 }
 0x113   :  { %9718 = vmatpush3.msk.msra.mxu0 %vm240_vm5, %v9188_v34  ;;  %9723 = vmatpush3.msk.msra.mxu1 %vm240_vm5, %v9188_v34 }
 0x114   :  { %9727 = vmatprep.subr.msk.mxu0 %vm240_vm5, %v9195_v37  ;;  %9732 = vmatprep.subr.msk.mxu1 %vm240_vm5, %v9195_v37 }
 0x119   :  { %9720 = vmatmul.mubr.msk.f32.vlgmr.msra.gmra.mrb[6].mxu0 %vm235_vm8, %v1285_v45  ;;  %9725 = vmatmul.mubr.msk.f32.vlgmr.msra.gmra.mrb[6].mxu1 %vm235_vm8, %v1372_v47 }
 0x11a   :  { %9729 = vmatprep.mubr.msk.f32.mxu0 %vm235_vm8, %v1461_v50  ;;  %9734 = vmatprep.mubr.msk.f32.mxu1 %vm235_vm8, %v1548_v35  ;;  %v10747_v50 = vld [vmem:[%s11511_s6] sm:$0x1f]  ;;  %v1685_v35 = vrot.slane %v10742_v49, %v1684_v48 }
 0x11b   :  { %9728 = vmatpush3.msk.msra.mxu0 %vm240_vm5, %v9195_v37  ;;  %9733 = vmatpush3.msk.msra.mxu1 %vm240_vm5, %v9195_v37 }
 0x11c   :  { %10239 = vmatprep.subr.bf16.mxu0 %v10417_v4  ;;  %10242 = vmatprep.subr.bf16.mxu1 %v10417_v4 }
 0x121   :  { %9730 = vmatmul.mubr.msk.f32.vlgmr.msra.gmra.mrb[6].mxu0 %vm235_vm8, %v1463_v36  ;;  %9735 = vmatmul.mubr.msk.f32.vlgmr.msra.gmra.mrb[6].mxu1 %vm235_vm8, %v1550_v58  ;;  %v1693_v58 = vrot.slane %v10747_v50, %v1684_v48 }
 0x122   :  { %9741 = vmatprep.mubr.msk.f32.mxu0 %vm10418_vm0, %v10419_v8  ;;  %9748 = vmatprep.mubr.msk.f32.mxu1 %vm10418_vm0, %v10419_v8 }
 0x1f4   :  { %v9731_v38 = vpop.f32.mrb[6].mxu0  ;;  %v9736_v51 = vpop.f32.mrb[6].mxu1 }
 0x1f5   :  { %v1638_v52 = vsel %vm1634_vm13, %v9731_v38, 0.0  ;;  %v1639_v53 = vsel %vm1634_vm13, %v9736_v51, 0.0  ;;  %v1537_v54 = vpop.f32.mrb[7].mxu0  ;;  %v1621_v55 = vpop.f32.mrb[7].mxu1 }
 0x1f6   :  { %v1640_v56 = vadd.f32 %v1639_v53, %v1638_v52  ;;  %v1635_v57 = vsel %vm1634_vm13, %v1537_v54, 0.0  ;;  %v1636_v59 = vsel %vm1634_vm13, %v1621_v55, 0.0  ;;  %v1702_v53 = vmul.u32 2, %v10495_v9 }
 0x1f7   :  { %v1637_v60 = vadd.f32 %v1636_v59, %v1635_v57 }
 0x1f8   :  { %v1642_v61 = vsel %vm1634_vm13, %v1640_v56, 0.0  ;;  %vm1703_vm14 = vcmp.eq.s32.totalorder %v10497_v10, %v1702_v53 }
 0x1f9   :  { %v1641_v62 = vsel %vm1634_vm13, %v1637_v60, 0.0 }
 0x1fa   :  { %v1643_v63 = vadd.f32 %v1642_v61, %v1641_v62 }
 0x1fc   :  { %v1644_v0 = vrot.slane %v1643_v63, 4 }
 0x1fe   :  { %v1645_v1 = vadd.f32 %v1644_v0, %v1643_v63  ;;  %v1705_v63 = vadd.s32 1, %v1702_v53 }
 0x200   :  { %v1646_v2 = vrot.slane %v1645_v1, 2  ;;  %vm1706_vm15 = vcmp.eq.s32.totalorder %v10497_v10, %v1705_v63 }
 0x202   :  { %v1647_v3 = vadd.f32 %v1646_v2, %v1645_v1  ;;  %v10754_v2 = vsel %vm1703_vm14, 1.0, %v10419_v8 }
 0x204   :  { %v1648_v6 = vrot.slane %v1647_v3, 1 }
 0x206   :  { %v1649_v11 = vadd.f32 %v1648_v6, %v1647_v3  ;;  %v10764_v3 = vsel %vm1706_vm15, 1.0, %v10419_v8 }
 0x208   :  { %v1651_v12 = vmul.f32 0.03125, %v1649_v11 }
 0x20a   :  { %v1652_v13 = vsub.f32 %v1537_v54, %v1651_v12  ;;  %v1653_v16 = vsub.f32 %v9731_v38, %v1651_v12  ;;  %v1654_v17 = vsub.f32 %v1621_v55, %v1651_v12  ;;  %v1655_v21 = vsub.f32 %v9736_v51, %v1651_v12 }
 0x20c   :  { %v1656_v22 = vmul.f32 %v1652_v13, %v1652_v13  ;;  %v1657_v23 = vmul.f32 %v1653_v16, %v1653_v16  ;;  %v1658_v24 = vmul.f32 %v1654_v17, %v1654_v17  ;;  %v1659_v25 = vmul.f32 %v1655_v21, %v1655_v21 }
 0x20e   :  { %v1660_v26 = vsel %vm1634_vm13, %v1656_v22, 0.0  ;;  %v1661_v27 = vsel %vm1634_vm13, %v1658_v24, 0.0  ;;  %v1663_v28 = vsel %vm1634_vm13, %v1657_v23, 0.0  ;;  %v1664_v29 = vsel %vm1634_vm13, %v1659_v25, 0.0 }
 0x20f   :  { %v1662_v30 = vadd.f32 %v1661_v27, %v1660_v26  ;;  %v1665_v39 = vadd.f32 %v1664_v29, %v1663_v28 }
 0x211   :  { %v1666_v40 = vsel %vm1634_vm13, %v1662_v30, 0.0  ;;  %v1667_v31 = vsel %vm1634_vm13, %v1665_v39, 0.0  ;;  %v9214_v39 = vld [vmem:[%s11507_s2 + $0x8] sm:$0xff] }
 0x212   :  { %v1668_v41 = vadd.f32 %v1667_v31, %v1666_v40 }
 0x214   :  { %v1669_v42 = vrot.slane %v1668_v41, 4 }
 0x216   :  { %v1670_v18 = vadd.f32 %v1669_v42, %v1668_v41 }
 0x218   :  { %v1671_v43 = vrot.slane %v1670_v18, 2 }
 0x21a   :  { %v1672_v44 = vadd.f32 %v1671_v43, %v1670_v18 }
 0x21c   :  { %v1673_v45 = vrot.slane %v1672_v44, 1 }
 0x21e   :  { %v1674_v46 = vadd.f32 %v1673_v45, %v1672_v44 }
 0x220   :  { %v1675_v47 = vmul.f32 0.03125, %v1674_v46 }
 0x222   :  { %v1676_v32 = vadd.f32 1e-05, %v1675_v47 }
 0x224   :  { %10381 = vrsqrt.f32 %v1676_v32 }
 0x22e   :  { %v10382_v36 = vpop.eup %10381 }
 0x22f   :  { %v1678_v19 = vmul.f32 %v10382_v36, %v1652_v13  ;;  %v1680_v20 = vmul.f32 %v10382_v36, %v1654_v17  ;;  %v1679_v33 = vmul.f32 %v10382_v36, %v1653_v16  ;;  %v1681_v34 = vmul.f32 %v10382_v36, %v1655_v21 }
 0x231   :  { %v1688_v37 = vmul.f32 %v1685_v35, %v1680_v20  ;;  %v1686_v38 = vmul.f32 %v1685_v35, %v1678_v19  ;;  %v1687_v51 = vmul.f32 %v1685_v35, %v1679_v33  ;;  %v1689_v52 = vmul.f32 %v1685_v35, %v1681_v34  ;;  %v2432_v35 = vld [vmem:[%s11507_s2] sm:$0xff] }
 0x233   :  { %v1696_v54 = vadd.f32 %v1693_v58, %v1688_v37  ;;  %v1694_v55 = vadd.f32 %v1693_v58, %v1686_v38  ;;  %v1695_v56 = vadd.f32 %v1693_v58, %v1687_v51  ;;  %v1697_v57 = vadd.f32 %v1693_v58, %v1689_v52 }
 0x235   :  { %v1700_v59 = vmax.f32 %v1696_v54, 0.0  ;;  %v1698_v60 = vmax.f32 %v1694_v55, 0.0  ;;  %v1699_v61 = vmax.f32 %v1695_v56, 0.0  ;;  %v1701_v62 = vmax.f32 %v1697_v57, 0.0 }
 0x237   :  { %v10240_v0 = vpack.c.bf16 %v1699_v61, %v1698_v60  ;;  %v10243_v1 = vpack.c.bf16 %v1701_v62, %v1700_v59 }
 0x239   :  { %10241 = vmatpush3.bf16.msra.mxu0 %v10240_v0  ;;  %10244 = vmatpush3.bf16.msra.mxu1 %v10243_v1 }
 0x23a   :  { %10245 = vmatprep.subr.bf16.mxu0 %v10417_v4  ;;  %10248 = vmatprep.subr.bf16.mxu1 %v10417_v4 }
 0x23c   :  { %9742 = vmatmul.mubr.msk.f32.vlgmr.msra.gmra.mrb[8].mxu0 %vm53_vm1, %v10754_v2  ;;  %9749 = vmatmul.mubr.msk.f32.vlgmr.msra.gmra.mrb[8].mxu1 %vm53_vm1, %v10754_v2 }
 0x23d   :  { %10247 = vmatpush3.bf16.msra.mxu0 %v10240_v0  ;;  %10250 = vmatpush3.bf16.msra.mxu1 %v10243_v1 }
 0x23e   :  { %9755 = vmatprep.mubr.msk.f32.mxu0 %vm10418_vm0, %v10419_v8  ;;  %9762 = vmatprep.mubr.msk.f32.mxu1 %vm10418_vm0, %v10419_v8 }
 0x23f   :  { %10251 = vmatprep.subr.bf16.mxu0 %v10417_v4  ;;  %10254 = vmatprep.subr.bf16.mxu1 %v10417_v4 }
 0x240   :  { %9756 = vmatmul.mubr.msk.f32.vlgmr.msra.gmra.mrb[10].mxu0 %vm53_vm1, %v10764_v3  ;;  %9763 = vmatmul.mubr.msk.f32.vlgmr.msra.gmra.mrb[10].mxu1 %vm53_vm1, %v10764_v3 }
 0x241   :  { %10253 = vmatpush3.bf16.msra.mxu0 %v10484_v5  ;;  %10256 = vmatpush3.bf16.msra.mxu1 %v10489_v7 }
 0x242   :  { %9769 = vmatprep.mubr.msk.f32.mxu0 %vm10418_vm0, %v10419_v8  ;;  %9776 = vmatprep.mubr.msk.f32.mxu1 %vm10418_vm0, %v10419_v8 }
 0x243   :  { %10257 = vmatprep.subr.bf16.mxu0 %v10417_v4  ;;  %10260 = vmatprep.subr.bf16.mxu1 %v10417_v4 }
 0x244   :  { %9770 = vmatmul.mubr.msk.f32.vlgmr.msra.gmra.mrb[12].mxu0 %vm53_vm1, %v10754_v2  ;;  %9777 = vmatmul.mubr.msk.f32.vlgmr.msra.gmra.mrb[12].mxu1 %vm53_vm1, %v10754_v2 }
 0x245   :  { %10259 = vmatpush3.bf16.msra.mxu0 %v10484_v5  ;;  %10262 = vmatpush3.bf16.msra.mxu1 %v10489_v7 }
 0x246   :  { %9783 = vmatprep.mubr.msk.f32.mxu0 %vm10418_vm0, %v10419_v8  ;;  %9790 = vmatprep.mubr.msk.f32.mxu1 %vm10418_vm0, %v10419_v8 }
 0x248   :  { %9784 = vmatmul.mubr.msk.f32.vlgmr.msra.gmra.mrb[14].mxu0 %vm53_vm1, %v10764_v3  ;;  %9791 = vmatmul.mubr.msk.f32.vlgmr.msra.gmra.mrb[14].mxu1 %vm53_vm1, %v10764_v3  ;;  %vm5639_vm1 = vcmask 60416  }
 0x249   :  { %9795 = vmatprep.mubr.msk.f32.mxu0 %vm1634_vm13, %v10506_v14  ;;  %9800 = vmatprep.mubr.msk.f32.mxu1 %vm1634_vm13, %v10506_v14 }
 0x30f   :  { %v1777_v4 = vpop.f32.mrb[8].mxu0  ;;  %v1847_v5 = vpop.f32.mrb[8].mxu1 }
 0x310   :  { %v9743_v7 = vpop.f32.mrb[9].mxu0  ;;  %v9750_v10 = vpop.f32.mrb[9].mxu1 }
 0x313   :  { %v1920_v6 = vpop.f32.mrb[10].mxu0  ;;  %v1990_v11 = vpop.f32.mrb[10].mxu1 }
 0x314   :  { %v1994_v12 = vmax.f32 %v1777_v4, %v1920_v6  ;;  %v1995_v13 = vmax.f32 %v1847_v5, %v1990_v11  ;;  %v9757_v16 = vpop.f32.mrb[11].mxu0  ;;  %v9764_v17 = vpop.f32.mrb[11].mxu1 }
 0x315   :  { %v9219_v17 = vld [vmem:[%s11507_s2 + $0x10] sm:$0xff] }
 0x316   :  { %9793 = vmatprep.subr.mxu0 %v1994_v12  ;;  %9798 = vmatprep.subr.mxu1 %v1995_v13 }
 0x317   :  { %9794 = vmatpush3.msra.mxu0 %v1994_v12  ;;  %9799 = vmatpush3.msra.mxu1 %v1995_v13  ;;  %v2062_v21 = vpop.f32.mrb[12].mxu0  ;;  %v2132_v22 = vpop.f32.mrb[12].mxu1 }
 0x318   :  { %9796 = vmatmul.mubr.msk.f32.vlgmr.msra.gmra.mrb[16].mxu0 %vm1634_vm13, %v10517_v15  ;;  %9801 = vmatmul.mubr.msk.f32.vlgmr.msra.gmra.mrb[16].mxu1 %vm1634_vm13, %v10517_v15  ;;  %v9771_v23 = vpop.f32.mrb[13].mxu0  ;;  %v9778_v24 = vpop.f32.mrb[13].mxu1 }
 0x319   :  { %9803 = vmatprep.subr.mxu0 %v10419_v8  ;;  %9808 = vmatprep.subr.mxu1 %v10419_v8  ;;  %v9222_v24 = vld [vmem:[%s11507_s2 + $0x18] sm:$0xff] }
 0x31a   :  { %9805 = vmatprep.mubr.msk.f32.mxu0 %vm10418_vm0, %v10419_v8  ;;  %9810 = vmatprep.mubr.msk.f32.mxu1 %vm10418_vm0, %v10419_v8 }
 0x31b   :  { %v2202_v25 = vpop.f32.mrb[14].mxu0  ;;  %v2272_v26 = vpop.f32.mrb[14].mxu1  ;;  %9804 = vmatpush3.msra.mxu0 %v9214_v39  ;;  %9809 = vmatpush3.msra.mxu1 %v9214_v39 }
 0x31c   :  { %v10812_v27 = vmax.f32 %v2062_v21, %v2202_v25  ;;  %v10814_v28 = vmax.f32 %v2132_v22, %v2272_v26  ;;  %v9785_v29 = vpop.f32.mrb[15].mxu0  ;;  %v9792_v30 = vpop.f32.mrb[15].mxu1  ;;  %9813 = vmatprep.subr.mxu0 %v10419_v8  ;;  %9818 = vmatprep.subr.mxu1 %v10419_v8  ;;  %v9225_v25 = vld [vmem:[%s11507_s2 + $0x20] sm:$0xff]  ;;  %v9228_v26 = vld [vmem:[%s11507_s2 + $0x28] sm:$0xff] }
 0x31d   :  { %v9231_v29 = vld [vmem:[%s11507_s2 + $0x30] sm:$0xff]  ;;  %v9234_v30 = vld [vmem:[%s11507_s2 + $0x38] sm:$0xff] }
 0x3eb   :  { %v9797_v40 = vpop.f32.mrb[16].mxu0  ;;  %v9802_v31 = vpop.f32.mrb[16].mxu1 }
 0x3ec   :  { %v2348_v41 = vpop.f32.mrb[17].mxu0  ;;  %v2423_v42 = vpop.f32.mrb[17].mxu1  ;;  %v2438_v18 = vrot.slane %v9797_v40, 1  ;;  %v2515_v43 = vrot.slane %v9802_v31, 1  ;;  %v2736_v44 = vrot.slane %v9797_v40, 2  ;;  %v2811_v45 = vrot.slane %v9802_v31, 2 }
 0x3ed   :  { %v2437_v46 = vrot.slane %v2348_v41, 1  ;;  %v2514_v47 = vrot.slane %v2423_v42, 1  ;;  %v2735_v32 = vrot.slane %v2348_v41, 2  ;;  %v2810_v48 = vrot.slane %v2423_v42, 2 }
 0x3ee   :  { %v2889_v36 = vrot.slane %v2348_v41, 3  ;;  %v2890_v58 = vrot.slane %v9797_v40, 3  ;;  %v2964_v19 = vrot.slane %v2423_v42, 3  ;;  %v2965_v20 = vrot.slane %v9802_v31, 3 }
 0x3ef   :  { %v2439_v33 = vsel %vm229_vm6, %v2437_v46, %v2438_v18  ;;  %v2516_v34 = vsel %vm229_vm6, %v2514_v47, %v2515_v43  ;;  %v2737_v37 = vsel %vm569_vm7, %v2735_v32, %v2736_v44  ;;  %v2812_v38 = vsel %vm569_vm7, %v2810_v48, %v2811_v45 }
 0x3f0   :  { %9806 = vmatmul.mubr.msk.f32.vlgmr.msra.gmra.mrb[18].mxu0 %vm1634_vm13, %v2439_v33  ;;  %9811 = vmatmul.mubr.msk.f32.vlgmr.msra.gmra.mrb[18].mxu1 %vm1634_vm13, %v2516_v34  ;;  %v2891_v51 = vsel %vm747_vm9, %v2889_v36, %v2890_v58  ;;  %v2966_v52 = vsel %vm747_vm9, %v2964_v19, %v2965_v20  ;;  %v3043_v53 = vrot.slane %v2348_v41, 4  ;;  %v3044_v54 = vrot.slane %v9797_v40, 4 }
 0x3f1   :  { %9814 = vmatpush3.msra.mxu0 %v2432_v35  ;;  %9819 = vmatpush3.msra.mxu1 %v2432_v35  ;;  %v3118_v55 = vrot.slane %v2423_v42, 4  ;;  %v3119_v56 = vrot.slane %v9802_v31, 4  ;;  %v3197_v57 = vrot.slane %v2348_v41, 5  ;;  %v3198_v59 = vrot.slane %v9797_v40, 5 }
 0x3f2   :  { %9815 = vmatprep.mubr.msk.f32.mxu0 %vm10418_vm0, %v10419_v8  ;;  %9820 = vmatprep.mubr.msk.f32.mxu1 %vm10418_vm0, %v10419_v8  ;;  %v3045_v60 = vsel %vm240_vm5, %v3043_v53, %v3044_v54  ;;  %v3272_v61 = vrot.slane %v2423_v42, 5  ;;  %v3273_v62 = vrot.slane %v9802_v31, 5  ;;  %v3351_v63 = vrot.slane %v2348_v41, 6 }
 0x3f3   :  { %9823 = vmatprep.subr.mxu0 %v10419_v8  ;;  %9828 = vmatprep.subr.mxu1 %v10419_v8  ;;  %v3120_v0 = vsel %vm240_vm5, %v3118_v55, %v3119_v56  ;;  %v3199_v1 = vsel %vm1102_vm10, %v3197_v57, %v3198_v59  ;;  %v3352_v4 = vrot.slane %v9797_v40, 6  ;;  %v3426_v5 = vrot.slane %v2423_v42, 6 }
 0x3f4   :  { %v3274_v7 = vsel %vm1102_vm10, %v3272_v61, %v3273_v62  ;;  %v3427_v10 = vrot.slane %v9802_v31, 6  ;;  %v3505_v6 = vrot.slane %v2348_v41, 7  ;;  %v3506_v11 = vrot.slane %v9797_v40, 7 }
 0x3f5   :  { %v3353_v12 = vsel %vm1280_vm11, %v3351_v63, %v3352_v4  ;;  %v3580_v13 = vrot.slane %v2423_v42, 7  ;;  %v3581_v16 = vrot.slane %v9802_v31, 7  ;;  %v3690_v61 = vsub.s32 1, %v10495_v9 }
 0x3f6   :  { %v3428_v21 = vsel %vm1280_vm11, %v3426_v5, %v3427_v10  ;;  %v3507_v22 = vsel %vm1458_vm12, %v3505_v6, %v3506_v11 }
 0x3f7   :  { %v3582_v23 = vsel %vm1458_vm12, %v3580_v13, %v3581_v16  ;;  %v3691_v62 = vrot.slane %v10742_v49, %v3690_v61  ;;  %v3697_v4 = vrot.slane %v10747_v50, %v3690_v61  ;;  %v9256_v61 = vld [vmem:[%s11508_s3 + $0x10] sm:$0xff] }
 0x3f8   :  { %9816 = vmatmul.mubr.msk.f32.vlgmr.msra.gmra.mrb[18].mxu0 %vm1634_vm13, %v2348_v41  ;;  %9821 = vmatmul.mubr.msk.f32.vlgmr.msra.gmra.mrb[18].mxu1 %vm1634_vm13, %v2423_v42 }
 0x3f9   :  { %9824 = vmatpush3.msra.mxu0 %v9219_v17  ;;  %9829 = vmatpush3.msra.mxu1 %v9219_v17 }
 0x3fa   :  { %9825 = vmatprep.mubr.msk.f32.mxu0 %vm10418_vm0, %v10419_v8  ;;  %9830 = vmatprep.mubr.msk.f32.mxu1 %vm10418_vm0, %v10419_v8 }
 0x3fb   :  { %9833 = vmatprep.subr.mxu0 %v10419_v8  ;;  %9838 = vmatprep.subr.mxu1 %v10419_v8 }
 0x400   :  { %9826 = vmatmul.mubr.msk.f32.vlgmr.msra.gmra.mrb[18].mxu0 %vm1634_vm13, %v2737_v37  ;;  %9831 = vmatmul.mubr.msk.f32.vlgmr.msra.gmra.mrb[18].mxu1 %vm1634_vm13, %v2812_v38 }
 0x401   :  { %9834 = vmatpush3.msra.mxu0 %v9222_v24  ;;  %9839 = vmatpush3.msra.mxu1 %v9222_v24 }
 0x402   :  { %9835 = vmatprep.mubr.msk.f32.mxu0 %vm10418_vm0, %v10419_v8  ;;  %9840 = vmatprep.mubr.msk.f32.mxu1 %vm10418_vm0, %v10419_v8 }
 0x403   :  { %9843 = vmatprep.subr.mxu0 %v10419_v8  ;;  %9848 = vmatprep.subr.mxu1 %v10419_v8 }
 0x408   :  { %9836 = vmatmul.mubr.msk.f32.vlgmr.msra.gmra.mrb[18].mxu0 %vm1634_vm13, %v2891_v51  ;;  %9841 = vmatmul.mubr.msk.f32.vlgmr.msra.gmra.mrb[18].mxu1 %vm1634_vm13, %v2966_v52 }
 0x409   :  { %9844 = vmatpush3.msra.mxu0 %v9225_v25  ;;  %9849 = vmatpush3.msra.mxu1 %v9225_v25 }
 0x40a   :  { %9845 = vmatprep.mubr.msk.f32.mxu0 %vm10418_vm0, %v10419_v8  ;;  %9850 = vmatprep.mubr.msk.f32.mxu1 %vm10418_vm0, %v10419_v8 }
 0x40b   :  { %9853 = vmatprep.subr.mxu0 %v10419_v8  ;;  %9858 = vmatprep.subr.mxu1 %v10419_v8 }
 0x410   :  { %9846 = vmatmul.mubr.msk.f32.vlgmr.msra.gmra.mrb[18].mxu0 %vm1634_vm13, %v3045_v60  ;;  %9851 = vmatmul.mubr.msk.f32.vlgmr.msra.gmra.mrb[18].mxu1 %vm1634_vm13, %v3120_v0 }
 0x411   :  { %9854 = vmatpush3.msra.mxu0 %v9228_v26  ;;  %9859 = vmatpush3.msra.mxu1 %v9228_v26 }
 0x412   :  { %9855 = vmatprep.mubr.msk.f32.mxu0 %vm10418_vm0, %v10419_v8  ;;  %9860 = vmatprep.mubr.msk.f32.mxu1 %vm10418_vm0, %v10419_v8 }
 0x413   :  { %9863 = vmatprep.subr.mxu0 %v10419_v8  ;;  %9868 = vmatprep.subr.mxu1 %v10419_v8 }
 0x418   :  { %9856 = vmatmul.mubr.msk.f32.vlgmr.msra.gmra.mrb[18].mxu0 %vm1634_vm13, %v3199_v1  ;;  %9861 = vmatmul.mubr.msk.f32.vlgmr.msra.gmra.mrb[18].mxu1 %vm1634_vm13, %v3274_v7 }
 0x419   :  { %9864 = vmatpush3.msra.mxu0 %v9231_v29  ;;  %9869 = vmatpush3.msra.mxu1 %v9231_v29 }
 0x41a   :  { %9865 = vmatprep.mubr.msk.f32.mxu0 %vm10418_vm0, %v10419_v8  ;;  %9870 = vmatprep.mubr.msk.f32.mxu1 %vm10418_vm0, %v10419_v8 }
 0x41b   :  { %9873 = vmatprep.subr.mxu0 %v10419_v8  ;;  %9878 = vmatprep.subr.mxu1 %v10419_v8 }
 0x420   :  { %9866 = vmatmul.mubr.msk.f32.vlgmr.msra.gmra.mrb[18].mxu0 %vm1634_vm13, %v3353_v12  ;;  %9871 = vmatmul.mubr.msk.f32.vlgmr.msra.gmra.mrb[18].mxu1 %vm1634_vm13, %v3428_v21 }
 0x421   :  { %9874 = vmatpush3.msra.mxu0 %v9234_v30  ;;  %9879 = vmatpush3.msra.mxu1 %v9234_v30 }
 0x422   :  { %9875 = vmatprep.mubr.msk.f32.mxu0 %vm10418_vm0, %v10419_v8  ;;  %9880 = vmatprep.mubr.msk.f32.mxu1 %vm10418_vm0, %v10419_v8 }
 0x423   :  { %9883 = vmatprep.subr.mxu0 %v10419_v8  ;;  %9888 = vmatprep.subr.mxu1 %v10419_v8 }
 0x428   :  { %9876 = vmatmul.mubr.msk.f32.vlgmr.msra.gmra.mrb[18].mxu0 %vm1634_vm13, %v3507_v22  ;;  %9881 = vmatmul.mubr.msk.f32.vlgmr.msra.gmra.mrb[18].mxu1 %vm1634_vm13, %v3582_v23 }
 0x429   :  { %9885 = vmatprep.mubr.msk.f32.mxu0 %vm10418_vm0, %v10419_v8  ;;  %9890 = vmatprep.mubr.msk.f32.mxu1 %vm10418_vm0, %v10419_v8 }
 0x4fb   :  { %v3576_v39 = vpop.f32.mrb[18].mxu0  ;;  %v3651_v40 = vpop.f32.mrb[18].mxu1 }
 0x4fc   :  { %v3657_v31 = vsel %vm1634_vm13, %v3576_v39, 0.0  ;;  %v3658_v41 = vsel %vm1634_vm13, %v3651_v40, 0.0  ;;  %v9877_v42 = vpop.f32.mrb[19].mxu0  ;;  %v9882_v18 = vpop.f32.mrb[19].mxu1 }
 0x4fd   :  { %v3659_v43 = vadd.f32 %v3658_v41, %v3657_v31  ;;  %v9251_v18 = vld [vmem:[%s11508_s3 + $0x8] sm:$0xff] }
 0x4ff   :  { %v3660_v44 = vsel %vm1634_vm13, %v3659_v43, 0.0 }
 0x500   :  { %v3661_v45 = vrot.slane %v3660_v44, 4 }
 0x502   :  { %v3662_v46 = vadd.f32 %v3661_v45, %v3660_v44 }
 0x504   :  { %v3663_v47 = vrot.slane %v3662_v46, 2 }
 0x506   :  { %v3664_v32 = vadd.f32 %v3663_v47, %v3662_v46 }
 0x508   :  { %v3665_v48 = vrot.slane %v3664_v32, 1 }
 0x50a   :  { %v3666_v35 = vadd.f32 %v3665_v48, %v3664_v32 }
 0x50c   :  { %v3668_v36 = vmul.f32 0.0625, %v3666_v35 }
 0x50e   :  { %v3669_v58 = vsub.f32 %v3576_v39, %v3668_v36  ;;  %v3670_v19 = vsub.f32 %v3651_v40, %v3668_v36  ;;  %v4430_v36 = vld [vmem:[%s11508_s3] sm:$0xff] }
 0x510   :  { %v3671_v20 = vmul.f32 %v3669_v58, %v3669_v58  ;;  %v3672_v33 = vmul.f32 %v3670_v19, %v3670_v19 }
 0x512   :  { %v3673_v34 = vsel %vm1634_vm13, %v3671_v20, 0.0  ;;  %v3674_v37 = vsel %vm1634_vm13, %v3672_v33, 0.0 }
 0x513   :  { %v3675_v38 = vadd.f32 %v3674_v37, %v3673_v34 }
 0x515   :  { %v3676_v51 = vsel %vm1634_vm13, %v3675_v38, 0.0 }
 0x516   :  { %v3677_v52 = vrot.slane %v3676_v51, 4 }
 0x518   :  { %v3678_v53 = vadd.f32 %v3677_v52, %v3676_v51 }
 0x51a   :  { %v3679_v54 = vrot.slane %v3678_v53, 2 }
 0x51c   :  { %v3680_v55 = vadd.f32 %v3679_v54, %v3678_v53 }
 0x51e   :  { %v3681_v56 = vrot.slane %v3680_v55, 1 }
 0x520   :  { %v3682_v57 = vadd.f32 %v3681_v56, %v3680_v55 }
 0x522   :  { %v3683_v59 = vmul.f32 0.0625, %v3682_v57 }
 0x524   :  { %v3684_v60 = vadd.f32 1e-05, %v3683_v59 }
 0x526   :  { %10383 = vrsqrt.f32 %v3684_v60 }
 0x530   :  { %v10384_v63 = vpop.eup %10383 }
 0x531   :  { %v3686_v0 = vmul.f32 %v10384_v63, %v3669_v58  ;;  %v3687_v1 = vmul.f32 %v10384_v63, %v3670_v19 }
 0x533   :  { %v3692_v5 = vmul.f32 %v3691_v62, %v3686_v0  ;;  %v3693_v7 = vmul.f32 %v3691_v62, %v3687_v1  ;;  %v9259_v0 = vld [vmem:[%s11508_s3 + $0x18] sm:$0xff] }
 0x535   :  { %v3699_v10 = vadd.f32 %v3697_v4, %v3693_v7  ;;  %v3698_v6 = vadd.f32 %v3697_v4, %v3692_v5  ;;  %v9262_v5 = vld [vmem:[%s11508_s3 + $0x20] sm:$0xff] }
 0x537   :  { %v3700_v11 = vmax.f32 %v3698_v6, 0.0  ;;  %v3701_v12 = vmax.f32 %v3699_v10, 0.0  ;;  %v9265_v6 = vld [vmem:[%s11508_s3 + $0x28] sm:$0xff] }
 0x539   :  { %9884 = vmatpush3.msra.mxu0 %v3700_v11  ;;  %9889 = vmatpush3.msra.mxu1 %v3701_v12 }
 0x53a   :  { %9886 = vmatmul.mubr.msk.f32.vlgmr.msra.gmra.mrb[20].mxu0 %vm1634_vm13, %v10754_v2  ;;  %9891 = vmatmul.mubr.msk.f32.vlgmr.msra.gmra.mrb[20].mxu1 %vm1634_vm13, %v10754_v2 }
 0x53b   :  { %9893 = vmatprep.subr.mxu0 %v10419_v8  ;;  %9898 = vmatprep.subr.mxu1 %v10419_v8 }
 0x53c   :  { %9894 = vmatpush3.msra.mxu0 %v3700_v11  ;;  %9899 = vmatpush3.msra.mxu1 %v3701_v12  ;;  %v9268_v11 = vld [vmem:[%s11508_s3 + $0x30] sm:$0xff]  ;;  %v9271_v12 = vld [vmem:[%s11508_s3 + $0x38] sm:$0xff] }
 0x53d   :  { %9895 = vmatprep.mubr.msk.f32.mxu0 %vm10418_vm0, %v10419_v8  ;;  %9900 = vmatprep.mubr.msk.f32.mxu1 %vm10418_vm0, %v10419_v8 }
 0x53e   :  { %9903 = vmatprep.subr.mxu0 %v10419_v8  ;;  %9908 = vmatprep.subr.mxu1 %v10419_v8 }
 0x53f   :  { %9896 = vmatmul.mubr.msk.f32.vlgmr.msra.gmra.mrb[22].mxu0 %vm1634_vm13, %v10764_v3  ;;  %9901 = vmatmul.mubr.msk.f32.vlgmr.msra.gmra.mrb[22].mxu1 %vm1634_vm13, %v10764_v3 }
 0x540   :  { %9904 = vmatpush3.msra.mxu0 %v10812_v27  ;;  %9909 = vmatpush3.msra.mxu1 %v10814_v28 }
 0x541   :  { %9905 = vmatprep.mubr.msk.f32.mxu0 %vm10418_vm0, %v10419_v8  ;;  %9910 = vmatprep.mubr.msk.f32.mxu1 %vm10418_vm0, %v10419_v8 }
 0x542   :  { %9913 = vmatprep.subr.mxu0 %v10419_v8  ;;  %9918 = vmatprep.subr.mxu1 %v10419_v8 }
 0x543   :  { %9906 = vmatmul.mubr.msk.f32.vlgmr.msra.gmra.mrb[24].mxu0 %vm1634_vm13, %v10754_v2  ;;  %9911 = vmatmul.mubr.msk.f32.vlgmr.msra.gmra.mrb[24].mxu1 %vm1634_vm13, %v10754_v2 }
 0x544   :  { %9914 = vmatpush3.msra.mxu0 %v10812_v27  ;;  %9919 = vmatpush3.msra.mxu1 %v10814_v28 }
 0x545   :  { %9915 = vmatprep.mubr.msk.f32.mxu0 %vm10418_vm0, %v10419_v8  ;;  %9920 = vmatprep.mubr.msk.f32.mxu1 %vm10418_vm0, %v10419_v8 }
 0x547   :  { %9916 = vmatmul.mubr.msk.f32.vlgmr.msra.gmra.mrb[26].mxu0 %vm1634_vm13, %v10764_v3  ;;  %9921 = vmatmul.mubr.msk.f32.vlgmr.msra.gmra.mrb[26].mxu1 %vm1634_vm13, %v10764_v3 }
 0x548   :  { %9925 = vmatprep.mubr.msk.f32.mxu0 %vm235_vm8, %v10506_v14  ;;  %9930 = vmatprep.mubr.msk.f32.mxu1 %vm235_vm8, %v10506_v14 }
 0x60d   :  { %v3770_v49 = vpop.f32.mrb[20].mxu0  ;;  %v3840_v50 = vpop.f32.mrb[20].mxu1 }
 0x60e   :  { %v9887_v27 = vpop.f32.mrb[21].mxu0  ;;  %v9892_v28 = vpop.f32.mrb[21].mxu1 }
 0x612   :  { %v3912_v13 = vpop.f32.mrb[22].mxu0  ;;  %v3982_v16 = vpop.f32.mrb[22].mxu1 }
 0x613   :  { %v3986_v17 = vmax.f32 %v3770_v49, %v3912_v13  ;;  %v3987_v21 = vmax.f32 %v3840_v50, %v3982_v16  ;;  %v9897_v22 = vpop.f32.mrb[23].mxu0  ;;  %v9902_v23 = vpop.f32.mrb[23].mxu1  ;;  %v9280_v49 = vld [vmem:[%s11512_s7 + $0x4] sm:$0xf] }
 0x615   :  { %9923 = vmatprep.subr.msk.mxu0 %vm240_vm5, %v3986_v17  ;;  %9928 = vmatprep.subr.msk.mxu1 %vm240_vm5, %v3987_v21 }
 0x616   :  { %9924 = vmatpush3.msk.msra.mxu0 %vm240_vm5, %v3986_v17  ;;  %9929 = vmatpush3.msk.msra.mxu1 %vm240_vm5, %v3987_v21  ;;  %v4054_v24 = vpop.f32.mrb[24].mxu0  ;;  %v4124_v25 = vpop.f32.mrb[24].mxu1 }
 0x617   :  { %9926 = vmatmul.mubr.msk.f32.vlgmr.msra.gmra.mrb[28].mxu0 %vm235_vm8, %v10517_v15  ;;  %9931 = vmatmul.mubr.msk.f32.vlgmr.msra.gmra.mrb[28].mxu1 %vm235_vm8, %v10517_v15  ;;  %v9907_v26 = vpop.f32.mrb[25].mxu0  ;;  %v9912_v29 = vpop.f32.mrb[25].mxu1 }
 0x618   :  { %9933 = vmatprep.subr.mxu0 %v10419_v8  ;;  %9938 = vmatprep.subr.mxu1 %v10419_v8 }
 0x619   :  { %9935 = vmatprep.mubr.msk.f32.mxu0 %vm10418_vm0, %v10419_v8  ;;  %9940 = vmatprep.mubr.msk.f32.mxu1 %vm10418_vm0, %v10419_v8 }
 0x61a   :  { %v4194_v30 = vpop.f32.mrb[26].mxu0  ;;  %v4264_v39 = vpop.f32.mrb[26].mxu1  ;;  %9934 = vmatpush3.msra.mxu0 %v9251_v18  ;;  %9939 = vmatpush3.msra.mxu1 %v9251_v18 }
 0x61b   :  { %v10983_v40 = vmax.f32 %v4054_v24, %v4194_v30  ;;  %v10985_v31 = vmax.f32 %v4124_v25, %v4264_v39  ;;  %v9917_v41 = vpop.f32.mrb[27].mxu0  ;;  %v9922_v42 = vpop.f32.mrb[27].mxu1  ;;  %9943 = vmatprep.subr.mxu0 %v10419_v8  ;;  %9948 = vmatprep.subr.mxu1 %v10419_v8  ;;  %v5841_v39 = vld [vmem:[%s11512_s7] sm:$0xf] }
 0x6ea   :  { %v9927_v43 = vpop.f32.mrb[28].mxu0  ;;  %v9932_v44 = vpop.f32.mrb[28].mxu1 }
 0x6eb   :  { %v10992_v45 = vpop.f32.mrb[29].mxu0  ;;  %v10994_v46 = vpop.f32.mrb[29].mxu1  ;;  %v5179_v47 = vrot.slane %v9927_v43, 5  ;;  %v5255_v32 = vrot.slane %v9932_v44, 5  ;;  %v5334_v58 = vrot.slane %v9927_v43, 6  ;;  %v5488_v19 = vrot.slane %v9927_v43, 7 }
 0x6ec   :  { %v4434_v48 = vrot.slane %v10992_v45, 1  ;;  %v4508_v35 = vrot.slane %v10994_v46, 1  ;;  %v5409_v20 = vrot.slane %v9932_v44, 6  ;;  %v5563_v33 = vrot.slane %v9932_v44, 7 }
 0x6ed   :  { %v5178_v34 = vrot.slane %v10992_v45, 5  ;;  %v5254_v37 = vrot.slane %v10994_v46, 5  ;;  %v5333_v38 = vrot.slane %v10992_v45, 6  ;;  %v5408_v51 = vrot.slane %v10994_v46, 6 }
 0x6ee   :  { %9936 = vmatmul.mubr.msk.f32.vlgmr.msra.gmra.mrb[30].mxu0 %vm1634_vm13, %v4434_v48  ;;  %9941 = vmatmul.mubr.msk.f32.vlgmr.msra.gmra.mrb[30].mxu1 %vm1634_vm13, %v4508_v35  ;;  %v5487_v52 = vrot.slane %v10992_v45, 7  ;;  %v5562_v53 = vrot.slane %v10994_v46, 7  ;;  %v4727_v62 = vrot.slane %v10992_v45, 2  ;;  %v4800_v63 = vrot.slane %v10994_v46, 2  ;;  %v9289_v35 = vld [vmem:[%s11512_s7 + $0x8] sm:$0xf] }
 0x6ef   :  { %9944 = vmatpush3.msra.mxu0 %v4430_v36  ;;  %9949 = vmatpush3.msra.mxu1 %v4430_v36  ;;  %v5180_v54 = vsel %vm1102_vm10, %v5178_v34, %v5179_v47  ;;  %v5256_v55 = vsel %vm1102_vm10, %v5254_v37, %v5255_v32  ;;  %v5335_v56 = vsel %vm1280_vm11, %v5333_v38, %v5334_v58  ;;  %v4877_v1 = vrot.slane %v10992_v45, 3 }
 0x6f0   :  { %9945 = vmatprep.mubr.msk.f32.mxu0 %vm10418_vm0, %v10419_v8  ;;  %9950 = vmatprep.mubr.msk.f32.mxu1 %vm10418_vm0, %v10419_v8  ;;  %v5410_v57 = vsel %vm1280_vm11, %v5408_v51, %v5409_v20  ;;  %v5489_v59 = vsel %vm1458_vm12, %v5487_v52, %v5488_v19  ;;  %v5564_v60 = vsel %vm1458_vm12, %v5562_v53, %v5563_v33  ;;  %v4950_v4 = vrot.slane %v10994_v46, 3 }
 0x6f1   :  { %9953 = vmatprep.subr.mxu0 %v10419_v8  ;;  %9958 = vmatprep.subr.mxu1 %v10419_v8  ;;  %v5027_v7 = vrot.slane %v10992_v45, 4  ;;  %v5100_v10 = vrot.slane %v10994_v46, 4 }
 0x6f6   :  { %9946 = vmatmul.mubr.msk.f32.vlgmr.msra.gmra.mrb[30].mxu0 %vm1634_vm13, %v10992_v45  ;;  %9951 = vmatmul.mubr.msk.f32.vlgmr.msra.gmra.mrb[30].mxu1 %vm1634_vm13, %v10994_v46 }
 0x6f7   :  { %9954 = vmatpush3.msra.mxu0 %v9256_v61  ;;  %9959 = vmatpush3.msra.mxu1 %v9256_v61  ;;  %v9299_v61 = vld [vmem:[%s11512_s7 + $0x10] sm:$0xf] }
 0x6f8   :  { %9955 = vmatprep.mubr.msk.f32.mxu0 %vm10418_vm0, %v10419_v8  ;;  %9960 = vmatprep.mubr.msk.f32.mxu1 %vm10418_vm0, %v10419_v8 }
 0x6f9   :  { %9963 = vmatprep.subr.mxu0 %v10419_v8  ;;  %9968 = vmatprep.subr.mxu1 %v10419_v8 }
 0x6fe   :  { %9956 = vmatmul.mubr.msk.f32.vlgmr.msra.gmra.mrb[30].mxu0 %vm1634_vm13, %v4727_v62  ;;  %9961 = vmatmul.mubr.msk.f32.vlgmr.msra.gmra.mrb[30].mxu1 %vm1634_vm13, %v4800_v63 }
 0x6ff   :  { %9964 = vmatpush3.msra.mxu0 %v9259_v0  ;;  %9969 = vmatpush3.msra.mxu1 %v9259_v0 }
 0x700   :  { %9965 = vmatprep.mubr.msk.f32.mxu0 %vm10418_vm0, %v10419_v8  ;;  %9970 = vmatprep.mubr.msk.f32.mxu1 %vm10418_vm0, %v10419_v8 }
 0x701   :  { %9973 = vmatprep.subr.mxu0 %v10419_v8  ;;  %9978 = vmatprep.subr.mxu1 %v10419_v8 }
 0x706   :  { %9966 = vmatmul.mubr.msk.f32.vlgmr.msra.gmra.mrb[30].mxu0 %vm1634_vm13, %v4877_v1  ;;  %9971 = vmatmul.mubr.msk.f32.vlgmr.msra.gmra.mrb[30].mxu1 %vm1634_vm13, %v4950_v4 }
 0x707   :  { %9974 = vmatpush3.msra.mxu0 %v9262_v5  ;;  %9979 = vmatpush3.msra.mxu1 %v9262_v5 }
 0x708   :  { %9975 = vmatprep.mubr.msk.f32.mxu0 %vm10418_vm0, %v10419_v8  ;;  %9980 = vmatprep.mubr.msk.f32.mxu1 %vm10418_vm0, %v10419_v8 }
 0x709   :  { %9983 = vmatprep.subr.mxu0 %v10419_v8  ;;  %9988 = vmatprep.subr.mxu1 %v10419_v8 }
 0x70e   :  { %9976 = vmatmul.mubr.msk.f32.vlgmr.msra.gmra.mrb[30].mxu0 %vm1634_vm13, %v5027_v7  ;;  %9981 = vmatmul.mubr.msk.f32.vlgmr.msra.gmra.mrb[30].mxu1 %vm1634_vm13, %v5100_v10  ;;  %v9304_v7 = vld [vmem:[%s11512_s7 + $0x14] sm:$0xf] }
 0x70f   :  { %9984 = vmatpush3.msra.mxu0 %v9265_v6  ;;  %9989 = vmatpush3.msra.mxu1 %v9265_v6 }
 0x710   :  { %9985 = vmatprep.mubr.msk.f32.mxu0 %vm10418_vm0, %v10419_v8  ;;  %9990 = vmatprep.mubr.msk.f32.mxu1 %vm10418_vm0, %v10419_v8 }
 0x711   :  { %9993 = vmatprep.subr.mxu0 %v10419_v8  ;;  %9998 = vmatprep.subr.mxu1 %v10419_v8 }
 0x716   :  { %9986 = vmatmul.mubr.msk.f32.vlgmr.msra.gmra.mrb[30].mxu0 %vm1634_vm13, %v5180_v54  ;;  %9991 = vmatmul.mubr.msk.f32.vlgmr.msra.gmra.mrb[30].mxu1 %vm1634_vm13, %v5256_v55  ;;  %v9294_v55 = vld [vmem:[%s11512_s7 + $0xc] sm:$0xf] }
 0x717   :  { %9994 = vmatpush3.msra.mxu0 %v9268_v11  ;;  %9999 = vmatpush3.msra.mxu1 %v9268_v11 }
 0x718   :  { %9995 = vmatprep.mubr.msk.f32.mxu0 %vm10418_vm0, %v10419_v8  ;;  %10000 = vmatprep.mubr.msk.f32.mxu1 %vm10418_vm0, %v10419_v8 }
 0x719   :  { %10003 = vmatprep.subr.mxu0 %v10419_v8  ;;  %10008 = vmatprep.subr.mxu1 %v10419_v8 }
 0x71e   :  { %9996 = vmatmul.mubr.msk.f32.vlgmr.msra.gmra.mrb[30].mxu0 %vm1634_vm13, %v5335_v56  ;;  %10001 = vmatmul.mubr.msk.f32.vlgmr.msra.gmra.mrb[30].mxu1 %vm1634_vm13, %v5410_v57 }
 0x71f   :  { %10004 = vmatpush3.msra.mxu0 %v9271_v12  ;;  %10009 = vmatpush3.msra.mxu1 %v9271_v12 }
 0x720   :  { %10013 = vmatprep.subr.msk.mxu0 %vm240_vm5, %v10983_v40  ;;  %10018 = vmatprep.subr.msk.mxu1 %vm240_vm5, %v10985_v31 }
 0x721   :  { %10005 = vmatprep.mubr.msk.f32.mxu0 %vm10418_vm0, %v10419_v8  ;;  %10010 = vmatprep.mubr.msk.f32.mxu1 %vm10418_vm0, %v10419_v8 }
 0x726   :  { %10006 = vmatmul.mubr.msk.f32.vlgmr.msra.gmra.mrb[30].mxu0 %vm1634_vm13, %v5489_v59  ;;  %10011 = vmatmul.mubr.msk.f32.vlgmr.msra.gmra.mrb[30].mxu1 %vm1634_vm13, %v5564_v60 }
 0x727   :  { %10014 = vmatpush3.msk.msra.mxu0 %vm240_vm5, %v10983_v40  ;;  %10019 = vmatpush3.msk.msra.mxu1 %vm240_vm5, %v10985_v31 }
 0x728   :  { %10015 = vmatprep.mubr.msk.f32.mxu0 %vm235_vm8, %v10506_v14  ;;  %10020 = vmatprep.mubr.msk.f32.mxu1 %vm235_vm8, %v10506_v14 }
 0x729   :  { %10023 = vmatprep.subr.mxu0 %v10419_v8  ;;  %10028 = vmatprep.subr.mxu1 %v10419_v8 }
 0x72a   :  { %10016 = vmatmul.mubr.msk.f32.vlgmr.msra.gmra.mrb[32].mxu0 %vm235_vm8, %v10517_v15  ;;  %10021 = vmatmul.mubr.msk.f32.vlgmr.msra.gmra.mrb[32].mxu1 %vm235_vm8, %v10517_v15 }
 0x72b   :  { %10025 = vmatprep.mubr.msk.f32.mxu0 %vm10418_vm0, %v10419_v8  ;;  %10030 = vmatprep.mubr.msk.f32.mxu1 %vm10418_vm0, %v10419_v8 }
 0x72c   :  { %10024 = vmatpush3.msk.msra.mxu0 %vm240_vm5, %v9280_v49  ;;  %10029 = vmatpush3.msk.msra.mxu1 %vm240_vm5, %v9280_v49 }
 0x72d   :  { %10033 = vmatprep.subr.mxu0 %v10419_v8  ;;  %10038 = vmatprep.subr.mxu1 %v10419_v8 }
 0x7f9   :  { %v11124_v50 = vpop.f32.mrb[30].mxu0  ;;  %v11126_v27 = vpop.f32.mrb[30].mxu1 }
 0x7fa   :  { %v5640_v28 = vsel %vm5639_vm1, %v11124_v50, 0.0  ;;  %v5641_v13 = vsel %vm5639_vm1, %v11126_v27, 0.0  ;;  %v10007_v16 = vpop.f32.mrb[31].mxu0  ;;  %v10012_v17 = vpop.f32.mrb[31].mxu1 }
 0x7fb   :  { %v5642_v21 = vadd.f32 %v5641_v13, %v5640_v28  ;;  %v9314_v13 = vld [vmem:[%s11512_s7 + $0x1c] sm:$0xf] }
 0x7fd   :  { %v5643_v22 = vsel %vm5639_vm1, %v5642_v21, 0.0  ;;  %v10017_v23 = vpop.f32.mrb[32].mxu0  ;;  %v10022_v24 = vpop.f32.mrb[32].mxu1 }
 0x7fe   :  { %v5644_v25 = vrot.slane %v5643_v22, 4  ;;  %v11133_v26 = vpop.f32.mrb[33].mxu0  ;;  %v11135_v29 = vpop.f32.mrb[33].mxu1  ;;  %v6605_v31 = vrot.slane %v10017_v23, 5  ;;  %v6684_v41 = vrot.slane %v10022_v24, 5  ;;  %v6763_v18 = vrot.slane %v10017_v23, 6 }
 0x7ff   :  { %v5845_v30 = vrot.slane %v11133_v26, 1  ;;  %v5922_v42 = vrot.slane %v11135_v29, 1  ;;  %v6920_v43 = vrot.slane %v10017_v23, 7  ;;  %v6841_v44 = vrot.slane %v10022_v24, 6 }
 0x800   :  { %v5645_v40 = vadd.f32 %v5644_v25, %v5643_v22  ;;  %v6998_v45 = vrot.slane %v10022_v24, 7  ;;  %v6604_v47 = vrot.slane %v11133_v26, 5  ;;  %v6683_v32 = vrot.slane %v11135_v29, 5 }
 0x801   :  { %10026 = vmatmul.mubr.msk.f32.vlgmr.msra.gmra.mrb[34].mxu0 %vm235_vm8, %v5845_v30  ;;  %10031 = vmatmul.mubr.msk.f32.vlgmr.msra.gmra.mrb[34].mxu1 %vm235_vm8, %v5922_v42  ;;  %v6762_v48 = vrot.slane %v11133_v26, 6  ;;  %v6840_v36 = vrot.slane %v11135_v29, 6  ;;  %v6919_v58 = vrot.slane %v11133_v26, 7  ;;  %v6997_v19 = vrot.slane %v11135_v29, 7 }
 0x802   :  { %v5646_v46 = vrot.slane %v5645_v40, 2  ;;  %10034 = vmatpush3.msk.msra.mxu0 %vm240_vm5, %v5841_v39  ;;  %10035 = vmatprep.mubr.msk.f32.mxu0 %vm10418_vm0, %v10419_v8  ;;  %v6606_v33 = vsel %vm1102_vm10, %v6604_v47, %v6605_v31  ;;  %v6685_v34 = vsel %vm1102_vm10, %v6683_v32, %v6684_v41  ;;  %v6144_v54 = vrot.slane %v11133_v26, 2 }
 0x803   :  { %10039 = vmatpush3.msk.msra.mxu1 %vm240_vm5, %v5841_v39  ;;  %10040 = vmatprep.mubr.msk.f32.mxu1 %vm10418_vm0, %v10419_v8  ;;  %v11166_v37 = vsel %vm1280_vm11, %v6762_v48, %v6763_v18  ;;  %v11169_v38 = vsel %vm1280_vm11, %v6840_v36, %v6841_v44  ;;  %v11172_v51 = vsel %vm1458_vm12, %v6919_v58, %v6920_v43  ;;  %v6220_v57 = vrot.slane %v11135_v29, 2 }
 0x804   :  { %v5647_v20 = vadd.f32 %v5646_v46, %v5645_v40  ;;  %10043 = vmatprep.subr.mxu0 %v10419_v8  ;;  %10048 = vmatprep.subr.mxu1 %v10419_v8  ;;  %v11178_v53 = vsel %vm1458_vm12, %v6997_v19, %v6998_v45  ;;  %v6297_v60 = vrot.slane %v11133_v26, 3  ;;  %v6373_v0 = vrot.slane %v11135_v29, 3 }
 0x805   :  { %10036 = vmatmul.mubr.msk.f32.vlgmr.msra.gmra.mrb[36].mxu0 %vm235_vm8, %v11133_v26  ;;  %10041 = vmatmul.mubr.msk.f32.vlgmr.msra.gmra.mrb[36].mxu1 %vm235_vm8, %v11135_v29  ;;  %v6450_v5 = vrot.slane %v11133_v26, 4  ;;  %v6526_v11 = vrot.slane %v11135_v29, 4 }
 0x806   :  { %v5648_v52 = vrot.slane %v5647_v20, 1  ;;  %10044 = vmatpush3.msk.msra.mxu0 %vm240_vm5, %v9289_v35  ;;  %10045 = vmatprep.mubr.msk.f32.mxu0 %vm10418_vm0, %v10419_v8 }
 0x807   :  { %10049 = vmatpush3.msk.msra.mxu1 %vm240_vm5, %v9289_v35  ;;  %10050 = vmatprep.mubr.msk.f32.mxu1 %vm10418_vm0, %v10419_v8 }
 0x808   :  { %v5649_v56 = vadd.f32 %v5648_v52, %v5647_v20  ;;  %10053 = vmatprep.subr.mxu0 %v10419_v8  ;;  %10058 = vmatprep.subr.mxu1 %v10419_v8 }
 0x809   :  { %10046 = vmatmul.mubr.msk.f32.vlgmr.msra.gmra.mrb[38].mxu0 %vm235_vm8, %v6144_v54  ;;  %10051 = vmatmul.mubr.msk.f32.vlgmr.msra.gmra.mrb[38].mxu1 %vm235_vm8, %v6220_v57 }
 0x80a   :  { %v5651_v59 = vmul.f32 0.125, %v5649_v56  ;;  %10054 = vmatpush3.msk.msra.mxu0 %vm240_vm5, %v9294_v55  ;;  %10055 = vmatprep.mubr.msk.f32.mxu0 %vm10418_vm0, %v10419_v8 }
 0x80b   :  { %10059 = vmatpush3.msk.msra.mxu1 %vm240_vm5, %v9294_v55  ;;  %10060 = vmatprep.mubr.msk.f32.mxu1 %vm10418_vm0, %v10419_v8 }
 0x80c   :  { %v11203_v62 = vsub.f32 %v11124_v50, %v5651_v59  ;;  %v11206_v63 = vsub.f32 %v11126_v27, %v5651_v59  ;;  %10063 = vmatprep.subr.mxu0 %v10419_v8  ;;  %10068 = vmatprep.subr.mxu1 %v10419_v8  ;;  %v9309_v50 = vld [vmem:[%s11512_s7 + $0x18] sm:$0xf] }
 0x80d   :  { %10056 = vmatmul.mubr.msk.f32.vlgmr.msra.gmra.mrb[40].mxu0 %vm235_vm8, %v6297_v60  ;;  %10061 = vmatmul.mubr.msk.f32.vlgmr.msra.gmra.mrb[40].mxu1 %vm235_vm8, %v6373_v0 }
 0x80e   :  { %v5654_v1 = vmul.f32 %v11203_v62, %v11203_v62  ;;  %v5655_v4 = vmul.f32 %v11206_v63, %v11206_v63  ;;  %10064 = vmatpush3.msk.msra.mxu0 %vm240_vm5, %v9299_v61  ;;  %10065 = vmatprep.mubr.msk.f32.mxu0 %vm10418_vm0, %v10419_v8 }
 0x80f   :  { %10069 = vmatpush3.msk.msra.mxu1 %vm240_vm5, %v9299_v61  ;;  %10070 = vmatprep.mubr.msk.f32.mxu1 %vm10418_vm0, %v10419_v8 }
 0x810   :  { %v5656_v10 = vsel %vm5639_vm1, %v5654_v1, 0.0  ;;  %v5657_v6 = vsel %vm5639_vm1, %v5655_v4, 0.0  ;;  %10073 = vmatprep.subr.mxu0 %v10419_v8  ;;  %10078 = vmatprep.subr.mxu1 %v10419_v8 }
 0x811   :  { %v5658_v12 = vadd.f32 %v5657_v6, %v5656_v10  ;;  %10066 = vmatmul.mubr.msk.f32.vlgmr.msra.gmra.mrb[42].mxu0 %vm235_vm8, %v6450_v5  ;;  %10071 = vmatmul.mubr.msk.f32.vlgmr.msra.gmra.mrb[42].mxu1 %vm235_vm8, %v6526_v11  ;;  %v9319_v10 = vld [vmem:[%s11513_s8] ss:$0 sm:$0xff] }
 0x812   :  { %10074 = vmatpush3.msk.msra.mxu0 %vm240_vm5, %v9304_v7  ;;  %10075 = vmatprep.mubr.msk.f32.mxu0 %vm10418_vm0, %v10419_v8 }
 0x813   :  { %v5659_v49 = vsel %vm5639_vm1, %v5658_v12, 0.0  ;;  %10079 = vmatpush3.msk.msra.mxu1 %vm240_vm5, %v9304_v7  ;;  %10080 = vmatprep.mubr.msk.f32.mxu1 %vm10418_vm0, %v10419_v8 }
 0x814   :  { %v5660_v27 = vrot.slane %v5659_v49, 4  ;;  %10083 = vmatprep.subr.mxu0 %v10419_v8  ;;  %10088 = vmatprep.subr.mxu1 %v10419_v8 }
 0x815   :  { %10076 = vmatmul.mubr.msk.f32.vlgmr.msra.gmra.mrb[44].mxu0 %vm235_vm8, %v6606_v33  ;;  %10081 = vmatmul.mubr.msk.f32.vlgmr.msra.gmra.mrb[44].mxu1 %vm235_vm8, %v6685_v34 }
 0x816   :  { %v5661_v28 = vadd.f32 %v5660_v27, %v5659_v49  ;;  %10084 = vmatpush3.msk.msra.mxu0 %vm240_vm5, %v9309_v50  ;;  %10085 = vmatprep.mubr.msk.f32.mxu0 %vm10418_vm0, %v10419_v8 }
 0x817   :  { %10089 = vmatpush3.msk.msra.mxu1 %vm240_vm5, %v9309_v50  ;;  %10090 = vmatprep.mubr.msk.f32.mxu1 %vm10418_vm0, %v10419_v8 }
 0x818   :  { %v5662_v16 = vrot.slane %v5661_v28, 2  ;;  %10093 = vmatprep.subr.mxu0 %v10419_v8  ;;  %10098 = vmatprep.subr.mxu1 %v10419_v8 }
 0x819   :  { %10086 = vmatmul.mubr.msk.f32.vlgmr.msra.gmra.mrb[46].mxu0 %vm235_vm8, %v11166_v37  ;;  %10091 = vmatmul.mubr.msk.f32.vlgmr.msra.gmra.mrb[46].mxu1 %vm235_vm8, %v11169_v38 }
 0x81a   :  { %v5663_v17 = vadd.f32 %v5662_v16, %v5661_v28  ;;  %10094 = vmatpush3.msk.msra.mxu0 %vm240_vm5, %v9314_v13  ;;  %10095 = vmatprep.mubr.msk.f32.mxu0 %vm10418_vm0, %v10419_v8 }
 0x81b   :  { %10099 = vmatpush3.msk.msra.mxu1 %vm240_vm5, %v9314_v13  ;;  %10100 = vmatprep.mubr.msk.f32.mxu1 %vm10418_vm0, %v10419_v8 }
 0x81c   :  { %v5664_v21 = vrot.slane %v5663_v17, 1  ;;  %10103 = vmatprep.subr.mxu0 %v10419_v8  ;;  %10108 = vmatprep.subr.mxu1 %v10419_v8 }
 0x81d   :  { %10096 = vmatmul.mubr.msk.f32.vlgmr.msra.gmra.mrb[48].mxu0 %vm235_vm8, %v11172_v51  ;;  %10101 = vmatmul.mubr.msk.f32.vlgmr.msra.gmra.mrb[48].mxu1 %vm235_vm8, %v11178_v53 }
 0x81e   :  { %v5665_v22 = vadd.f32 %v5664_v21, %v5663_v17  ;;  %10105 = vmatprep.mubr.msk.f32.mxu0 %vm10418_vm0, %v10419_v8  ;;  %10110 = vmatprep.mubr.msk.f32.mxu1 %vm10418_vm0, %v10419_v8 }
 0x820   :  { %v5666_v23 = vmul.f32 0.125, %v5665_v22 }
 0x822   :  { %v5667_v24 = vadd.f32 1e-05, %v5666_v23 }
 0x824   :  { %10385 = vrsqrt.f32 %v5667_v24 }
 0x82e   :  { %v10386_v25 = vpop.eup %10385 }
 0x82f   :  { %v11282_v26 = vmul.f32 %v10386_v25, %v11203_v62  ;;  %v11285_v29 = vmul.f32 %v10386_v25, %v11206_v63 }
 0x8d4   :  { %v5917_v30 = vpop.f32.mrb[34].mxu0  ;;  %v5991_v39 = vpop.f32.mrb[34].mxu1 }
 0x8d5   :  { %v10027_v40 = vpop.f32.mrb[35].mxu0  ;;  %v10032_v31 = vpop.f32.mrb[35].mxu1 }
 0x8d8   :  { %v6066_v41 = vpop.f32.mrb[36].mxu0  ;;  %v6138_v18 = vpop.f32.mrb[36].mxu1 }
 0x8d9   :  { %v6067_v42 = vadd.f32 %v6066_v41, %v5917_v30  ;;  %v10037_v43 = vpop.f32.mrb[37].mxu0  ;;  %v6139_v44 = vadd.f32 %v6138_v18, %v5991_v39  ;;  %v10042_v45 = vpop.f32.mrb[37].mxu1 }
 0x8dc   :  { %v6216_v46 = vpop.f32.mrb[38].mxu0  ;;  %v6289_v32 = vpop.f32.mrb[38].mxu1 }
 0x8dd   :  { %v6293_v47 = vadd.f32 %v6216_v46, %v6067_v42  ;;  %v10047_v48 = vpop.f32.mrb[39].mxu0  ;;  %v6294_v35 = vadd.f32 %v6289_v32, %v6139_v44  ;;  %v10052_v36 = vpop.f32.mrb[39].mxu1 }
 0x8e0   :  { %v6369_v58 = vpop.f32.mrb[40].mxu0  ;;  %v6442_v20 = vpop.f32.mrb[40].mxu1 }
 0x8e1   :  { %v6446_v19 = vadd.f32 %v6369_v58, %v6293_v47  ;;  %v10057_v33 = vpop.f32.mrb[41].mxu0  ;;  %v6447_v34 = vadd.f32 %v6442_v20, %v6294_v35  ;;  %v10062_v37 = vpop.f32.mrb[41].mxu1 }
 0x8e2   :  { %v5673_v33 = vsub.s32 2, %v10495_v9  ;;  %v11300_v37 = vld [vmem:[%s11510_s5] sm:$0x1f] }
 0x8e4   :  { %v6522_v38 = vpop.f32.mrb[42].mxu0  ;;  %v6595_v52 = vpop.f32.mrb[42].mxu1 }
 0x8e5   :  { %v6599_v51 = vadd.f32 %v6522_v38, %v6446_v19  ;;  %v10067_v53 = vpop.f32.mrb[43].mxu0  ;;  %v6600_v54 = vadd.f32 %v6595_v52, %v6447_v34  ;;  %v10072_v55 = vpop.f32.mrb[43].mxu1  ;;  %v5674_v38 = vrot.slane %v11300_v37, %v5673_v33 }
 0x8e6   :  { %v11308_v53 = vld [vmem:[%s11511_s6] sm:$0x1f] }
 0x8e7   :  { %v5675_v52 = vmul.f32 %v5674_v38, %v11282_v26  ;;  %v5676_v55 = vmul.f32 %v5674_v38, %v11285_v29  ;;  %v9351_v38 = vld [vmem:[%s11509_s4 + $0x30] sm:$0xff] }
 0x8e8   :  { %v6678_v56 = vpop.f32.mrb[44].mxu0  ;;  %v6754_v59 = vpop.f32.mrb[44].mxu1 }
 0x8e9   :  { %v6758_v57 = vadd.f32 %v6678_v56, %v6599_v51  ;;  %v10077_v60 = vpop.f32.mrb[45].mxu0  ;;  %v6759_v61 = vadd.f32 %v6754_v59, %v6600_v54  ;;  %v10082_v62 = vpop.f32.mrb[45].mxu1  ;;  %v7114_v51 = vsub.s32 4, %v10495_v9  ;;  %v5680_v54 = vrot.slane %v11308_v53, %v5673_v33 }
 0x8eb   :  { %v7115_v56 = vrot.slane %v11300_v37, %v7114_v51  ;;  %v5681_v59 = vadd.f32 %v5680_v54, %v5675_v52  ;;  %v5682_v60 = vadd.f32 %v5680_v54, %v5676_v55  ;;  %v9354_v54 = vld [vmem:[%s11509_s4 + $0x38] sm:$0xff] }
 0x8ec   :  { %v6836_v63 = vpop.f32.mrb[46].mxu0  ;;  %v6911_v1 = vpop.f32.mrb[46].mxu1 }
 0x8ed   :  { %v6915_v0 = vadd.f32 %v6836_v63, %v6758_v57  ;;  %v10087_v4 = vpop.f32.mrb[47].mxu0  ;;  %v6916_v5 = vadd.f32 %v6911_v1, %v6759_v61  ;;  %v10092_v7 = vpop.f32.mrb[47].mxu1  ;;  %v7121_v63 = vrot.slane %v11308_v53, %v7114_v51  ;;  %v5683_v1 = vmax.f32 %v5681_v59, 0.0 }
 0x8ee   :  { %v5684_v4 = vmax.f32 %v5682_v60, 0.0 }
 0x8f0   :  { %v6993_v6 = vpop.f32.mrb[48].mxu0  ;;  %v7068_v12 = vpop.f32.mrb[48].mxu1 }
 0x8f1   :  { %v7072_v11 = vadd.f32 %v6993_v6, %v6915_v0  ;;  %v10097_v49 = vpop.f32.mrb[49].mxu0  ;;  %v7073_v50 = vadd.f32 %v7068_v12, %v6916_v5  ;;  %v10102_v27 = vpop.f32.mrb[49].mxu1 }
 0x8f3   :  { %v7080_v28 = vadd.f32 %v9319_v10, %v7072_v11  ;;  %v7081_v13 = vadd.f32 %v9319_v10, %v7073_v50 }
 0x8f5   :  { %v7082_v16 = vsel %vm5639_vm1, %v7080_v28, 0.0  ;;  %v7083_v17 = vsel %vm5639_vm1, %v7081_v13, 0.0 }
 0x8f6   :  { %v7084_v21 = vadd.f32 %v7083_v17, %v7082_v16 }
 0x8f8   :  { %v7085_v22 = vsel %vm5639_vm1, %v7084_v21, 0.0 }
 0x8f9   :  { %v7086_v23 = vrot.slane %v7085_v22, 4 }
 0x8fb   :  { %v7087_v24 = vadd.f32 %v7086_v23, %v7085_v22 }
 0x8fd   :  { %v7088_v25 = vrot.slane %v7087_v24, 2 }
 0x8ff   :  { %v7089_v30 = vadd.f32 %v7088_v25, %v7087_v24 }
 0x901   :  { %v7090_v39 = vrot.slane %v7089_v30, 1 }
 0x903   :  { %v7091_v40 = vadd.f32 %v7090_v39, %v7089_v30 }
 0x905   :  { %v7092_v31 = vmul.f32 0.125, %v7091_v40  ;;  %v7581_v40 = vld [vmem:[%s11509_s4] sm:$0xff] }
 0x907   :  { %v7093_v41 = vsub.f32 %v7080_v28, %v7092_v31  ;;  %v7094_v42 = vsub.f32 %v7081_v13, %v7092_v31 }
 0x909   :  { %v7095_v18 = vmul.f32 %v7093_v41, %v7093_v41  ;;  %v7096_v43 = vmul.f32 %v7094_v42, %v7094_v42 }
 0x90b   :  { %v7097_v44 = vsel %vm5639_vm1, %v7095_v18, 0.0  ;;  %v7098_v45 = vsel %vm5639_vm1, %v7096_v43, 0.0 }
 0x90c   :  { %v7099_v46 = vadd.f32 %v7098_v45, %v7097_v44  ;;  %v9339_v45 = vld [vmem:[%s11509_s4 + $0x10] sm:$0xff] }
 0x90e   :  { %v7100_v47 = vsel %vm5639_vm1, %v7099_v46, 0.0 }
 0x90f   :  { %v7101_v32 = vrot.slane %v7100_v47, 4 }
 0x911   :  { %v7102_v48 = vadd.f32 %v7101_v32, %v7100_v47  ;;  %v9342_v32 = vld [vmem:[%s11509_s4 + $0x18] sm:$0xff] }
 0x913   :  { %v7103_v35 = vrot.slane %v7102_v48, 2 }
 0x915   :  { %v7104_v36 = vadd.f32 %v7103_v35, %v7102_v48 }
 0x917   :  { %v7105_v58 = vrot.slane %v7104_v36, 1 }
 0x919   :  { %v7106_v19 = vadd.f32 %v7105_v58, %v7104_v36  ;;  %v9345_v36 = vld [vmem:[%s11509_s4 + $0x20] sm:$0xff] }
 0x91b   :  { %v7107_v20 = vmul.f32 0.125, %v7106_v19 }
 0x91d   :  { %v7108_v34 = vadd.f32 1e-05, %v7107_v20  ;;  %v9348_v20 = vld [vmem:[%s11509_s4 + $0x28] sm:$0xff] }
 0x91f   :  { %10387 = vrsqrt.f32 %v7108_v34 }
 0x929   :  { %v10388_v57 = vpop.eup %10387 }
 0x92a   :  { %v7110_v61 = vmul.f32 %v10388_v57, %v7093_v41  ;;  %v7111_v62 = vmul.f32 %v10388_v57, %v7094_v42 }
 0x92c   :  { %v7116_v0 = vmul.f32 %v7115_v56, %v7110_v61  ;;  %v7117_v26 = vmul.f32 %v7115_v56, %v7111_v62 }
 0x92e   :  { %v7123_v5 = vadd.f32 %v7121_v63, %v7117_v26  ;;  %v7122_v7 = vadd.f32 %v7121_v63, %v7116_v0 }
 0x930   :  { %v7124_v10 = vadd.f32 %v7122_v7, %v5683_v1  ;;  %v7125_v6 = vadd.f32 %v7123_v5, %v5684_v4 }
 0x932   :  { %v7126_v11 = vmax.f32 %v7124_v10, 0.0  ;;  %v7127_v12 = vmax.f32 %v7125_v6, 0.0 }
 0x934   :  { %10104 = vmatpush3.msk.msra.mxu0 %vm240_vm5, %v7126_v11  ;;  %10109 = vmatpush3.msk.msra.mxu1 %vm240_vm5, %v7127_v12 }
 0x935   :  { %10106 = vmatmul.mubr.msk.f32.vlgmr.msra.gmra.mrb[50].mxu0 %vm235_vm8, %v10754_v2  ;;  %10111 = vmatmul.mubr.msk.f32.vlgmr.msra.gmra.mrb[50].mxu1 %vm235_vm8, %v10754_v2 }
 0x936   :  { %10113 = vmatprep.subr.mxu0 %v10419_v8  ;;  %10118 = vmatprep.subr.mxu1 %v10419_v8 }
 0x937   :  { %10114 = vmatpush3.msk.msra.mxu0 %vm240_vm5, %v7126_v11  ;;  %10119 = vmatpush3.msk.msra.mxu1 %vm240_vm5, %v7127_v12 }
 0x938   :  { %10115 = vmatprep.mubr.msk.f32.mxu0 %vm10418_vm0, %v10419_v8  ;;  %10120 = vmatprep.mubr.msk.f32.mxu1 %vm10418_vm0, %v10419_v8 }
 0x939   :  { %10116 = vmatmul.mubr.msk.f32.vlgmr.msra.gmra.mrb[52].mxu0 %vm235_vm8, %v10764_v3  ;;  %10121 = vmatmul.mubr.msk.f32.vlgmr.msra.gmra.mrb[52].mxu1 %vm235_vm8, %v10764_v3 }
 0x93a   :  { %10125 = vmatprep.mubr.msk.f32.mxu0 %vm7420_vm2, %v10506_v14  ;;  %10130 = vmatprep.mubr.msk.f32.mxu1 %vm7420_vm2, %v10506_v14  ;;  %v9334_v14 = vld [vmem:[%s11509_s4 + $0x8] sm:$0xff]  ;;  %s10420_s4 = smov [#allocation2]  }
 0x93b   :  { %s9130_s2 = sshll.u32 %s10420_s4, 4  ;;  %s9131_s2 = int_to_ptr.vmem [resolvable:$true] %s9130_s2 }
 0x93c   :  { %s10393_s29 = scalar_lea.vmem %s9131_s2, 32  ;;  %p10398_p1 = scmp.lt.s32.totalorder %s9131_s2, %s9131_s2 }
 0x93d   :  { %p10394_p0 = scmp.ne.s32.totalorder %s9131_s2, %s10393_s29  ;;  %p10399_p2 = scmp.lt.s32.totalorder %s10393_s29, %s10393_s29 }
 0x93f   :  { %p10400_p3 = por %p10399_p2, %p10398_p1 }
 0x941   :  { %p10401_p4 = pnand %p10400_p3, %p10394_p0 }
 0xa08   :  { %v7199_v29 = vpop.f32.mrb[50].mxu0  ;;  %v7272_v49 = vpop.f32.mrb[50].mxu1 }
 0xa09   :  { %v10107_v50 = vpop.f32.mrb[51].mxu0  ;;  %v10112_v27 = vpop.f32.mrb[51].mxu1 }
 0xa0c   :  { %v7344_v28 = vpop.f32.mrb[52].mxu0  ;;  %v7414_v13 = vpop.f32.mrb[52].mxu1 }
 0xa0d   :  { %v7418_v16 = vmax.f32 %v7199_v29, %v7344_v28  ;;  %v7419_v17 = vmax.f32 %v7272_v49, %v7414_v13  ;;  %v10117_v21 = vpop.f32.mrb[53].mxu0  ;;  %v10122_v22 = vpop.f32.mrb[53].mxu1 }
 0xa0f   :  { %10123 = vmatprep.subr.msk.mxu0 %vm1280_vm11, %v7418_v16  ;;  %10128 = vmatprep.subr.msk.mxu1 %vm1280_vm11, %v7419_v17 }
 0xa10   :  { %10124 = vmatpush3.msk.msra.mxu0 %vm1280_vm11, %v7418_v16  ;;  %10129 = vmatpush3.msk.msra.mxu1 %vm1280_vm11, %v7419_v17 }
 0xa11   :  { %10126 = vmatmul.mubr.msk.f32.vlgmr.msra.gmra.mrb[54].mxu0 %vm7420_vm2, %v10517_v15  ;;  %10131 = vmatmul.mubr.msk.f32.vlgmr.msra.gmra.mrb[54].mxu1 %vm7420_vm2, %v10517_v15 }
 0xa12   :  { %10133 = vmatprep.subr.mxu0 %v10419_v8  ;;  %10138 = vmatprep.subr.mxu1 %v10419_v8 }
 0xa13   :  { %10135 = vmatprep.mubr.msk.f32.mxu0 %vm10418_vm0, %v10419_v8  ;;  %10140 = vmatprep.mubr.msk.f32.mxu1 %vm10418_vm0, %v10419_v8 }
 0xa14   :  { %10134 = vmatpush3.msra.mxu0 %v9334_v14  ;;  %10139 = vmatpush3.msra.mxu1 %v9334_v14 }
 0xa15   :  { %10143 = vmatprep.subr.mxu0 %v10419_v8  ;;  %10148 = vmatprep.subr.mxu1 %v10419_v8 }
 0xae4   :  { %v10127_v15 = vpop.f32.mrb[54].mxu0  ;;  %v10132_v23 = vpop.f32.mrb[54].mxu1 }
 0xae5   :  { %v11355_v24 = vpop.f32.mrb[55].mxu0  ;;  %v11357_v25 = vpop.f32.mrb[55].mxu1  ;;  %v8630_v31 = vrot.slane %v10127_v15, 7  ;;  %v8706_v41 = vrot.slane %v10132_v23, 7 }
 0xae6   :  { %v7585_v30 = vrot.slane %v11355_v24, 1  ;;  %v7659_v39 = vrot.slane %v11357_v25, 1  ;;  %v8629_v42 = vrot.slane %v11355_v24, 7  ;;  %v8705_v18 = vrot.slane %v11357_v25, 7 }
 0xae7   :  { %v7878_v46 = vrot.slane %v11355_v24, 2  ;;  %v7951_v47 = vrot.slane %v11357_v25, 2  ;;  %v8028_v48 = vrot.slane %v11355_v24, 3  ;;  %v8101_v35 = vrot.slane %v11357_v25, 3 }
 0xae8   :  { %10136 = vmatmul.mubr.msk.f32.vlgmr.msra.gmra.mrb[56].mxu0 %vm1634_vm13, %v7585_v30  ;;  %10141 = vmatmul.mubr.msk.f32.vlgmr.msra.gmra.mrb[56].mxu1 %vm1634_vm13, %v7659_v39  ;;  %v11375_v43 = vsel %vm1458_vm12, %v8629_v42, %v8630_v31  ;;  %v11378_v44 = vsel %vm1458_vm12, %v8705_v18, %v8706_v41  ;;  %v8178_v58 = vrot.slane %v11355_v24, 4  ;;  %v8251_v19 = vrot.slane %v11357_v25, 4 }
 0xae9   :  { %10144 = vmatpush3.msra.mxu0 %v7581_v40  ;;  %10149 = vmatpush3.msra.mxu1 %v7581_v40  ;;  %v8328_v33 = vrot.slane %v11355_v24, 5  ;;  %v8401_v34 = vrot.slane %v11357_v25, 5  ;;  %v8478_v51 = vrot.slane %v11355_v24, 6  ;;  %v8551_v52 = vrot.slane %v11357_v25, 6 }
 0xaea   :  { %10145 = vmatprep.mubr.msk.f32.mxu0 %vm10418_vm0, %v10419_v8  ;;  %10150 = vmatprep.mubr.msk.f32.mxu1 %vm10418_vm0, %v10419_v8 }
 0xaeb   :  { %10153 = vmatprep.subr.mxu0 %v10419_v8  ;;  %10158 = vmatprep.subr.mxu1 %v10419_v8 }
 0xaf0   :  { %10146 = vmatmul.mubr.msk.f32.vlgmr.msra.gmra.mrb[56].mxu0 %vm1634_vm13, %v11355_v24  ;;  %10151 = vmatmul.mubr.msk.f32.vlgmr.msra.gmra.mrb[56].mxu1 %vm1634_vm13, %v11357_v25  ;;  %v8816_v24 = vsub.s32 3, %v10495_v9 }
 0xaf1   :  { %10154 = vmatpush3.msra.mxu0 %v9339_v45  ;;  %10159 = vmatpush3.msra.mxu1 %v9339_v45 }
 0xaf2   :  { %10155 = vmatprep.mubr.msk.f32.mxu0 %vm10418_vm0, %v10419_v8  ;;  %10160 = vmatprep.mubr.msk.f32.mxu1 %vm10418_vm0, %v10419_v8  ;;  %v8817_v25 = vrot.slane %v11300_v37, %v8816_v24  ;;  %v8823_v31 = vrot.slane %v11308_v53, %v8816_v24 }
 0xaf3   :  { %10163 = vmatprep.subr.mxu0 %v10419_v8  ;;  %10168 = vmatprep.subr.mxu1 %v10419_v8 }
 0xaf8   :  { %10156 = vmatmul.mubr.msk.f32.vlgmr.msra.gmra.mrb[56].mxu0 %vm1634_vm13, %v7878_v46  ;;  %10161 = vmatmul.mubr.msk.f32.vlgmr.msra.gmra.mrb[56].mxu1 %vm1634_vm13, %v7951_v47 }
 0xaf9   :  { %10164 = vmatpush3.msra.mxu0 %v9342_v32  ;;  %10169 = vmatpush3.msra.mxu1 %v9342_v32 }
 0xafa   :  { %10165 = vmatprep.mubr.msk.f32.mxu0 %vm10418_vm0, %v10419_v8  ;;  %10170 = vmatprep.mubr.msk.f32.mxu1 %vm10418_vm0, %v10419_v8 }
 0xafb   :  { %10173 = vmatprep.subr.mxu0 %v10419_v8  ;;  %10178 = vmatprep.subr.mxu1 %v10419_v8 }
 0xb00   :  { %10166 = vmatmul.mubr.msk.f32.vlgmr.msra.gmra.mrb[56].mxu0 %vm1634_vm13, %v8028_v48  ;;  %10171 = vmatmul.mubr.msk.f32.vlgmr.msra.gmra.mrb[56].mxu1 %vm1634_vm13, %v8101_v35 }
 0xb01   :  { %10174 = vmatpush3.msra.mxu0 %v9345_v36  ;;  %10179 = vmatpush3.msra.mxu1 %v9345_v36 }
 0xb02   :  { %10175 = vmatprep.mubr.msk.f32.mxu0 %vm10418_vm0, %v10419_v8  ;;  %10180 = vmatprep.mubr.msk.f32.mxu1 %vm10418_vm0, %v10419_v8 }
 0xb03   :  { %10183 = vmatprep.subr.mxu0 %v10419_v8  ;;  %10188 = vmatprep.subr.mxu1 %v10419_v8 }
 0xb08   :  { %10176 = vmatmul.mubr.msk.f32.vlgmr.msra.gmra.mrb[56].mxu0 %vm1634_vm13, %v8178_v58  ;;  %10181 = vmatmul.mubr.msk.f32.vlgmr.msra.gmra.mrb[56].mxu1 %vm1634_vm13, %v8251_v19 }
 0xb09   :  { %10184 = vmatpush3.msra.mxu0 %v9348_v20  ;;  %10189 = vmatpush3.msra.mxu1 %v9348_v20 }
 0xb0a   :  { %10185 = vmatprep.mubr.msk.f32.mxu0 %vm10418_vm0, %v10419_v8  ;;  %10190 = vmatprep.mubr.msk.f32.mxu1 %vm10418_vm0, %v10419_v8 }
 0xb0b   :  { %10193 = vmatprep.subr.mxu0 %v10419_v8  ;;  %10198 = vmatprep.subr.mxu1 %v10419_v8 }
 0xb10   :  { %10186 = vmatmul.mubr.msk.f32.vlgmr.msra.gmra.mrb[56].mxu0 %vm1634_vm13, %v8328_v33  ;;  %10191 = vmatmul.mubr.msk.f32.vlgmr.msra.gmra.mrb[56].mxu1 %vm1634_vm13, %v8401_v34 }
 0xb11   :  { %10194 = vmatpush3.msra.mxu0 %v9351_v38  ;;  %10199 = vmatpush3.msra.mxu1 %v9351_v38 }
 0xb12   :  { %10195 = vmatprep.mubr.msk.f32.mxu0 %vm10418_vm0, %v10419_v8  ;;  %10200 = vmatprep.mubr.msk.f32.mxu1 %vm10418_vm0, %v10419_v8 }
 0xb13   :  { %10203 = vmatprep.subr.mxu0 %v10419_v8  ;;  %10208 = vmatprep.subr.mxu1 %v10419_v8 }
 0xb18   :  { %10196 = vmatmul.mubr.msk.f32.vlgmr.msra.gmra.mrb[56].mxu0 %vm1634_vm13, %v8478_v51  ;;  %10201 = vmatmul.mubr.msk.f32.vlgmr.msra.gmra.mrb[56].mxu1 %vm1634_vm13, %v8551_v52 }
 0xb19   :  { %10204 = vmatpush3.msra.mxu0 %v9354_v54  ;;  %10209 = vmatpush3.msra.mxu1 %v9354_v54 }
 0xb1a   :  { %10205 = vmatprep.mubr.msk.f32.mxu0 %vm10418_vm0, %v10419_v8  ;;  %10210 = vmatprep.mubr.msk.f32.mxu1 %vm10418_vm0, %v10419_v8 }
 0xb1b   :  { %10213 = vmatprep.subr.mxu0 %v10419_v8  ;;  %10218 = vmatprep.subr.mxu1 %v10419_v8 }
 0xb20   :  { %10206 = vmatmul.mubr.msk.f32.vlgmr.msra.gmra.mrb[56].mxu0 %vm1634_vm13, %v11375_v43  ;;  %10211 = vmatmul.mubr.msk.f32.vlgmr.msra.gmra.mrb[56].mxu1 %vm1634_vm13, %v11378_v44 }
 0xb21   :  { %10215 = vmatprep.mubr.msk.f32.mxu0 %vm10418_vm0, %v10419_v8  ;;  %10220 = vmatprep.mubr.msk.f32.mxu1 %vm10418_vm0, %v10419_v8 }
 0xbf3   :  { %v8700_v55 = vpop.f32.mrb[56].mxu0  ;;  %v8776_v56 = vpop.f32.mrb[56].mxu1 }
 0xbf4   :  { %v8783_v57 = vsel %vm8782_vm3, %v8700_v55, 0.0  ;;  %v8784_v59 = vsel %vm8782_vm3, %v8776_v56, 0.0  ;;  %v10207_v60 = vpop.f32.mrb[57].mxu0  ;;  %v10212_v61 = vpop.f32.mrb[57].mxu1 }
 0xbf5   :  { %v8785_v62 = vadd.f32 %v8784_v59, %v8783_v57 }
 0xbf7   :  { %v8786_v63 = vsel %vm8782_vm3, %v8785_v62, 0.0 }
 0xbf8   :  { %v8787_v0 = vrot.slane %v8786_v63, 4 }
 0xbfa   :  { %v8788_v26 = vadd.f32 %v8787_v0, %v8786_v63 }
 0xbfc   :  { %v8789_v1 = vrot.slane %v8788_v26, 2 }
 0xbfe   :  { %v8790_v4 = vadd.f32 %v8789_v1, %v8788_v26 }
 0xc00   :  { %v8791_v5 = vrot.slane %v8790_v4, 1 }
 0xc02   :  { %v8792_v7 = vadd.f32 %v8791_v5, %v8790_v4 }
 0xc04   :  { %v8794_v10 = vmul.f32 0.25, %v8792_v7 }
 0xc06   :  { %v8795_v6 = vsub.f32 %v8700_v55, %v8794_v10  ;;  %v8796_v11 = vsub.f32 %v8776_v56, %v8794_v10 }
 0xc08   :  { %v8797_v12 = vmul.f32 %v8795_v6, %v8795_v6  ;;  %v8798_v29 = vmul.f32 %v8796_v11, %v8796_v11 }
 0xc0a   :  { %v8799_v49 = vsel %vm8782_vm3, %v8797_v12, 0.0  ;;  %v8800_v50 = vsel %vm8782_vm3, %v8798_v29, 0.0 }
 0xc0b   :  { %v8801_v27 = vadd.f32 %v8800_v50, %v8799_v49 }
 0xc0d   :  { %v8802_v28 = vsel %vm8782_vm3, %v8801_v27, 0.0 }
 0xc0e   :  { %v8803_v13 = vrot.slane %v8802_v28, 4 }
 0xc10   :  { %v8804_v16 = vadd.f32 %v8803_v13, %v8802_v28 }
 0xc12   :  { %v8805_v17 = vrot.slane %v8804_v16, 2 }
 0xc14   :  { %v8806_v21 = vadd.f32 %v8805_v17, %v8804_v16 }
 0xc16   :  { %v8807_v22 = vrot.slane %v8806_v21, 1 }
 0xc18   :  { %v8808_v14 = vadd.f32 %v8807_v22, %v8806_v21 }
 0xc1a   :  { %v8809_v15 = vmul.f32 0.25, %v8808_v14 }
 0xc1c   :  { %v8810_v23 = vadd.f32 1e-05, %v8809_v15 }
 0xc1e   :  { %10389 = vrsqrt.f32 %v8810_v23 }
 0xc28   :  { %v10390_v30 = vpop.eup %10389 }
 0xc29   :  { %v8812_v39 = vmul.f32 %v10390_v30, %v8795_v6  ;;  %v8813_v40 = vmul.f32 %v10390_v30, %v8796_v11 }
 0xc2b   :  { %v8818_v41 = vmul.f32 %v8817_v25, %v8812_v39  ;;  %v8819_v42 = vmul.f32 %v8817_v25, %v8813_v40 }
 0xc2d   :  { %v8824_v18 = vadd.f32 %v8823_v31, %v8818_v41  ;;  %v8825_v43 = vadd.f32 %v8823_v31, %v8819_v42 }
 0xc2f   :  { %v8827_v44 = vmax.f32 %v8825_v43, 0.0  ;;  %v8826_v45 = vmax.f32 %v8824_v18, 0.0 }
 0xc31   :  { %10214 = vmatpush3.msk.msra.mxu0 %vm1280_vm11, %v8826_v45  ;;  %10219 = vmatpush3.msk.msra.mxu1 %vm1280_vm11, %v8827_v44 }
 0xc32   :  { %10216 = vmatmul.mubr.msk.f32.vlgmr.msra.gmra.mrb[58].mxu0 %vm7420_vm2, %v10754_v2  ;;  %10221 = vmatmul.mubr.msk.f32.vlgmr.msra.gmra.mrb[58].mxu1 %vm7420_vm2, %v10754_v2 }
 0xc33   :  { %10223 = vmatprep.subr.mxu0 %v10419_v8  ;;  %10228 = vmatprep.subr.mxu1 %v10419_v8 }
 0xc34   :  { %10224 = vmatpush3.msk.msra.mxu0 %vm1280_vm11, %v8826_v45  ;;  %10229 = vmatpush3.msk.msra.mxu1 %vm1280_vm11, %v8827_v44 }
 0xc35   :  { %10225 = vmatprep.mubr.msk.f32.mxu0 %vm10418_vm0, %v10419_v8  ;;  %10230 = vmatprep.mubr.msk.f32.mxu1 %vm10418_vm0, %v10419_v8 }
 0xc36   :  { %10226 = vmatmul.mubr.msk.f32.vlgmr.msra.gmra.mrb[60].mxu0 %vm7420_vm2, %v10764_v3  ;;  %10231 = vmatmul.mubr.msk.f32.vlgmr.msra.gmra.mrb[60].mxu1 %vm7420_vm2, %v10764_v3 }
 0xd05   :  { %v8899_v9 = vpop.f32.mrb[58].mxu0  ;;  %v8972_v2 = vpop.f32.mrb[58].mxu1 }
 0xd06   :  { %v10217_v37 = vpop.f32.mrb[59].mxu0  ;;  %v10222_v53 = vpop.f32.mrb[59].mxu1 }
 0xd09   :  { %v9044_v46 = vpop.f32.mrb[60].mxu0  ;;  %v9114_v47 = vpop.f32.mrb[60].mxu1 }
 0xd0a   :  { %v9118_v32 = vmax.f32 %v8899_v9, %v9044_v46  ;;  %v9119_v48 = vmax.f32 %v8972_v2, %v9114_v47  ;;  %v10227_v35 = vpop.f32.mrb[61].mxu0  ;;  %v10232_v36 = vpop.f32.mrb[61].mxu1 }
 0xd0c   :  { %v9120_v8 = vmul.f32 0.5, %v9118_v32  ;;  %v9121_v58 = vmul.f32 0.5, %v9119_v48 }
 0xd0e   :  { %9123 = vst.msk [vmem:[#allocation2] sm:$0x1] %vm9122_vm4, %v9120_v8  ;;  %9124 = vst.msk [vmem:[#allocation2 + $0x1] sm:$0x1] %vm9122_vm4, %v9121_v58 }
 0xd0f   :  { %10404 = shalt.err (!%p10401_p4)
}
 0xd10   :  { %s10405_s1 = scalar_lea.hbm %s11514_s9, 32 }
 0xd11   :  { %p10406_p5 = scmp.ne.s32.totalorder %s11514_s9, %s10405_s1  ;;  %p10409_p6 = scmp.lt.u32.totalorder %s10405_s1, %s11514_s9 }
 0xd13   :  { %p10411_p7 = pnand %p10409_p6, %p10406_p5 }
 0xd15   :  { %10414 = shalt.err (!%p10411_p7)
}
 0xd16   :  { %s10421_s8 = smov 16   ;;  %s10422_s14 = smov 1  }
 0xd17   :  { %9136 = dma.vmem_to_hbm [thread:$0]  %s9131_s2, 32, %s11514_s9, [#allocation3], %s10421_s8, %s10421_s8, %s10422_s14  }
 0xd18   :  { %10415 = dma.done.wait [#allocation3], 32  }
 0xd19   :  { %10416 = vsyncadd [#allocation3], 4294967264 }
 0xd1a   :  { %9140 = vsyncpa [#allocation3], 1 }

</bundles_post_ra>
